<compile_context>
chip_gen: v7x
topology: tpu7x:2x2x1
jax: 0.10.0
libtpu: 0.0.40
codegen_flags: <defaults>
</compile_context>

<pallas_src>
import functools

import numpy as np

import jax
import jax.numpy as jnp
from jax.experimental import pallas as pl
from jax.experimental.pallas import tpu as pltpu


# Fixed QLearner architecture: (out_channels, kernel, stride) per conv, fc hidden = 512.
CONV_CFG = ((32, 8, 4), (64, 4, 2), (64, 3, 1))
FC_HIDDEN = 512
BATCH_TILE = 8      # rows per grid step (sublane aligned); grid axis marked "parallel"
A_PAD = 128         # lane-dense padded action dim (sliced back to num_actions outside)


def conv_out_hw(h, w):
    dims = []
    for _, k, s in CONV_CFG:
        h = (h - k) // s + 1
        w = (w - k) // s + 1
        dims.append((h, w))
    return dims


# --------------------------------------------------------------------------
# In-kernel conv layer: per-tap batched matmul on leading-dim-indexed activations
# --------------------------------------------------------------------------
def _tap_conv(act, w_taps, bias, k, stride, ho, wo, cdt):
    """Valid conv + bias + ReLU.

    act:    (hi, wi, bt, cin) f32 value (bt on sublanes, cin on lanes)
    w_taps: (k*k, cin, cout)  compute-dtype weights, tap order (i, j)
    Returns (ho*wo*bt, cout) f32, rows ordered (oy, ox, b).

    The tap extraction is pure leading-dim indexing + aligned stacks/reshapes (no one-hot
    gather matmuls, no lane-dim shuffles); the contraction is one batched einsum over taps
    accumulated in f32.
    """
    hi, wi, bt, cin = act.shape
    taps = []
    for i in range(k):
        for j in range(k):
            rows = jnp.stack([act[stride * oy + i, stride * ox + j]
                              for oy in range(ho) for ox in range(wo)], axis=0)
            taps.append(rows.reshape(ho * wo * bt, cin))
    panel = jnp.stack(taps, axis=0).astype(cdt)                       # (k*k, M, cin)
    y = jnp.einsum("tmk,tkn->tmn", panel, w_taps,
                   preferred_element_type=jnp.float32)                # (k*k, M, cout)
    y = jnp.sum(y, axis=0) + bias                                     # (M, cout) f32
    return jnp.maximum(y, 0.0)


# --------------------------------------------------------------------------
# The fused Pallas kernel (one batch tile per grid step)
# --------------------------------------------------------------------------
def _qlearner_fused_kernel(
        p1_ref, w1_ref, b1_ref,        # conv1: pre-extracted patches + flat weight
        w2_ref, b2_ref,                # conv2: per-tap (Cin, Cout) weights
        w3_ref, b3_ref,                # conv3
        wf1_ref, bf1_ref,              # fc1 (rows pre-permuted to (y3, x3, c))
        wf2_ref, bf2_ref,              # fc2 (padded to A_PAD lane-dense columns)
        out_ref,
        *, oh1, ow1, oh2, ow2, oh3, ow3, k2, s2, k3, s3):
    f32 = jnp.float32
    cdt = w1_ref.dtype                          # matmul-operand (compute) dtype
    m1 = p1_ref.shape[0]
    bt = m1 // (oh1 * ow1)

    # ---- conv1: single big-K matmul on pre-extracted patches (K = 8*8*Cin) ----
    a1 = jnp.dot(p1_ref[...], w1_ref[...], preferred_element_type=f32)
    a1 = jnp.maximum(a1 + b1_ref[...], 0.0)                           # (sp1*bt, C1)
    a1 = a1.reshape(oh1, ow1, bt, a1.shape[-1])                       # aligned re-tiling

    # ---- conv2 / conv3: tap einsum (no gather matmuls) ----
    a2 = _tap_conv(a1, w2_ref[...], b2_ref[...], k2, s2, oh2, ow2, cdt)
    a2 = a2.reshape(oh2, ow2, bt, a2.shape[-1])
    a3 = _tap_conv(a2, w3_ref[...], b3_ref[...], k3, s3, oh3, ow3, cdt)  # (sp3*bt, C3)

    # ---- flatten + fc1 (single matmul; wf1 rows pre-permuted to (y3, x3, c)) ----
    sp3 = oh3 * ow3
    c3 = a3.shape[-1]
    if sp3 == 1:
        h = jnp.dot(a3.astype(cdt), wf1_ref[...], preferred_element_type=f32)
    else:
        a3 = a3.reshape(sp3, bt, c3)
        wf1 = wf1_ref[...].reshape(sp3, c3, wf1_ref.shape[-1])
        h = jnp.einsum("sbc,scn->sbn", a3.astype(cdt), wf1,
                       preferred_element_type=f32).sum(axis=0)
    h = jnp.maximum(h + bf1_ref[...], 0.0)                            # (bt, 512)

    # ---- fc2 (lane-dense padded output) ----
    q = jnp.dot(h.astype(cdt), wf2_ref[...], preferred_element_type=f32) + bf2_ref[...]
    out_ref[...] = q.astype(out_ref.dtype)                            # (bt, A_PAD)


def _const_spec(shape):
    zeros = (0,) * len(shape)
    return pl.BlockSpec(tuple(shape), lambda i, _z=zeros: _z)


# --------------------------------------------------------------------------
# One-time parameter preparation (host/XLA glue, done once)
# --------------------------------------------------------------------------
def prepare_qlearner(params, h, w, compute_dtype=jnp.bfloat16):
    (h1, w1), (h2, w2), (h3, w3) = conv_out_hw(h, w)
    c3 = CONV_CFG[2][0]
    cdt = compute_dtype

    def flat_w(wt):   # OIHW -> (kh*kw*Cin, Cout), K order (i, j, c)
        co, ci, kh, kw = wt.shape
        return wt.transpose(2, 3, 1, 0).reshape(kh * kw * ci, co).astype(cdt)

    def tap_w(wt):    # OIHW -> (kh*kw, Cin, Cout), tap order (i, j)
        co, ci, kh, kw = wt.shape
        return wt.transpose(2, 3, 1, 0).reshape(kh * kw, ci, co).astype(cdt)

    sp3 = h3 * w3
    # fc1: PyTorch flatten order is (c, y, x); kernel feature order is (y, x, c).
    wf1 = params["wf1"].reshape(FC_HIDDEN, c3, h3, w3).transpose(2, 3, 1, 0)
    wf1 = wf1.reshape(sp3 * c3, FC_HIDDEN)

    num_actions = params["wf2"].shape[0]
    wf2 = jnp.zeros((FC_HIDDEN, A_PAD), jnp.float32).at[:, :num_actions].set(params["wf2"].T)
    bf2 = jnp.zeros((A_PAD,), jnp.float32).at[:num_actions].set(params["bf2"])

    return {
        "w1": flat_w(params["w1"]), "b1": params["b1"].reshape(1, -1),
        "w2": tap_w(params["w2"]), "b2": params["b2"].reshape(1, -1),
        "w3": tap_w(params["w3"]), "b3": params["b3"].reshape(1, -1),
        "wf1": wf1.astype(cdt), "bf1": params["bf1"].reshape(1, -1),
        "wf2": wf2.astype(cdt), "bf2": bf2.reshape(1, -1),
    }


# --------------------------------------------------------------------------
# Forward pass: conv1 im2col (input-side glue) + one fused, batch-tiled pallas_call
# --------------------------------------------------------------------------
@functools.partial(jax.jit, static_argnames=("num_actions",))
def qlearner_forward(prep, x, *, num_actions):
    B, C, H, W = x.shape
    (oh1, ow1), (oh2, ow2), (oh3, ow3) = conv_out_hw(H, W)
    (c1, k1, s1), (c2, k2, s2), (c3, k3, s3) = CONV_CFG
    cdt = prep["w1"].dtype
    bt = BATCH_TILE
    nbt = pl.cdiv(B, bt)
    bp = nbt * bt
    sp1 = oh1 * ow1
    k1f = k1 * k1 * C

    # conv1 im2col on the raw input (XLA glue on the input side only).
    # TODO(synk): move this into the kernel to avoid the expanded-p1 HBM round-trip.
    xh = x.transpose(0, 2, 3, 1)                                       # NHWC
    if bp != B:
        xh = jnp.pad(xh, ((0, bp - B), (0, 0), (0, 0), (0, 0)))
    cols = [xh[:, i:i + s1 * oh1:s1, j:j + s1 * ow1:s1, :]
            for i in range(k1) for j in range(k1)]                     # each (bp, oh1, ow1, C)
    p1 = jnp.stack(cols, axis=3)                                       # (bp, oh1, ow1, taps, C)
    p1 = p1.transpose(1, 2, 0, 3, 4).reshape(sp1, bp, k1f)             # rows (y1, x1), cols (i, j, c)
    # Group rows by batch tile so each grid step sees a contiguous (sp1*bt, k1f) panel.
    p1 = p1.reshape(sp1, nbt, bt, k1f).transpose(1, 0, 2, 3).reshape(nbt * sp1 * bt, k1f)
    p1 = p1.astype(cdt)

    operands = (p1, prep["w1"], prep["b1"], prep["w2"], prep["b2"],
                prep["w3"], prep["b3"], prep["wf1"], prep["bf1"],
                prep["wf2"], prep["bf2"])

    kernel = functools.partial(
        _qlearner_fused_kernel,
        oh1=oh1, ow1=ow1, oh2=oh2, ow2=ow2, oh3=oh3, ow3=ow3,
        k2=k2, s2=s2, k3=k3, s3=s3)

    feat = c3 * oh3 * ow3
    flops = 2 * bp * (sp1 * k1f * c1
                      + oh2 * ow2 * (k2 * k2 * c1) * c2
                      + oh3 * ow3 * (k3 * k3 * c2) * c3
                      + feat * FC_HIDDEN
                      + FC_HIDDEN * A_PAD)
    bytes_accessed = sum(int(np.prod(o.shape)) * o.dtype.itemsize for o in operands) \
        + bp * A_PAD * 4

    in_specs = [pl.BlockSpec((sp1 * bt, k1f), lambda i: (i, 0))]
    in_specs += [_const_spec(o.shape) for o in operands[1:]]

    q = pl.pallas_call(
        kernel,
        out_shape=jax.ShapeDtypeStruct((bp, A_PAD), jnp.float32),
        grid=(nbt,),
        in_specs=in_specs,
        out_specs=pl.BlockSpec((bt, A_PAD), lambda i: (i, 0)),
        compiler_params=pltpu.CompilerParams(
            dimension_semantics=("parallel",),
            vmem_limit_bytes=32 * 1024 * 1024),
        cost_estimate=pl.CostEstimate(flops=flops, transcendentals=0,
                                      bytes_accessed=bytes_accessed),
    )(*operands)
    return q[:B, :num_actions]


# --------------------------------------------------------------------------
# Params (PyTorch-layout shapes) and pure-JAX reference
# --------------------------------------------------------------------------
def init_params(key, in_channels, h, w, num_actions):
    (_, _), (_, _), (h3, w3) = conv_out_hw(h, w)
    feat = CONV_CFG[2][0] * h3 * w3
    ks = jax.random.split(key, 10)
    s = 0.05
    return {
        "w1": jax.random.normal(ks[0], (32, in_channels, 8, 8), jnp.float32) * s,
        "b1": jax.random.normal(ks[1], (32,), jnp.float32) * s,
        "w2": jax.random.normal(ks[2], (64, 32, 4, 4), jnp.float32) * s,
        "b2": jax.random.normal(ks[3], (64,), jnp.float32) * s,
        "w3": jax.random.normal(ks[4], (64, 64, 3, 3), jnp.float32) * s,
        "b3": jax.random.normal(ks[5], (64,), jnp.float32) * s,
        "wf1": jax.random.normal(ks[6], (FC_HIDDEN, feat), jnp.float32) * s,
        "bf1": jax.random.normal(ks[7], (FC_HIDDEN,), jnp.float32) * s,
        "wf2": jax.random.normal(ks[8], (num_actions, FC_HIDDEN), jnp.float32) * s,
        "bf2": jax.random.normal(ks[9], (num_actions,), jnp.float32) * s,
    }


def qlearner_reference(params, x):
    def conv(x, w, b, stride):
        y = jax.lax.conv_general_dilated(
            x, w, window_strides=(stride, stride), padding="VALID",
            dimension_numbers=("NCHW", "OIHW", "NCHW"))
        return jax.nn.relu(y + b[None, :, None, None])

    x = conv(x, params["w1"], params["b1"], 4)
    x = conv(x, params["w2"], params["b2"], 2)
    x = conv(x, params["w3"], params["b3"], 1)
    x = x.reshape(x.shape[0], -1)
    x = jax.nn.relu(x @ params["wf1"].T + params["bf1"])
    x = x @ params["wf2"].T + params["bf2"]
    return x


if __name__ == "__main__":
    # Smallest valid spatial size for the 8/4 -> 4/2 -> 3/1 conv stack is 36x36.
    # 4 stacked frames, 6 actions, batch 16 (two parallel grid steps of BATCH_TILE=8).
    B, C, H, W = 16, 4, 36, 36
    NUM_ACTIONS = 6

    key = jax.random.PRNGKey(0)
    k_param, k_x = jax.random.split(key)
    params = init_params(k_param, C, H, W, NUM_ACTIONS)
    x = jax.random.normal(k_x, (B, C, H, W), jnp.float32)
    ref = qlearner_reference(params, x)

    # f32 operands: tight check against the XLA reference.
    # bf16 operands (MXU-native fast path, f32 accumulation): looser, bf16-level check.
    for cdt, tol in ((jnp.float32, 2e-3), (jnp.bfloat16, 2e-2)):
        prep = prepare_qlearner(params, H, W, compute_dtype=cdt)
        q = jax.block_until_ready(qlearner_forward(prep, x, num_actions=NUM_ACTIONS))
        assert q.shape == (B, NUM_ACTIONS), q.shape
        max_err = float(jnp.max(jnp.abs(q - ref)))
        assert jnp.allclose(q, ref, atol=tol, rtol=tol), (str(cdt), max_err)

    print("KERNEL_OK")
</pallas_src>

<mosaic_0001>
module attributes {stable_mosaic.version = 11 : i64} {
  func.func @_qlearner_fused_kernel(%arg0: i32, %arg1: memref<512x256xf32, #tpu.memory_space<vmem>>, %arg2: memref<256x32xf32, #tpu.memory_space<vmem>>, %arg3: memref<1x32xf32, #tpu.memory_space<vmem>>, %arg4: memref<16x32x64xf32, #tpu.memory_space<vmem>>, %arg5: memref<1x64xf32, #tpu.memory_space<vmem>>, %arg6: memref<9x64x64xf32, #tpu.memory_space<vmem>>, %arg7: memref<1x64xf32, #tpu.memory_space<vmem>>, %arg8: memref<64x512xf32, #tpu.memory_space<vmem>>, %arg9: memref<1x512xf32, #tpu.memory_space<vmem>>, %arg10: memref<512x128xf32, #tpu.memory_space<vmem>>, %arg11: memref<1x128xf32, #tpu.memory_space<vmem>>, %arg12: memref<8x128xf32, #tpu.memory_space<vmem>>) attributes {dimension_semantics = [#tpu.dimension_semantics<parallel>], iteration_bounds = array<i64: 2>, scalar_prefetch = 0 : i64, scratch_operands = 0 : i64, tpu.core_type = #tpu.core_type<tc>, window_params = [{transform_indices = @transform_0, window_bounds = array<i64: 512, 256>}, {pipeline_mode = #tpu.pipeline_mode<synchronous>, transform_indices = @transform_1, window_bounds = array<i64: 256, 32>}, {pipeline_mode = #tpu.pipeline_mode<synchronous>, transform_indices = @transform_2, window_bounds = array<i64: 1, 32>}, {pipeline_mode = #tpu.pipeline_mode<synchronous>, transform_indices = @transform_3, window_bounds = array<i64: 16, 32, 64>}, {pipeline_mode = #tpu.pipeline_mode<synchronous>, transform_indices = @transform_4, window_bounds = array<i64: 1, 64>}, {pipeline_mode = #tpu.pipeline_mode<synchronous>, transform_indices = @transform_5, window_bounds = array<i64: 9, 64, 64>}, {pipeline_mode = #tpu.pipeline_mode<synchronous>, transform_indices = @transform_6, window_bounds = array<i64: 1, 64>}, {pipeline_mode = #tpu.pipeline_mode<synchronous>, transform_indices = @transform_7, window_bounds = array<i64: 64, 512>}, {pipeline_mode = #tpu.pipeline_mode<synchronous>, transform_indices = @transform_8, window_bounds = array<i64: 1, 512>}, {pipeline_mode = #tpu.pipeline_mode<synchronous>, transform_indices = @transform_9, window_bounds = array<i64: 512, 128>}, {pipeline_mode = #tpu.pipeline_mode<synchronous>, transform_indices = @transform_10, window_bounds = array<i64: 1, 128>}, {transform_indices = @transform_11, window_bounds = array<i64: 8, 128>}]} {
    %c0 = arith.constant 0 : index
    %c0_0 = arith.constant 0 : index
    %0 = vector.load %arg1[%c0, %c0_0] : memref<512x256xf32, #tpu.memory_space<vmem>>, vector<512x256xf32>
    %c0_1 = arith.constant 0 : index
    %c0_2 = arith.constant 0 : index
    %1 = vector.load %arg2[%c0_1, %c0_2] : memref<256x32xf32, #tpu.memory_space<vmem>>, vector<256x32xf32>
    %cst = arith.constant dense<0.000000e+00> : vector<512x32xf32>
    %2 = tpu.matmul %0, %1, %cst {dimension_numbers = #tpu.dot_dimension_numbers<[1], [0], [0], [1], [0, 0, 1, 1], [], []>} : vector<512x256xf32>, vector<256x32xf32>, vector<512x32xf32> -> vector<512x32xf32>
    %c0_3 = arith.constant 0 : index
    %c0_4 = arith.constant 0 : index
    %3 = vector.load %arg3[%c0_3, %c0_4] : memref<1x32xf32, #tpu.memory_space<vmem>>, vector<1x32xf32>
    %4 = vector.broadcast %3 : vector<1x32xf32> to vector<512x32xf32>
    %5 = arith.addf %2, %4 : vector<512x32xf32>
    %cst_5 = arith.constant 0.000000e+00 : f32
    %6 = vector.broadcast %cst_5 : f32 to vector<512x32xf32>
    %7 = arith.maximumf %5, %6 : vector<512x32xf32>
    %8 = vector.shape_cast %7 : vector<512x32xf32> to vector<8x8x8x32xf32>
    %c0_6 = arith.constant 0 : index
    %c0_7 = arith.constant 0 : index
    %c0_8 = arith.constant 0 : index
    %9 = vector.load %arg4[%c0_6, %c0_7, %c0_8] : memref<16x32x64xf32, #tpu.memory_space<vmem>>, vector<16x32x64xf32>
    %c0_9 = arith.constant 0 : index
    %c0_10 = arith.constant 0 : index
    %10 = vector.load %arg5[%c0_9, %c0_10] : memref<1x64xf32, #tpu.memory_space<vmem>>, vector<1x64xf32>
    %11 = vector.extract_strided_slice %8 {offsets = [0, 0, 0, 0], sizes = [1, 1, 8, 32], strides = [1, 1, 1, 1]} : vector<8x8x8x32xf32> to vector<1x1x8x32xf32>
    %12 = vector.shape_cast %11 : vector<1x1x8x32xf32> to vector<8x32xf32>
    %13 = vector.extract_strided_slice %8 {offsets = [0, 2, 0, 0], sizes = [1, 1, 8, 32], strides = [1, 1, 1, 1]} : vector<8x8x8x32xf32> to vector<1x1x8x32xf32>
    %14 = vector.shape_cast %13 : vector<1x1x8x32xf32> to vector<8x32xf32>
    %15 = vector.extract_strided_slice %8 {offsets = [0, 4, 0, 0], sizes = [1, 1, 8, 32], strides = [1, 1, 1, 1]} : vector<8x8x8x32xf32> to vector<1x1x8x32xf32>
    %16 = vector.shape_cast %15 : vector<1x1x8x32xf32> to vector<8x32xf32>
    %17 = vector.extract_strided_slice %8 {offsets = [2, 0, 0, 0], sizes = [1, 1, 8, 32], strides = [1, 1, 1, 1]} : vector<8x8x8x32xf32> to vector<1x1x8x32xf32>
    %18 = vector.shape_cast %17 : vector<1x1x8x32xf32> to vector<8x32xf32>
    %19 = vector.extract_strided_slice %8 {offsets = [2, 2, 0, 0], sizes = [1, 1, 8, 32], strides = [1, 1, 1, 1]} : vector<8x8x8x32xf32> to vector<1x1x8x32xf32>
    %20 = vector.shape_cast %19 : vector<1x1x8x32xf32> to vector<8x32xf32>
    %21 = vector.extract_strided_slice %8 {offsets = [2, 4, 0, 0], sizes = [1, 1, 8, 32], strides = [1, 1, 1, 1]} : vector<8x8x8x32xf32> to vector<1x1x8x32xf32>
    %22 = vector.shape_cast %21 : vector<1x1x8x32xf32> to vector<8x32xf32>
    %23 = vector.extract_strided_slice %8 {offsets = [4, 0, 0, 0], sizes = [1, 1, 8, 32], strides = [1, 1, 1, 1]} : vector<8x8x8x32xf32> to vector<1x1x8x32xf32>
    %24 = vector.shape_cast %23 : vector<1x1x8x32xf32> to vector<8x32xf32>
    %25 = vector.extract_strided_slice %8 {offsets = [4, 2, 0, 0], sizes = [1, 1, 8, 32], strides = [1, 1, 1, 1]} : vector<8x8x8x32xf32> to vector<1x1x8x32xf32>
    %26 = vector.shape_cast %25 : vector<1x1x8x32xf32> to vector<8x32xf32>
    %27 = vector.extract_strided_slice %8 {offsets = [4, 4, 0, 0], sizes = [1, 1, 8, 32], strides = [1, 1, 1, 1]} : vector<8x8x8x32xf32> to vector<1x1x8x32xf32>
    %28 = vector.shape_cast %27 : vector<1x1x8x32xf32> to vector<8x32xf32>
    %29 = vector.shape_cast %12 : vector<8x32xf32> to vector<1x8x32xf32>
    %30 = vector.shape_cast %14 : vector<8x32xf32> to vector<1x8x32xf32>
    %31 = vector.shape_cast %16 : vector<8x32xf32> to vector<1x8x32xf32>
    %32 = vector.shape_cast %18 : vector<8x32xf32> to vector<1x8x32xf32>
    %33 = vector.shape_cast %20 : vector<8x32xf32> to vector<1x8x32xf32>
    %34 = vector.shape_cast %22 : vector<8x32xf32> to vector<1x8x32xf32>
    %35 = vector.shape_cast %24 : vector<8x32xf32> to vector<1x8x32xf32>
    %36 = vector.shape_cast %26 : vector<8x32xf32> to vector<1x8x32xf32>
    %37 = vector.shape_cast %28 : vector<8x32xf32> to vector<1x8x32xf32>
    %38 = tpu.concatenate %29, %30, %31, %32, %33, %34, %35, %36, %37 in 0 : vector<1x8x32xf32>, vector<1x8x32xf32>, vector<1x8x32xf32>, vector<1x8x32xf32>, vector<1x8x32xf32>, vector<1x8x32xf32>, vector<1x8x32xf32>, vector<1x8x32xf32>, vector<1x8x32xf32> -> vector<9x8x32xf32>
    %39 = vector.shape_cast %38 : vector<9x8x32xf32> to vector<72x32xf32>
    %40 = vector.extract_strided_slice %8 {offsets = [0, 1, 0, 0], sizes = [1, 1, 8, 32], strides = [1, 1, 1, 1]} : vector<8x8x8x32xf32> to vector<1x1x8x32xf32>
    %41 = vector.shape_cast %40 : vector<1x1x8x32xf32> to vector<8x32xf32>
    %42 = vector.extract_strided_slice %8 {offsets = [0, 3, 0, 0], sizes = [1, 1, 8, 32], strides = [1, 1, 1, 1]} : vector<8x8x8x32xf32> to vector<1x1x8x32xf32>
    %43 = vector.shape_cast %42 : vector<1x1x8x32xf32> to vector<8x32xf32>
    %44 = vector.extract_strided_slice %8 {offsets = [0, 5, 0, 0], sizes = [1, 1, 8, 32], strides = [1, 1, 1, 1]} : vector<8x8x8x32xf32> to vector<1x1x8x32xf32>
    %45 = vector.shape_cast %44 : vector<1x1x8x32xf32> to vector<8x32xf32>
    %46 = vector.extract_strided_slice %8 {offsets = [2, 1, 0, 0], sizes = [1, 1, 8, 32], strides = [1, 1, 1, 1]} : vector<8x8x8x32xf32> to vector<1x1x8x32xf32>
    %47 = vector.shape_cast %46 : vector<1x1x8x32xf32> to vector<8x32xf32>
    %48 = vector.extract_strided_slice %8 {offsets = [2, 3, 0, 0], sizes = [1, 1, 8, 32], strides = [1, 1, 1, 1]} : vector<8x8x8x32xf32> to vector<1x1x8x32xf32>
    %49 = vector.shape_cast %48 : vector<1x1x8x32xf32> to vector<8x32xf32>
    %50 = vector.extract_strided_slice %8 {offsets = [2, 5, 0, 0], sizes = [1, 1, 8, 32], strides = [1, 1, 1, 1]} : vector<8x8x8x32xf32> to vector<1x1x8x32xf32>
    %51 = vector.shape_cast %50 : vector<1x1x8x32xf32> to vector<8x32xf32>
    %52 = vector.extract_strided_slice %8 {offsets = [4, 1, 0, 0], sizes = [1, 1, 8, 32], strides = [1, 1, 1, 1]} : vector<8x8x8x32xf32> to vector<1x1x8x32xf32>
    %53 = vector.shape_cast %52 : vector<1x1x8x32xf32> to vector<8x32xf32>
    %54 = vector.extract_strided_slice %8 {offsets = [4, 3, 0, 0], sizes = [1, 1, 8, 32], strides = [1, 1, 1, 1]} : vector<8x8x8x32xf32> to vector<1x1x8x32xf32>
    %55 = vector.shape_cast %54 : vector<1x1x8x32xf32> to vector<8x32xf32>
    %56 = vector.extract_strided_slice %8 {offsets = [4, 5, 0, 0], sizes = [1, 1, 8, 32], strides = [1, 1, 1, 1]} : vector<8x8x8x32xf32> to vector<1x1x8x32xf32>
    %57 = vector.shape_cast %56 : vector<1x1x8x32xf32> to vector<8x32xf32>
    %58 = vector.shape_cast %41 : vector<8x32xf32> to vector<1x8x32xf32>
    %59 = vector.shape_cast %43 : vector<8x32xf32> to vector<1x8x32xf32>
    %60 = vector.shape_cast %45 : vector<8x32xf32> to vector<1x8x32xf32>
    %61 = vector.shape_cast %47 : vector<8x32xf32> to vector<1x8x32xf32>
    %62 = vector.shape_cast %49 : vector<8x32xf32> to vector<1x8x32xf32>
    %63 = vector.shape_cast %51 : vector<8x32xf32> to vector<1x8x32xf32>
    %64 = vector.shape_cast %53 : vector<8x32xf32> to vector<1x8x32xf32>
    %65 = vector.shape_cast %55 : vector<8x32xf32> to vector<1x8x32xf32>
    %66 = vector.shape_cast %57 : vector<8x32xf32> to vector<1x8x32xf32>
    %67 = tpu.concatenate %58, %59, %60, %61, %62, %63, %64, %65, %66 in 0 : vector<1x8x32xf32>, vector<1x8x32xf32>, vector<1x8x32xf32>, vector<1x8x32xf32>, vector<1x8x32xf32>, vector<1x8x32xf32>, vector<1x8x32xf32>, vector<1x8x32xf32>, vector<1x8x32xf32> -> vector<9x8x32xf32>
    %68 = vector.shape_cast %67 : vector<9x8x32xf32> to vector<72x32xf32>
    %69 = vector.extract_strided_slice %8 {offsets = [0, 2, 0, 0], sizes = [1, 1, 8, 32], strides = [1, 1, 1, 1]} : vector<8x8x8x32xf32> to vector<1x1x8x32xf32>
    %70 = vector.shape_cast %69 : vector<1x1x8x32xf32> to vector<8x32xf32>
    %71 = vector.extract_strided_slice %8 {offsets = [0, 4, 0, 0], sizes = [1, 1, 8, 32], strides = [1, 1, 1, 1]} : vector<8x8x8x32xf32> to vector<1x1x8x32xf32>
    %72 = vector.shape_cast %71 : vector<1x1x8x32xf32> to vector<8x32xf32>
    %73 = vector.extract_strided_slice %8 {offsets = [0, 6, 0, 0], sizes = [1, 1, 8, 32], strides = [1, 1, 1, 1]} : vector<8x8x8x32xf32> to vector<1x1x8x32xf32>
    %74 = vector.shape_cast %73 : vector<1x1x8x32xf32> to vector<8x32xf32>
    %75 = vector.extract_strided_slice %8 {offsets = [2, 2, 0, 0], sizes = [1, 1, 8, 32], strides = [1, 1, 1, 1]} : vector<8x8x8x32xf32> to vector<1x1x8x32xf32>
    %76 = vector.shape_cast %75 : vector<1x1x8x32xf32> to vector<8x32xf32>
    %77 = vector.extract_strided_slice %8 {offsets = [2, 4, 0, 0], sizes = [1, 1, 8, 32], strides = [1, 1, 1, 1]} : vector<8x8x8x32xf32> to vector<1x1x8x32xf32>
    %78 = vector.shape_cast %77 : vector<1x1x8x32xf32> to vector<8x32xf32>
    %79 = vector.extract_strided_slice %8 {offsets = [2, 6, 0, 0], sizes = [1, 1, 8, 32], strides = [1, 1, 1, 1]} : vector<8x8x8x32xf32> to vector<1x1x8x32xf32>
    %80 = vector.shape_cast %79 : vector<1x1x8x32xf32> to vector<8x32xf32>
    %81 = vector.extract_strided_slice %8 {offsets = [4, 2, 0, 0], sizes = [1, 1, 8, 32], strides = [1, 1, 1, 1]} : vector<8x8x8x32xf32> to vector<1x1x8x32xf32>
    %82 = vector.shape_cast %81 : vector<1x1x8x32xf32> to vector<8x32xf32>
    %83 = vector.extract_strided_slice %8 {offsets = [4, 4, 0, 0], sizes = [1, 1, 8, 32], strides = [1, 1, 1, 1]} : vector<8x8x8x32xf32> to vector<1x1x8x32xf32>
    %84 = vector.shape_cast %83 : vector<1x1x8x32xf32> to vector<8x32xf32>
    %85 = vector.extract_strided_slice %8 {offsets = [4, 6, 0, 0], sizes = [1, 1, 8, 32], strides = [1, 1, 1, 1]} : vector<8x8x8x32xf32> to vector<1x1x8x32xf32>
    %86 = vector.shape_cast %85 : vector<1x1x8x32xf32> to vector<8x32xf32>
    %87 = vector.shape_cast %70 : vector<8x32xf32> to vector<1x8x32xf32>
    %88 = vector.shape_cast %72 : vector<8x32xf32> to vector<1x8x32xf32>
    %89 = vector.shape_cast %74 : vector<8x32xf32> to vector<1x8x32xf32>
    %90 = vector.shape_cast %76 : vector<8x32xf32> to vector<1x8x32xf32>
    %91 = vector.shape_cast %78 : vector<8x32xf32> to vector<1x8x32xf32>
    %92 = vector.shape_cast %80 : vector<8x32xf32> to vector<1x8x32xf32>
    %93 = vector.shape_cast %82 : vector<8x32xf32> to vector<1x8x32xf32>
    %94 = vector.shape_cast %84 : vector<8x32xf32> to vector<1x8x32xf32>
    %95 = vector.shape_cast %86 : vector<8x32xf32> to vector<1x8x32xf32>
    %96 = tpu.concatenate %87, %88, %89, %90, %91, %92, %93, %94, %95 in 0 : vector<1x8x32xf32>, vector<1x8x32xf32>, vector<1x8x32xf32>, vector<1x8x32xf32>, vector<1x8x32xf32>, vector<1x8x32xf32>, vector<1x8x32xf32>, vector<1x8x32xf32>, vector<1x8x32xf32> -> vector<9x8x32xf32>
    %97 = vector.shape_cast %96 : vector<9x8x32xf32> to vector<72x32xf32>
    %98 = vector.extract_strided_slice %8 {offsets = [0, 3, 0, 0], sizes = [1, 1, 8, 32], strides = [1, 1, 1, 1]} : vector<8x8x8x32xf32> to vector<1x1x8x32xf32>
    %99 = vector.shape_cast %98 : vector<1x1x8x32xf32> to vector<8x32xf32>
    %100 = vector.extract_strided_slice %8 {offsets = [0, 5, 0, 0], sizes = [1, 1, 8, 32], strides = [1, 1, 1, 1]} : vector<8x8x8x32xf32> to vector<1x1x8x32xf32>
    %101 = vector.shape_cast %100 : vector<1x1x8x32xf32> to vector<8x32xf32>
    %102 = vector.extract_strided_slice %8 {offsets = [0, 7, 0, 0], sizes = [1, 1, 8, 32], strides = [1, 1, 1, 1]} : vector<8x8x8x32xf32> to vector<1x1x8x32xf32>
    %103 = vector.shape_cast %102 : vector<1x1x8x32xf32> to vector<8x32xf32>
    %104 = vector.extract_strided_slice %8 {offsets = [2, 3, 0, 0], sizes = [1, 1, 8, 32], strides = [1, 1, 1, 1]} : vector<8x8x8x32xf32> to vector<1x1x8x32xf32>
    %105 = vector.shape_cast %104 : vector<1x1x8x32xf32> to vector<8x32xf32>
    %106 = vector.extract_strided_slice %8 {offsets = [2, 5, 0, 0], sizes = [1, 1, 8, 32], strides = [1, 1, 1, 1]} : vector<8x8x8x32xf32> to vector<1x1x8x32xf32>
    %107 = vector.shape_cast %106 : vector<1x1x8x32xf32> to vector<8x32xf32>
    %108 = vector.extract_strided_slice %8 {offsets = [2, 7, 0, 0], sizes = [1, 1, 8, 32], strides = [1, 1, 1, 1]} : vector<8x8x8x32xf32> to vector<1x1x8x32xf32>
    %109 = vector.shape_cast %108 : vector<1x1x8x32xf32> to vector<8x32xf32>
    %110 = vector.extract_strided_slice %8 {offsets = [4, 3, 0, 0], sizes = [1, 1, 8, 32], strides = [1, 1, 1, 1]} : vector<8x8x8x32xf32> to vector<1x1x8x32xf32>
    %111 = vector.shape_cast %110 : vector<1x1x8x32xf32> to vector<8x32xf32>
    %112 = vector.extract_strided_slice %8 {offsets = [4, 5, 0, 0], sizes = [1, 1, 8, 32], strides = [1, 1, 1, 1]} : vector<8x8x8x32xf32> to vector<1x1x8x32xf32>
    %113 = vector.shape_cast %112 : vector<1x1x8x32xf32> to vector<8x32xf32>
    %114 = vector.extract_strided_slice %8 {offsets = [4, 7, 0, 0], sizes = [1, 1, 8, 32], strides = [1, 1, 1, 1]} : vector<8x8x8x32xf32> to vector<1x1x8x32xf32>
    %115 = vector.shape_cast %114 : vector<1x1x8x32xf32> to vector<8x32xf32>
    %116 = vector.shape_cast %99 : vector<8x32xf32> to vector<1x8x32xf32>
    %117 = vector.shape_cast %101 : vector<8x32xf32> to vector<1x8x32xf32>
    %118 = vector.shape_cast %103 : vector<8x32xf32> to vector<1x8x32xf32>
    %119 = vector.shape_cast %105 : vector<8x32xf32> to vector<1x8x32xf32>
    %120 = vector.shape_cast %107 : vector<8x32xf32> to vector<1x8x32xf32>
    %121 = vector.shape_cast %109 : vector<8x32xf32> to vector<1x8x32xf32>
    %122 = vector.shape_cast %111 : vector<8x32xf32> to vector<1x8x32xf32>
    %123 = vector.shape_cast %113 : vector<8x32xf32> to vector<1x8x32xf32>
    %124 = vector.shape_cast %115 : vector<8x32xf32> to vector<1x8x32xf32>
    %125 = tpu.concatenate %116, %117, %118, %119, %120, %121, %122, %123, %124 in 0 : vector<1x8x32xf32>, vector<1x8x32xf32>, vector<1x8x32xf32>, vector<1x8x32xf32>, vector<1x8x32xf32>, vector<1x8x32xf32>, vector<1x8x32xf32>, vector<1x8x32xf32>, vector<1x8x32xf32> -> vector<9x8x32xf32>
    %126 = vector.shape_cast %125 : vector<9x8x32xf32> to vector<72x32xf32>
    %127 = vector.extract_strided_slice %8 {offsets = [1, 0, 0, 0], sizes = [1, 1, 8, 32], strides = [1, 1, 1, 1]} : vector<8x8x8x32xf32> to vector<1x1x8x32xf32>
    %128 = vector.shape_cast %127 : vector<1x1x8x32xf32> to vector<8x32xf32>
    %129 = vector.extract_strided_slice %8 {offsets = [1, 2, 0, 0], sizes = [1, 1, 8, 32], strides = [1, 1, 1, 1]} : vector<8x8x8x32xf32> to vector<1x1x8x32xf32>
    %130 = vector.shape_cast %129 : vector<1x1x8x32xf32> to vector<8x32xf32>
    %131 = vector.extract_strided_slice %8 {offsets = [1, 4, 0, 0], sizes = [1, 1, 8, 32], strides = [1, 1, 1, 1]} : vector<8x8x8x32xf32> to vector<1x1x8x32xf32>
    %132 = vector.shape_cast %131 : vector<1x1x8x32xf32> to vector<8x32xf32>
    %133 = vector.extract_strided_slice %8 {offsets = [3, 0, 0, 0], sizes = [1, 1, 8, 32], strides = [1, 1, 1, 1]} : vector<8x8x8x32xf32> to vector<1x1x8x32xf32>
    %134 = vector.shape_cast %133 : vector<1x1x8x32xf32> to vector<8x32xf32>
    %135 = vector.extract_strided_slice %8 {offsets = [3, 2, 0, 0], sizes = [1, 1, 8, 32], strides = [1, 1, 1, 1]} : vector<8x8x8x32xf32> to vector<1x1x8x32xf32>
    %136 = vector.shape_cast %135 : vector<1x1x8x32xf32> to vector<8x32xf32>
    %137 = vector.extract_strided_slice %8 {offsets = [3, 4, 0, 0], sizes = [1, 1, 8, 32], strides = [1, 1, 1, 1]} : vector<8x8x8x32xf32> to vector<1x1x8x32xf32>
    %138 = vector.shape_cast %137 : vector<1x1x8x32xf32> to vector<8x32xf32>
    %139 = vector.extract_strided_slice %8 {offsets = [5, 0, 0, 0], sizes = [1, 1, 8, 32], strides = [1, 1, 1, 1]} : vector<8x8x8x32xf32> to vector<1x1x8x32xf32>
    %140 = vector.shape_cast %139 : vector<1x1x8x32xf32> to vector<8x32xf32>
    %141 = vector.extract_strided_slice %8 {offsets = [5, 2, 0, 0], sizes = [1, 1, 8, 32], strides = [1, 1, 1, 1]} : vector<8x8x8x32xf32> to vector<1x1x8x32xf32>
    %142 = vector.shape_cast %141 : vector<1x1x8x32xf32> to vector<8x32xf32>
    %143 = vector.extract_strided_slice %8 {offsets = [5, 4, 0, 0], sizes = [1, 1, 8, 32], strides = [1, 1, 1, 1]} : vector<8x8x8x32xf32> to vector<1x1x8x32xf32>
    %144 = vector.shape_cast %143 : vector<1x1x8x32xf32> to vector<8x32xf32>
    %145 = vector.shape_cast %128 : vector<8x32xf32> to vector<1x8x32xf32>
    %146 = vector.shape_cast %130 : vector<8x32xf32> to vector<1x8x32xf32>
    %147 = vector.shape_cast %132 : vector<8x32xf32> to vector<1x8x32xf32>
    %148 = vector.shape_cast %134 : vector<8x32xf32> to vector<1x8x32xf32>
    %149 = vector.shape_cast %136 : vector<8x32xf32> to vector<1x8x32xf32>
    %150 = vector.shape_cast %138 : vector<8x32xf32> to vector<1x8x32xf32>
    %151 = vector.shape_cast %140 : vector<8x32xf32> to vector<1x8x32xf32>
    %152 = vector.shape_cast %142 : vector<8x32xf32> to vector<1x8x32xf32>
    %153 = vector.shape_cast %144 : vector<8x32xf32> to vector<1x8x32xf32>
    %154 = tpu.concatenate %145, %146, %147, %148, %149, %150, %151, %152, %153 in 0 : vector<1x8x32xf32>, vector<1x8x32xf32>, vector<1x8x32xf32>, vector<1x8x32xf32>, vector<1x8x32xf32>, vector<1x8x32xf32>, vector<1x8x32xf32>, vector<1x8x32xf32>, vector<1x8x32xf32> -> vector<9x8x32xf32>
    %155 = vector.shape_cast %154 : vector<9x8x32xf32> to vector<72x32xf32>
    %156 = vector.extract_strided_slice %8 {offsets = [1, 1, 0, 0], sizes = [1, 1, 8, 32], strides = [1, 1, 1, 1]} : vector<8x8x8x32xf32> to vector<1x1x8x32xf32>
    %157 = vector.shape_cast %156 : vector<1x1x8x32xf32> to vector<8x32xf32>
    %158 = vector.extract_strided_slice %8 {offsets = [1, 3, 0, 0], sizes = [1, 1, 8, 32], strides = [1, 1, 1, 1]} : vector<8x8x8x32xf32> to vector<1x1x8x32xf32>
    %159 = vector.shape_cast %158 : vector<1x1x8x32xf32> to vector<8x32xf32>
    %160 = vector.extract_strided_slice %8 {offsets = [1, 5, 0, 0], sizes = [1, 1, 8, 32], strides = [1, 1, 1, 1]} : vector<8x8x8x32xf32> to vector<1x1x8x32xf32>
    %161 = vector.shape_cast %160 : vector<1x1x8x32xf32> to vector<8x32xf32>
    %162 = vector.extract_strided_slice %8 {offsets = [3, 1, 0, 0], sizes = [1, 1, 8, 32], strides = [1, 1, 1, 1]} : vector<8x8x8x32xf32> to vector<1x1x8x32xf32>
    %163 = vector.shape_cast %162 : vector<1x1x8x32xf32> to vector<8x32xf32>
    %164 = vector.extract_strided_slice %8 {offsets = [3, 3, 0, 0], sizes = [1, 1, 8, 32], strides = [1, 1, 1, 1]} : vector<8x8x8x32xf32> to vector<1x1x8x32xf32>
    %165 = vector.shape_cast %164 : vector<1x1x8x32xf32> to vector<8x32xf32>
    %166 = vector.extract_strided_slice %8 {offsets = [3, 5, 0, 0], sizes = [1, 1, 8, 32], strides = [1, 1, 1, 1]} : vector<8x8x8x32xf32> to vector<1x1x8x32xf32>
    %167 = vector.shape_cast %166 : vector<1x1x8x32xf32> to vector<8x32xf32>
    %168 = vector.extract_strided_slice %8 {offsets = [5, 1, 0, 0], sizes = [1, 1, 8, 32], strides = [1, 1, 1, 1]} : vector<8x8x8x32xf32> to vector<1x1x8x32xf32>
    %169 = vector.shape_cast %168 : vector<1x1x8x32xf32> to vector<8x32xf32>
    %170 = vector.extract_strided_slice %8 {offsets = [5, 3, 0, 0], sizes = [1, 1, 8, 32], strides = [1, 1, 1, 1]} : vector<8x8x8x32xf32> to vector<1x1x8x32xf32>
    %171 = vector.shape_cast %170 : vector<1x1x8x32xf32> to vector<8x32xf32>
    %172 = vector.extract_strided_slice %8 {offsets = [5, 5, 0, 0], sizes = [1, 1, 8, 32], strides = [1, 1, 1, 1]} : vector<8x8x8x32xf32> to vector<1x1x8x32xf32>
    %173 = vector.shape_cast %172 : vector<1x1x8x32xf32> to vector<8x32xf32>
    %174 = vector.shape_cast %157 : vector<8x32xf32> to vector<1x8x32xf32>
    %175 = vector.shape_cast %159 : vector<8x32xf32> to vector<1x8x32xf32>
    %176 = vector.shape_cast %161 : vector<8x32xf32> to vector<1x8x32xf32>
    %177 = vector.shape_cast %163 : vector<8x32xf32> to vector<1x8x32xf32>
    %178 = vector.shape_cast %165 : vector<8x32xf32> to vector<1x8x32xf32>
    %179 = vector.shape_cast %167 : vector<8x32xf32> to vector<1x8x32xf32>
    %180 = vector.shape_cast %169 : vector<8x32xf32> to vector<1x8x32xf32>
    %181 = vector.shape_cast %171 : vector<8x32xf32> to vector<1x8x32xf32>
    %182 = vector.shape_cast %173 : vector<8x32xf32> to vector<1x8x32xf32>
    %183 = tpu.concatenate %174, %175, %176, %177, %178, %179, %180, %181, %182 in 0 : vector<1x8x32xf32>, vector<1x8x32xf32>, vector<1x8x32xf32>, vector<1x8x32xf32>, vector<1x8x32xf32>, vector<1x8x32xf32>, vector<1x8x32xf32>, vector<1x8x32xf32>, vector<1x8x32xf32> -> vector<9x8x32xf32>
    %184 = vector.shape_cast %183 : vector<9x8x32xf32> to vector<72x32xf32>
    %185 = vector.extract_strided_slice %8 {offsets = [1, 2, 0, 0], sizes = [1, 1, 8, 32], strides = [1, 1, 1, 1]} : vector<8x8x8x32xf32> to vector<1x1x8x32xf32>
    %186 = vector.shape_cast %185 : vector<1x1x8x32xf32> to vector<8x32xf32>
    %187 = vector.extract_strided_slice %8 {offsets = [1, 4, 0, 0], sizes = [1, 1, 8, 32], strides = [1, 1, 1, 1]} : vector<8x8x8x32xf32> to vector<1x1x8x32xf32>
    %188 = vector.shape_cast %187 : vector<1x1x8x32xf32> to vector<8x32xf32>
    %189 = vector.extract_strided_slice %8 {offsets = [1, 6, 0, 0], sizes = [1, 1, 8, 32], strides = [1, 1, 1, 1]} : vector<8x8x8x32xf32> to vector<1x1x8x32xf32>
    %190 = vector.shape_cast %189 : vector<1x1x8x32xf32> to vector<8x32xf32>
    %191 = vector.extract_strided_slice %8 {offsets = [3, 2, 0, 0], sizes = [1, 1, 8, 32], strides = [1, 1, 1, 1]} : vector<8x8x8x32xf32> to vector<1x1x8x32xf32>
    %192 = vector.shape_cast %191 : vector<1x1x8x32xf32> to vector<8x32xf32>
    %193 = vector.extract_strided_slice %8 {offsets = [3, 4, 0, 0], sizes = [1, 1, 8, 32], strides = [1, 1, 1, 1]} : vector<8x8x8x32xf32> to vector<1x1x8x32xf32>
    %194 = vector.shape_cast %193 : vector<1x1x8x32xf32> to vector<8x32xf32>
    %195 = vector.extract_strided_slice %8 {offsets = [3, 6, 0, 0], sizes = [1, 1, 8, 32], strides = [1, 1, 1, 1]} : vector<8x8x8x32xf32> to vector<1x1x8x32xf32>
    %196 = vector.shape_cast %195 : vector<1x1x8x32xf32> to vector<8x32xf32>
    %197 = vector.extract_strided_slice %8 {offsets = [5, 2, 0, 0], sizes = [1, 1, 8, 32], strides = [1, 1, 1, 1]} : vector<8x8x8x32xf32> to vector<1x1x8x32xf32>
    %198 = vector.shape_cast %197 : vector<1x1x8x32xf32> to vector<8x32xf32>
    %199 = vector.extract_strided_slice %8 {offsets = [5, 4, 0, 0], sizes = [1, 1, 8, 32], strides = [1, 1, 1, 1]} : vector<8x8x8x32xf32> to vector<1x1x8x32xf32>
    %200 = vector.shape_cast %199 : vector<1x1x8x32xf32> to vector<8x32xf32>
    %201 = vector.extract_strided_slice %8 {offsets = [5, 6, 0, 0], sizes = [1, 1, 8, 32], strides = [1, 1, 1, 1]} : vector<8x8x8x32xf32> to vector<1x1x8x32xf32>
    %202 = vector.shape_cast %201 : vector<1x1x8x32xf32> to vector<8x32xf32>
    %203 = vector.shape_cast %186 : vector<8x32xf32> to vector<1x8x32xf32>
    %204 = vector.shape_cast %188 : vector<8x32xf32> to vector<1x8x32xf32>
    %205 = vector.shape_cast %190 : vector<8x32xf32> to vector<1x8x32xf32>
    %206 = vector.shape_cast %192 : vector<8x32xf32> to vector<1x8x32xf32>
    %207 = vector.shape_cast %194 : vector<8x32xf32> to vector<1x8x32xf32>
    %208 = vector.shape_cast %196 : vector<8x32xf32> to vector<1x8x32xf32>
    %209 = vector.shape_cast %198 : vector<8x32xf32> to vector<1x8x32xf32>
    %210 = vector.shape_cast %200 : vector<8x32xf32> to vector<1x8x32xf32>
    %211 = vector.shape_cast %202 : vector<8x32xf32> to vector<1x8x32xf32>
    %212 = tpu.concatenate %203, %204, %205, %206, %207, %208, %209, %210, %211 in 0 : vector<1x8x32xf32>, vector<1x8x32xf32>, vector<1x8x32xf32>, vector<1x8x32xf32>, vector<1x8x32xf32>, vector<1x8x32xf32>, vector<1x8x32xf32>, vector<1x8x32xf32>, vector<1x8x32xf32> -> vector<9x8x32xf32>
    %213 = vector.shape_cast %212 : vector<9x8x32xf32> to vector<72x32xf32>
    %214 = vector.extract_strided_slice %8 {offsets = [1, 3, 0, 0], sizes = [1, 1, 8, 32], strides = [1, 1, 1, 1]} : vector<8x8x8x32xf32> to vector<1x1x8x32xf32>
    %215 = vector.shape_cast %214 : vector<1x1x8x32xf32> to vector<8x32xf32>
    %216 = vector.extract_strided_slice %8 {offsets = [1, 5, 0, 0], sizes = [1, 1, 8, 32], strides = [1, 1, 1, 1]} : vector<8x8x8x32xf32> to vector<1x1x8x32xf32>
    %217 = vector.shape_cast %216 : vector<1x1x8x32xf32> to vector<8x32xf32>
    %218 = vector.extract_strided_slice %8 {offsets = [1, 7, 0, 0], sizes = [1, 1, 8, 32], strides = [1, 1, 1, 1]} : vector<8x8x8x32xf32> to vector<1x1x8x32xf32>
    %219 = vector.shape_cast %218 : vector<1x1x8x32xf32> to vector<8x32xf32>
    %220 = vector.extract_strided_slice %8 {offsets = [3, 3, 0, 0], sizes = [1, 1, 8, 32], strides = [1, 1, 1, 1]} : vector<8x8x8x32xf32> to vector<1x1x8x32xf32>
    %221 = vector.shape_cast %220 : vector<1x1x8x32xf32> to vector<8x32xf32>
    %222 = vector.extract_strided_slice %8 {offsets = [3, 5, 0, 0], sizes = [1, 1, 8, 32], strides = [1, 1, 1, 1]} : vector<8x8x8x32xf32> to vector<1x1x8x32xf32>
    %223 = vector.shape_cast %222 : vector<1x1x8x32xf32> to vector<8x32xf32>
    %224 = vector.extract_strided_slice %8 {offsets = [3, 7, 0, 0], sizes = [1, 1, 8, 32], strides = [1, 1, 1, 1]} : vector<8x8x8x32xf32> to vector<1x1x8x32xf32>
    %225 = vector.shape_cast %224 : vector<1x1x8x32xf32> to vector<8x32xf32>
    %226 = vector.extract_strided_slice %8 {offsets = [5, 3, 0, 0], sizes = [1, 1, 8, 32], strides = [1, 1, 1, 1]} : vector<8x8x8x32xf32> to vector<1x1x8x32xf32>
    %227 = vector.shape_cast %226 : vector<1x1x8x32xf32> to vector<8x32xf32>
    %228 = vector.extract_strided_slice %8 {offsets = [5, 5, 0, 0], sizes = [1, 1, 8, 32], strides = [1, 1, 1, 1]} : vector<8x8x8x32xf32> to vector<1x1x8x32xf32>
    %229 = vector.shape_cast %228 : vector<1x1x8x32xf32> to vector<8x32xf32>
    %230 = vector.extract_strided_slice %8 {offsets = [5, 7, 0, 0], sizes = [1, 1, 8, 32], strides = [1, 1, 1, 1]} : vector<8x8x8x32xf32> to vector<1x1x8x32xf32>
    %231 = vector.shape_cast %230 : vector<1x1x8x32xf32> to vector<8x32xf32>
    %232 = vector.shape_cast %215 : vector<8x32xf32> to vector<1x8x32xf32>
    %233 = vector.shape_cast %217 : vector<8x32xf32> to vector<1x8x32xf32>
    %234 = vector.shape_cast %219 : vector<8x32xf32> to vector<1x8x32xf32>
    %235 = vector.shape_cast %221 : vector<8x32xf32> to vector<1x8x32xf32>
    %236 = vector.shape_cast %223 : vector<8x32xf32> to vector<1x8x32xf32>
    %237 = vector.shape_cast %225 : vector<8x32xf32> to vector<1x8x32xf32>
    %238 = vector.shape_cast %227 : vector<8x32xf32> to vector<1x8x32xf32>
    %239 = vector.shape_cast %229 : vector<8x32xf32> to vector<1x8x32xf32>
    %240 = vector.shape_cast %231 : vector<8x32xf32> to vector<1x8x32xf32>
    %241 = tpu.concatenate %232, %233, %234, %235, %236, %237, %238, %239, %240 in 0 : vector<1x8x32xf32>, vector<1x8x32xf32>, vector<1x8x32xf32>, vector<1x8x32xf32>, vector<1x8x32xf32>, vector<1x8x32xf32>, vector<1x8x32xf32>, vector<1x8x32xf32>, vector<1x8x32xf32> -> vector<9x8x32xf32>
    %242 = vector.shape_cast %241 : vector<9x8x32xf32> to vector<72x32xf32>
    %243 = vector.extract_strided_slice %8 {offsets = [2, 0, 0, 0], sizes = [1, 1, 8, 32], strides = [1, 1, 1, 1]} : vector<8x8x8x32xf32> to vector<1x1x8x32xf32>
    %244 = vector.shape_cast %243 : vector<1x1x8x32xf32> to vector<8x32xf32>
    %245 = vector.extract_strided_slice %8 {offsets = [2, 2, 0, 0], sizes = [1, 1, 8, 32], strides = [1, 1, 1, 1]} : vector<8x8x8x32xf32> to vector<1x1x8x32xf32>
    %246 = vector.shape_cast %245 : vector<1x1x8x32xf32> to vector<8x32xf32>
    %247 = vector.extract_strided_slice %8 {offsets = [2, 4, 0, 0], sizes = [1, 1, 8, 32], strides = [1, 1, 1, 1]} : vector<8x8x8x32xf32> to vector<1x1x8x32xf32>
    %248 = vector.shape_cast %247 : vector<1x1x8x32xf32> to vector<8x32xf32>
    %249 = vector.extract_strided_slice %8 {offsets = [4, 0, 0, 0], sizes = [1, 1, 8, 32], strides = [1, 1, 1, 1]} : vector<8x8x8x32xf32> to vector<1x1x8x32xf32>
    %250 = vector.shape_cast %249 : vector<1x1x8x32xf32> to vector<8x32xf32>
    %251 = vector.extract_strided_slice %8 {offsets = [4, 2, 0, 0], sizes = [1, 1, 8, 32], strides = [1, 1, 1, 1]} : vector<8x8x8x32xf32> to vector<1x1x8x32xf32>
    %252 = vector.shape_cast %251 : vector<1x1x8x32xf32> to vector<8x32xf32>
    %253 = vector.extract_strided_slice %8 {offsets = [4, 4, 0, 0], sizes = [1, 1, 8, 32], strides = [1, 1, 1, 1]} : vector<8x8x8x32xf32> to vector<1x1x8x32xf32>
    %254 = vector.shape_cast %253 : vector<1x1x8x32xf32> to vector<8x32xf32>
    %255 = vector.extract_strided_slice %8 {offsets = [6, 0, 0, 0], sizes = [1, 1, 8, 32], strides = [1, 1, 1, 1]} : vector<8x8x8x32xf32> to vector<1x1x8x32xf32>
    %256 = vector.shape_cast %255 : vector<1x1x8x32xf32> to vector<8x32xf32>
    %257 = vector.extract_strided_slice %8 {offsets = [6, 2, 0, 0], sizes = [1, 1, 8, 32], strides = [1, 1, 1, 1]} : vector<8x8x8x32xf32> to vector<1x1x8x32xf32>
    %258 = vector.shape_cast %257 : vector<1x1x8x32xf32> to vector<8x32xf32>
    %259 = vector.extract_strided_slice %8 {offsets = [6, 4, 0, 0], sizes = [1, 1, 8, 32], strides = [1, 1, 1, 1]} : vector<8x8x8x32xf32> to vector<1x1x8x32xf32>
    %260 = vector.shape_cast %259 : vector<1x1x8x32xf32> to vector<8x32xf32>
    %261 = vector.shape_cast %244 : vector<8x32xf32> to vector<1x8x32xf32>
    %262 = vector.shape_cast %246 : vector<8x32xf32> to vector<1x8x32xf32>
    %263 = vector.shape_cast %248 : vector<8x32xf32> to vector<1x8x32xf32>
    %264 = vector.shape_cast %250 : vector<8x32xf32> to vector<1x8x32xf32>
    %265 = vector.shape_cast %252 : vector<8x32xf32> to vector<1x8x32xf32>
    %266 = vector.shape_cast %254 : vector<8x32xf32> to vector<1x8x32xf32>
    %267 = vector.shape_cast %256 : vector<8x32xf32> to vector<1x8x32xf32>
    %268 = vector.shape_cast %258 : vector<8x32xf32> to vector<1x8x32xf32>
    %269 = vector.shape_cast %260 : vector<8x32xf32> to vector<1x8x32xf32>
    %270 = tpu.concatenate %261, %262, %263, %264, %265, %266, %267, %268, %269 in 0 : vector<1x8x32xf32>, vector<1x8x32xf32>, vector<1x8x32xf32>, vector<1x8x32xf32>, vector<1x8x32xf32>, vector<1x8x32xf32>, vector<1x8x32xf32>, vector<1x8x32xf32>, vector<1x8x32xf32> -> vector<9x8x32xf32>
    %271 = vector.shape_cast %270 : vector<9x8x32xf32> to vector<72x32xf32>
    %272 = vector.extract_strided_slice %8 {offsets = [2, 1, 0, 0], sizes = [1, 1, 8, 32], strides = [1, 1, 1, 1]} : vector<8x8x8x32xf32> to vector<1x1x8x32xf32>
    %273 = vector.shape_cast %272 : vector<1x1x8x32xf32> to vector<8x32xf32>
    %274 = vector.extract_strided_slice %8 {offsets = [2, 3, 0, 0], sizes = [1, 1, 8, 32], strides = [1, 1, 1, 1]} : vector<8x8x8x32xf32> to vector<1x1x8x32xf32>
    %275 = vector.shape_cast %274 : vector<1x1x8x32xf32> to vector<8x32xf32>
    %276 = vector.extract_strided_slice %8 {offsets = [2, 5, 0, 0], sizes = [1, 1, 8, 32], strides = [1, 1, 1, 1]} : vector<8x8x8x32xf32> to vector<1x1x8x32xf32>
    %277 = vector.shape_cast %276 : vector<1x1x8x32xf32> to vector<8x32xf32>
    %278 = vector.extract_strided_slice %8 {offsets = [4, 1, 0, 0], sizes = [1, 1, 8, 32], strides = [1, 1, 1, 1]} : vector<8x8x8x32xf32> to vector<1x1x8x32xf32>
    %279 = vector.shape_cast %278 : vector<1x1x8x32xf32> to vector<8x32xf32>
    %280 = vector.extract_strided_slice %8 {offsets = [4, 3, 0, 0], sizes = [1, 1, 8, 32], strides = [1, 1, 1, 1]} : vector<8x8x8x32xf32> to vector<1x1x8x32xf32>
    %281 = vector.shape_cast %280 : vector<1x1x8x32xf32> to vector<8x32xf32>
    %282 = vector.extract_strided_slice %8 {offsets = [4, 5, 0, 0], sizes = [1, 1, 8, 32], strides = [1, 1, 1, 1]} : vector<8x8x8x32xf32> to vector<1x1x8x32xf32>
    %283 = vector.shape_cast %282 : vector<1x1x8x32xf32> to vector<8x32xf32>
    %284 = vector.extract_strided_slice %8 {offsets = [6, 1, 0, 0], sizes = [1, 1, 8, 32], strides = [1, 1, 1, 1]} : vector<8x8x8x32xf32> to vector<1x1x8x32xf32>
    %285 = vector.shape_cast %284 : vector<1x1x8x32xf32> to vector<8x32xf32>
    %286 = vector.extract_strided_slice %8 {offsets = [6, 3, 0, 0], sizes = [1, 1, 8, 32], strides = [1, 1, 1, 1]} : vector<8x8x8x32xf32> to vector<1x1x8x32xf32>
    %287 = vector.shape_cast %286 : vector<1x1x8x32xf32> to vector<8x32xf32>
    %288 = vector.extract_strided_slice %8 {offsets = [6, 5, 0, 0], sizes = [1, 1, 8, 32], strides = [1, 1, 1, 1]} : vector<8x8x8x32xf32> to vector<1x1x8x32xf32>
    %289 = vector.shape_cast %288 : vector<1x1x8x32xf32> to vector<8x32xf32>
    %290 = vector.shape_cast %273 : vector<8x32xf32> to vector<1x8x32xf32>
    %291 = vector.shape_cast %275 : vector<8x32xf32> to vector<1x8x32xf32>
    %292 = vector.shape_cast %277 : vector<8x32xf32> to vector<1x8x32xf32>
    %293 = vector.shape_cast %279 : vector<8x32xf32> to vector<1x8x32xf32>
    %294 = vector.shape_cast %281 : vector<8x32xf32> to vector<1x8x32xf32>
    %295 = vector.shape_cast %283 : vector<8x32xf32> to vector<1x8x32xf32>
    %296 = vector.shape_cast %285 : vector<8x32xf32> to vector<1x8x32xf32>
    %297 = vector.shape_cast %287 : vector<8x32xf32> to vector<1x8x32xf32>
    %298 = vector.shape_cast %289 : vector<8x32xf32> to vector<1x8x32xf32>
    %299 = tpu.concatenate %290, %291, %292, %293, %294, %295, %296, %297, %298 in 0 : vector<1x8x32xf32>, vector<1x8x32xf32>, vector<1x8x32xf32>, vector<1x8x32xf32>, vector<1x8x32xf32>, vector<1x8x32xf32>, vector<1x8x32xf32>, vector<1x8x32xf32>, vector<1x8x32xf32> -> vector<9x8x32xf32>
    %300 = vector.shape_cast %299 : vector<9x8x32xf32> to vector<72x32xf32>
    %301 = vector.extract_strided_slice %8 {offsets = [2, 2, 0, 0], sizes = [1, 1, 8, 32], strides = [1, 1, 1, 1]} : vector<8x8x8x32xf32> to vector<1x1x8x32xf32>
    %302 = vector.shape_cast %301 : vector<1x1x8x32xf32> to vector<8x32xf32>
    %303 = vector.extract_strided_slice %8 {offsets = [2, 4, 0, 0], sizes = [1, 1, 8, 32], strides = [1, 1, 1, 1]} : vector<8x8x8x32xf32> to vector<1x1x8x32xf32>
    %304 = vector.shape_cast %303 : vector<1x1x8x32xf32> to vector<8x32xf32>
    %305 = vector.extract_strided_slice %8 {offsets = [2, 6, 0, 0], sizes = [1, 1, 8, 32], strides = [1, 1, 1, 1]} : vector<8x8x8x32xf32> to vector<1x1x8x32xf32>
    %306 = vector.shape_cast %305 : vector<1x1x8x32xf32> to vector<8x32xf32>
    %307 = vector.extract_strided_slice %8 {offsets = [4, 2, 0, 0], sizes = [1, 1, 8, 32], strides = [1, 1, 1, 1]} : vector<8x8x8x32xf32> to vector<1x1x8x32xf32>
    %308 = vector.shape_cast %307 : vector<1x1x8x32xf32> to vector<8x32xf32>
    %309 = vector.extract_strided_slice %8 {offsets = [4, 4, 0, 0], sizes = [1, 1, 8, 32], strides = [1, 1, 1, 1]} : vector<8x8x8x32xf32> to vector<1x1x8x32xf32>
    %310 = vector.shape_cast %309 : vector<1x1x8x32xf32> to vector<8x32xf32>
    %311 = vector.extract_strided_slice %8 {offsets = [4, 6, 0, 0], sizes = [1, 1, 8, 32], strides = [1, 1, 1, 1]} : vector<8x8x8x32xf32> to vector<1x1x8x32xf32>
    %312 = vector.shape_cast %311 : vector<1x1x8x32xf32> to vector<8x32xf32>
    %313 = vector.extract_strided_slice %8 {offsets = [6, 2, 0, 0], sizes = [1, 1, 8, 32], strides = [1, 1, 1, 1]} : vector<8x8x8x32xf32> to vector<1x1x8x32xf32>
    %314 = vector.shape_cast %313 : vector<1x1x8x32xf32> to vector<8x32xf32>
    %315 = vector.extract_strided_slice %8 {offsets = [6, 4, 0, 0], sizes = [1, 1, 8, 32], strides = [1, 1, 1, 1]} : vector<8x8x8x32xf32> to vector<1x1x8x32xf32>
    %316 = vector.shape_cast %315 : vector<1x1x8x32xf32> to vector<8x32xf32>
    %317 = vector.extract_strided_slice %8 {offsets = [6, 6, 0, 0], sizes = [1, 1, 8, 32], strides = [1, 1, 1, 1]} : vector<8x8x8x32xf32> to vector<1x1x8x32xf32>
    %318 = vector.shape_cast %317 : vector<1x1x8x32xf32> to vector<8x32xf32>
    %319 = vector.shape_cast %302 : vector<8x32xf32> to vector<1x8x32xf32>
    %320 = vector.shape_cast %304 : vector<8x32xf32> to vector<1x8x32xf32>
    %321 = vector.shape_cast %306 : vector<8x32xf32> to vector<1x8x32xf32>
    %322 = vector.shape_cast %308 : vector<8x32xf32> to vector<1x8x32xf32>
    %323 = vector.shape_cast %310 : vector<8x32xf32> to vector<1x8x32xf32>
    %324 = vector.shape_cast %312 : vector<8x32xf32> to vector<1x8x32xf32>
    %325 = vector.shape_cast %314 : vector<8x32xf32> to vector<1x8x32xf32>
    %326 = vector.shape_cast %316 : vector<8x32xf32> to vector<1x8x32xf32>
    %327 = vector.shape_cast %318 : vector<8x32xf32> to vector<1x8x32xf32>
    %328 = tpu.concatenate %319, %320, %321, %322, %323, %324, %325, %326, %327 in 0 : vector<1x8x32xf32>, vector<1x8x32xf32>, vector<1x8x32xf32>, vector<1x8x32xf32>, vector<1x8x32xf32>, vector<1x8x32xf32>, vector<1x8x32xf32>, vector<1x8x32xf32>, vector<1x8x32xf32> -> vector<9x8x32xf32>
    %329 = vector.shape_cast %328 : vector<9x8x32xf32> to vector<72x32xf32>
    %330 = vector.extract_strided_slice %8 {offsets = [2, 3, 0, 0], sizes = [1, 1, 8, 32], strides = [1, 1, 1, 1]} : vector<8x8x8x32xf32> to vector<1x1x8x32xf32>
    %331 = vector.shape_cast %330 : vector<1x1x8x32xf32> to vector<8x32xf32>
    %332 = vector.extract_strided_slice %8 {offsets = [2, 5, 0, 0], sizes = [1, 1, 8, 32], strides = [1, 1, 1, 1]} : vector<8x8x8x32xf32> to vector<1x1x8x32xf32>
    %333 = vector.shape_cast %332 : vector<1x1x8x32xf32> to vector<8x32xf32>
    %334 = vector.extract_strided_slice %8 {offsets = [2, 7, 0, 0], sizes = [1, 1, 8, 32], strides = [1, 1, 1, 1]} : vector<8x8x8x32xf32> to vector<1x1x8x32xf32>
    %335 = vector.shape_cast %334 : vector<1x1x8x32xf32> to vector<8x32xf32>
    %336 = vector.extract_strided_slice %8 {offsets = [4, 3, 0, 0], sizes = [1, 1, 8, 32], strides = [1, 1, 1, 1]} : vector<8x8x8x32xf32> to vector<1x1x8x32xf32>
    %337 = vector.shape_cast %336 : vector<1x1x8x32xf32> to vector<8x32xf32>
    %338 = vector.extract_strided_slice %8 {offsets = [4, 5, 0, 0], sizes = [1, 1, 8, 32], strides = [1, 1, 1, 1]} : vector<8x8x8x32xf32> to vector<1x1x8x32xf32>
    %339 = vector.shape_cast %338 : vector<1x1x8x32xf32> to vector<8x32xf32>
    %340 = vector.extract_strided_slice %8 {offsets = [4, 7, 0, 0], sizes = [1, 1, 8, 32], strides = [1, 1, 1, 1]} : vector<8x8x8x32xf32> to vector<1x1x8x32xf32>
    %341 = vector.shape_cast %340 : vector<1x1x8x32xf32> to vector<8x32xf32>
    %342 = vector.extract_strided_slice %8 {offsets = [6, 3, 0, 0], sizes = [1, 1, 8, 32], strides = [1, 1, 1, 1]} : vector<8x8x8x32xf32> to vector<1x1x8x32xf32>
    %343 = vector.shape_cast %342 : vector<1x1x8x32xf32> to vector<8x32xf32>
    %344 = vector.extract_strided_slice %8 {offsets = [6, 5, 0, 0], sizes = [1, 1, 8, 32], strides = [1, 1, 1, 1]} : vector<8x8x8x32xf32> to vector<1x1x8x32xf32>
    %345 = vector.shape_cast %344 : vector<1x1x8x32xf32> to vector<8x32xf32>
    %346 = vector.extract_strided_slice %8 {offsets = [6, 7, 0, 0], sizes = [1, 1, 8, 32], strides = [1, 1, 1, 1]} : vector<8x8x8x32xf32> to vector<1x1x8x32xf32>
    %347 = vector.shape_cast %346 : vector<1x1x8x32xf32> to vector<8x32xf32>
    %348 = vector.shape_cast %331 : vector<8x32xf32> to vector<1x8x32xf32>
    %349 = vector.shape_cast %333 : vector<8x32xf32> to vector<1x8x32xf32>
    %350 = vector.shape_cast %335 : vector<8x32xf32> to vector<1x8x32xf32>
    %351 = vector.shape_cast %337 : vector<8x32xf32> to vector<1x8x32xf32>
    %352 = vector.shape_cast %339 : vector<8x32xf32> to vector<1x8x32xf32>
    %353 = vector.shape_cast %341 : vector<8x32xf32> to vector<1x8x32xf32>
    %354 = vector.shape_cast %343 : vector<8x32xf32> to vector<1x8x32xf32>
    %355 = vector.shape_cast %345 : vector<8x32xf32> to vector<1x8x32xf32>
    %356 = vector.shape_cast %347 : vector<8x32xf32> to vector<1x8x32xf32>
    %357 = tpu.concatenate %348, %349, %350, %351, %352, %353, %354, %355, %356 in 0 : vector<1x8x32xf32>, vector<1x8x32xf32>, vector<1x8x32xf32>, vector<1x8x32xf32>, vector<1x8x32xf32>, vector<1x8x32xf32>, vector<1x8x32xf32>, vector<1x8x32xf32>, vector<1x8x32xf32> -> vector<9x8x32xf32>
    %358 = vector.shape_cast %357 : vector<9x8x32xf32> to vector<72x32xf32>
    %359 = vector.extract_strided_slice %8 {offsets = [3, 0, 0, 0], sizes = [1, 1, 8, 32], strides = [1, 1, 1, 1]} : vector<8x8x8x32xf32> to vector<1x1x8x32xf32>
    %360 = vector.shape_cast %359 : vector<1x1x8x32xf32> to vector<8x32xf32>
    %361 = vector.extract_strided_slice %8 {offsets = [3, 2, 0, 0], sizes = [1, 1, 8, 32], strides = [1, 1, 1, 1]} : vector<8x8x8x32xf32> to vector<1x1x8x32xf32>
    %362 = vector.shape_cast %361 : vector<1x1x8x32xf32> to vector<8x32xf32>
    %363 = vector.extract_strided_slice %8 {offsets = [3, 4, 0, 0], sizes = [1, 1, 8, 32], strides = [1, 1, 1, 1]} : vector<8x8x8x32xf32> to vector<1x1x8x32xf32>
    %364 = vector.shape_cast %363 : vector<1x1x8x32xf32> to vector<8x32xf32>
    %365 = vector.extract_strided_slice %8 {offsets = [5, 0, 0, 0], sizes = [1, 1, 8, 32], strides = [1, 1, 1, 1]} : vector<8x8x8x32xf32> to vector<1x1x8x32xf32>
    %366 = vector.shape_cast %365 : vector<1x1x8x32xf32> to vector<8x32xf32>
    %367 = vector.extract_strided_slice %8 {offsets = [5, 2, 0, 0], sizes = [1, 1, 8, 32], strides = [1, 1, 1, 1]} : vector<8x8x8x32xf32> to vector<1x1x8x32xf32>
    %368 = vector.shape_cast %367 : vector<1x1x8x32xf32> to vector<8x32xf32>
    %369 = vector.extract_strided_slice %8 {offsets = [5, 4, 0, 0], sizes = [1, 1, 8, 32], strides = [1, 1, 1, 1]} : vector<8x8x8x32xf32> to vector<1x1x8x32xf32>
    %370 = vector.shape_cast %369 : vector<1x1x8x32xf32> to vector<8x32xf32>
    %371 = vector.extract_strided_slice %8 {offsets = [7, 0, 0, 0], sizes = [1, 1, 8, 32], strides = [1, 1, 1, 1]} : vector<8x8x8x32xf32> to vector<1x1x8x32xf32>
    %372 = vector.shape_cast %371 : vector<1x1x8x32xf32> to vector<8x32xf32>
    %373 = vector.extract_strided_slice %8 {offsets = [7, 2, 0, 0], sizes = [1, 1, 8, 32], strides = [1, 1, 1, 1]} : vector<8x8x8x32xf32> to vector<1x1x8x32xf32>
    %374 = vector.shape_cast %373 : vector<1x1x8x32xf32> to vector<8x32xf32>
    %375 = vector.extract_strided_slice %8 {offsets = [7, 4, 0, 0], sizes = [1, 1, 8, 32], strides = [1, 1, 1, 1]} : vector<8x8x8x32xf32> to vector<1x1x8x32xf32>
    %376 = vector.shape_cast %375 : vector<1x1x8x32xf32> to vector<8x32xf32>
    %377 = vector.shape_cast %360 : vector<8x32xf32> to vector<1x8x32xf32>
    %378 = vector.shape_cast %362 : vector<8x32xf32> to vector<1x8x32xf32>
    %379 = vector.shape_cast %364 : vector<8x32xf32> to vector<1x8x32xf32>
    %380 = vector.shape_cast %366 : vector<8x32xf32> to vector<1x8x32xf32>
    %381 = vector.shape_cast %368 : vector<8x32xf32> to vector<1x8x32xf32>
    %382 = vector.shape_cast %370 : vector<8x32xf32> to vector<1x8x32xf32>
    %383 = vector.shape_cast %372 : vector<8x32xf32> to vector<1x8x32xf32>
    %384 = vector.shape_cast %374 : vector<8x32xf32> to vector<1x8x32xf32>
    %385 = vector.shape_cast %376 : vector<8x32xf32> to vector<1x8x32xf32>
    %386 = tpu.concatenate %377, %378, %379, %380, %381, %382, %383, %384, %385 in 0 : vector<1x8x32xf32>, vector<1x8x32xf32>, vector<1x8x32xf32>, vector<1x8x32xf32>, vector<1x8x32xf32>, vector<1x8x32xf32>, vector<1x8x32xf32>, vector<1x8x32xf32>, vector<1x8x32xf32> -> vector<9x8x32xf32>
    %387 = vector.shape_cast %386 : vector<9x8x32xf32> to vector<72x32xf32>
    %388 = vector.extract_strided_slice %8 {offsets = [3, 1, 0, 0], sizes = [1, 1, 8, 32], strides = [1, 1, 1, 1]} : vector<8x8x8x32xf32> to vector<1x1x8x32xf32>
    %389 = vector.shape_cast %388 : vector<1x1x8x32xf32> to vector<8x32xf32>
    %390 = vector.extract_strided_slice %8 {offsets = [3, 3, 0, 0], sizes = [1, 1, 8, 32], strides = [1, 1, 1, 1]} : vector<8x8x8x32xf32> to vector<1x1x8x32xf32>
    %391 = vector.shape_cast %390 : vector<1x1x8x32xf32> to vector<8x32xf32>
    %392 = vector.extract_strided_slice %8 {offsets = [3, 5, 0, 0], sizes = [1, 1, 8, 32], strides = [1, 1, 1, 1]} : vector<8x8x8x32xf32> to vector<1x1x8x32xf32>
    %393 = vector.shape_cast %392 : vector<1x1x8x32xf32> to vector<8x32xf32>
    %394 = vector.extract_strided_slice %8 {offsets = [5, 1, 0, 0], sizes = [1, 1, 8, 32], strides = [1, 1, 1, 1]} : vector<8x8x8x32xf32> to vector<1x1x8x32xf32>
    %395 = vector.shape_cast %394 : vector<1x1x8x32xf32> to vector<8x32xf32>
    %396 = vector.extract_strided_slice %8 {offsets = [5, 3, 0, 0], sizes = [1, 1, 8, 32], strides = [1, 1, 1, 1]} : vector<8x8x8x32xf32> to vector<1x1x8x32xf32>
    %397 = vector.shape_cast %396 : vector<1x1x8x32xf32> to vector<8x32xf32>
    %398 = vector.extract_strided_slice %8 {offsets = [5, 5, 0, 0], sizes = [1, 1, 8, 32], strides = [1, 1, 1, 1]} : vector<8x8x8x32xf32> to vector<1x1x8x32xf32>
    %399 = vector.shape_cast %398 : vector<1x1x8x32xf32> to vector<8x32xf32>
    %400 = vector.extract_strided_slice %8 {offsets = [7, 1, 0, 0], sizes = [1, 1, 8, 32], strides = [1, 1, 1, 1]} : vector<8x8x8x32xf32> to vector<1x1x8x32xf32>
    %401 = vector.shape_cast %400 : vector<1x1x8x32xf32> to vector<8x32xf32>
    %402 = vector.extract_strided_slice %8 {offsets = [7, 3, 0, 0], sizes = [1, 1, 8, 32], strides = [1, 1, 1, 1]} : vector<8x8x8x32xf32> to vector<1x1x8x32xf32>
    %403 = vector.shape_cast %402 : vector<1x1x8x32xf32> to vector<8x32xf32>
    %404 = vector.extract_strided_slice %8 {offsets = [7, 5, 0, 0], sizes = [1, 1, 8, 32], strides = [1, 1, 1, 1]} : vector<8x8x8x32xf32> to vector<1x1x8x32xf32>
    %405 = vector.shape_cast %404 : vector<1x1x8x32xf32> to vector<8x32xf32>
    %406 = vector.shape_cast %389 : vector<8x32xf32> to vector<1x8x32xf32>
    %407 = vector.shape_cast %391 : vector<8x32xf32> to vector<1x8x32xf32>
    %408 = vector.shape_cast %393 : vector<8x32xf32> to vector<1x8x32xf32>
    %409 = vector.shape_cast %395 : vector<8x32xf32> to vector<1x8x32xf32>
    %410 = vector.shape_cast %397 : vector<8x32xf32> to vector<1x8x32xf32>
    %411 = vector.shape_cast %399 : vector<8x32xf32> to vector<1x8x32xf32>
    %412 = vector.shape_cast %401 : vector<8x32xf32> to vector<1x8x32xf32>
    %413 = vector.shape_cast %403 : vector<8x32xf32> to vector<1x8x32xf32>
    %414 = vector.shape_cast %405 : vector<8x32xf32> to vector<1x8x32xf32>
    %415 = tpu.concatenate %406, %407, %408, %409, %410, %411, %412, %413, %414 in 0 : vector<1x8x32xf32>, vector<1x8x32xf32>, vector<1x8x32xf32>, vector<1x8x32xf32>, vector<1x8x32xf32>, vector<1x8x32xf32>, vector<1x8x32xf32>, vector<1x8x32xf32>, vector<1x8x32xf32> -> vector<9x8x32xf32>
    %416 = vector.shape_cast %415 : vector<9x8x32xf32> to vector<72x32xf32>
    %417 = vector.extract_strided_slice %8 {offsets = [3, 2, 0, 0], sizes = [1, 1, 8, 32], strides = [1, 1, 1, 1]} : vector<8x8x8x32xf32> to vector<1x1x8x32xf32>
    %418 = vector.shape_cast %417 : vector<1x1x8x32xf32> to vector<8x32xf32>
    %419 = vector.extract_strided_slice %8 {offsets = [3, 4, 0, 0], sizes = [1, 1, 8, 32], strides = [1, 1, 1, 1]} : vector<8x8x8x32xf32> to vector<1x1x8x32xf32>
    %420 = vector.shape_cast %419 : vector<1x1x8x32xf32> to vector<8x32xf32>
    %421 = vector.extract_strided_slice %8 {offsets = [3, 6, 0, 0], sizes = [1, 1, 8, 32], strides = [1, 1, 1, 1]} : vector<8x8x8x32xf32> to vector<1x1x8x32xf32>
    %422 = vector.shape_cast %421 : vector<1x1x8x32xf32> to vector<8x32xf32>
    %423 = vector.extract_strided_slice %8 {offsets = [5, 2, 0, 0], sizes = [1, 1, 8, 32], strides = [1, 1, 1, 1]} : vector<8x8x8x32xf32> to vector<1x1x8x32xf32>
    %424 = vector.shape_cast %423 : vector<1x1x8x32xf32> to vector<8x32xf32>
    %425 = vector.extract_strided_slice %8 {offsets = [5, 4, 0, 0], sizes = [1, 1, 8, 32], strides = [1, 1, 1, 1]} : vector<8x8x8x32xf32> to vector<1x1x8x32xf32>
    %426 = vector.shape_cast %425 : vector<1x1x8x32xf32> to vector<8x32xf32>
    %427 = vector.extract_strided_slice %8 {offsets = [5, 6, 0, 0], sizes = [1, 1, 8, 32], strides = [1, 1, 1, 1]} : vector<8x8x8x32xf32> to vector<1x1x8x32xf32>
    %428 = vector.shape_cast %427 : vector<1x1x8x32xf32> to vector<8x32xf32>
    %429 = vector.extract_strided_slice %8 {offsets = [7, 2, 0, 0], sizes = [1, 1, 8, 32], strides = [1, 1, 1, 1]} : vector<8x8x8x32xf32> to vector<1x1x8x32xf32>
    %430 = vector.shape_cast %429 : vector<1x1x8x32xf32> to vector<8x32xf32>
    %431 = vector.extract_strided_slice %8 {offsets = [7, 4, 0, 0], sizes = [1, 1, 8, 32], strides = [1, 1, 1, 1]} : vector<8x8x8x32xf32> to vector<1x1x8x32xf32>
    %432 = vector.shape_cast %431 : vector<1x1x8x32xf32> to vector<8x32xf32>
    %433 = vector.extract_strided_slice %8 {offsets = [7, 6, 0, 0], sizes = [1, 1, 8, 32], strides = [1, 1, 1, 1]} : vector<8x8x8x32xf32> to vector<1x1x8x32xf32>
    %434 = vector.shape_cast %433 : vector<1x1x8x32xf32> to vector<8x32xf32>
    %435 = vector.shape_cast %418 : vector<8x32xf32> to vector<1x8x32xf32>
    %436 = vector.shape_cast %420 : vector<8x32xf32> to vector<1x8x32xf32>
    %437 = vector.shape_cast %422 : vector<8x32xf32> to vector<1x8x32xf32>
    %438 = vector.shape_cast %424 : vector<8x32xf32> to vector<1x8x32xf32>
    %439 = vector.shape_cast %426 : vector<8x32xf32> to vector<1x8x32xf32>
    %440 = vector.shape_cast %428 : vector<8x32xf32> to vector<1x8x32xf32>
    %441 = vector.shape_cast %430 : vector<8x32xf32> to vector<1x8x32xf32>
    %442 = vector.shape_cast %432 : vector<8x32xf32> to vector<1x8x32xf32>
    %443 = vector.shape_cast %434 : vector<8x32xf32> to vector<1x8x32xf32>
    %444 = tpu.concatenate %435, %436, %437, %438, %439, %440, %441, %442, %443 in 0 : vector<1x8x32xf32>, vector<1x8x32xf32>, vector<1x8x32xf32>, vector<1x8x32xf32>, vector<1x8x32xf32>, vector<1x8x32xf32>, vector<1x8x32xf32>, vector<1x8x32xf32>, vector<1x8x32xf32> -> vector<9x8x32xf32>
    %445 = vector.shape_cast %444 : vector<9x8x32xf32> to vector<72x32xf32>
    %446 = vector.extract_strided_slice %8 {offsets = [3, 3, 0, 0], sizes = [1, 1, 8, 32], strides = [1, 1, 1, 1]} : vector<8x8x8x32xf32> to vector<1x1x8x32xf32>
    %447 = vector.shape_cast %446 : vector<1x1x8x32xf32> to vector<8x32xf32>
    %448 = vector.extract_strided_slice %8 {offsets = [3, 5, 0, 0], sizes = [1, 1, 8, 32], strides = [1, 1, 1, 1]} : vector<8x8x8x32xf32> to vector<1x1x8x32xf32>
    %449 = vector.shape_cast %448 : vector<1x1x8x32xf32> to vector<8x32xf32>
    %450 = vector.extract_strided_slice %8 {offsets = [3, 7, 0, 0], sizes = [1, 1, 8, 32], strides = [1, 1, 1, 1]} : vector<8x8x8x32xf32> to vector<1x1x8x32xf32>
    %451 = vector.shape_cast %450 : vector<1x1x8x32xf32> to vector<8x32xf32>
    %452 = vector.extract_strided_slice %8 {offsets = [5, 3, 0, 0], sizes = [1, 1, 8, 32], strides = [1, 1, 1, 1]} : vector<8x8x8x32xf32> to vector<1x1x8x32xf32>
    %453 = vector.shape_cast %452 : vector<1x1x8x32xf32> to vector<8x32xf32>
    %454 = vector.extract_strided_slice %8 {offsets = [5, 5, 0, 0], sizes = [1, 1, 8, 32], strides = [1, 1, 1, 1]} : vector<8x8x8x32xf32> to vector<1x1x8x32xf32>
    %455 = vector.shape_cast %454 : vector<1x1x8x32xf32> to vector<8x32xf32>
    %456 = vector.extract_strided_slice %8 {offsets = [5, 7, 0, 0], sizes = [1, 1, 8, 32], strides = [1, 1, 1, 1]} : vector<8x8x8x32xf32> to vector<1x1x8x32xf32>
    %457 = vector.shape_cast %456 : vector<1x1x8x32xf32> to vector<8x32xf32>
    %458 = vector.extract_strided_slice %8 {offsets = [7, 3, 0, 0], sizes = [1, 1, 8, 32], strides = [1, 1, 1, 1]} : vector<8x8x8x32xf32> to vector<1x1x8x32xf32>
    %459 = vector.shape_cast %458 : vector<1x1x8x32xf32> to vector<8x32xf32>
    %460 = vector.extract_strided_slice %8 {offsets = [7, 5, 0, 0], sizes = [1, 1, 8, 32], strides = [1, 1, 1, 1]} : vector<8x8x8x32xf32> to vector<1x1x8x32xf32>
    %461 = vector.shape_cast %460 : vector<1x1x8x32xf32> to vector<8x32xf32>
    %462 = vector.extract_strided_slice %8 {offsets = [7, 7, 0, 0], sizes = [1, 1, 8, 32], strides = [1, 1, 1, 1]} : vector<8x8x8x32xf32> to vector<1x1x8x32xf32>
    %463 = vector.shape_cast %462 : vector<1x1x8x32xf32> to vector<8x32xf32>
    %464 = vector.shape_cast %447 : vector<8x32xf32> to vector<1x8x32xf32>
    %465 = vector.shape_cast %449 : vector<8x32xf32> to vector<1x8x32xf32>
    %466 = vector.shape_cast %451 : vector<8x32xf32> to vector<1x8x32xf32>
    %467 = vector.shape_cast %453 : vector<8x32xf32> to vector<1x8x32xf32>
    %468 = vector.shape_cast %455 : vector<8x32xf32> to vector<1x8x32xf32>
    %469 = vector.shape_cast %457 : vector<8x32xf32> to vector<1x8x32xf32>
    %470 = vector.shape_cast %459 : vector<8x32xf32> to vector<1x8x32xf32>
    %471 = vector.shape_cast %461 : vector<8x32xf32> to vector<1x8x32xf32>
    %472 = vector.shape_cast %463 : vector<8x32xf32> to vector<1x8x32xf32>
    %473 = tpu.concatenate %464, %465, %466, %467, %468, %469, %470, %471, %472 in 0 : vector<1x8x32xf32>, vector<1x8x32xf32>, vector<1x8x32xf32>, vector<1x8x32xf32>, vector<1x8x32xf32>, vector<1x8x32xf32>, vector<1x8x32xf32>, vector<1x8x32xf32>, vector<1x8x32xf32> -> vector<9x8x32xf32>
    %474 = vector.shape_cast %473 : vector<9x8x32xf32> to vector<72x32xf32>
    %475 = vector.shape_cast %39 : vector<72x32xf32> to vector<1x72x32xf32>
    %476 = vector.shape_cast %68 : vector<72x32xf32> to vector<1x72x32xf32>
    %477 = vector.shape_cast %97 : vector<72x32xf32> to vector<1x72x32xf32>
    %478 = vector.shape_cast %126 : vector<72x32xf32> to vector<1x72x32xf32>
    %479 = vector.shape_cast %155 : vector<72x32xf32> to vector<1x72x32xf32>
    %480 = vector.shape_cast %184 : vector<72x32xf32> to vector<1x72x32xf32>
    %481 = vector.shape_cast %213 : vector<72x32xf32> to vector<1x72x32xf32>
    %482 = vector.shape_cast %242 : vector<72x32xf32> to vector<1x72x32xf32>
    %483 = vector.shape_cast %271 : vector<72x32xf32> to vector<1x72x32xf32>
    %484 = vector.shape_cast %300 : vector<72x32xf32> to vector<1x72x32xf32>
    %485 = vector.shape_cast %329 : vector<72x32xf32> to vector<1x72x32xf32>
    %486 = vector.shape_cast %358 : vector<72x32xf32> to vector<1x72x32xf32>
    %487 = vector.shape_cast %387 : vector<72x32xf32> to vector<1x72x32xf32>
    %488 = vector.shape_cast %416 : vector<72x32xf32> to vector<1x72x32xf32>
    %489 = vector.shape_cast %445 : vector<72x32xf32> to vector<1x72x32xf32>
    %490 = vector.shape_cast %474 : vector<72x32xf32> to vector<1x72x32xf32>
    %491 = tpu.concatenate %475, %476, %477, %478, %479, %480, %481, %482, %483, %484, %485, %486, %487, %488, %489, %490 in 0 : vector<1x72x32xf32>, vector<1x72x32xf32>, vector<1x72x32xf32>, vector<1x72x32xf32>, vector<1x72x32xf32>, vector<1x72x32xf32>, vector<1x72x32xf32>, vector<1x72x32xf32>, vector<1x72x32xf32>, vector<1x72x32xf32>, vector<1x72x32xf32>, vector<1x72x32xf32>, vector<1x72x32xf32>, vector<1x72x32xf32>, vector<1x72x32xf32>, vector<1x72x32xf32> -> vector<16x72x32xf32>
    "tpu.trace_start"() <{level = 10 : i32, message = "tmk,tkn->tmn"}> : () -> ()
    %cst_11 = arith.constant dense<0.000000e+00> : vector<16x72x64xf32>
    %492 = tpu.matmul %491, %9, %cst_11 {dimension_numbers = #tpu.dot_dimension_numbers<[2], [1], [1], [2], [0, 0, 0, 1, 1, 2], [0], [0]>} : vector<16x72x32xf32>, vector<16x32x64xf32>, vector<16x72x64xf32> -> vector<16x72x64xf32>
    "tpu.trace_stop"() : () -> ()
    %cst_12 = arith.constant dense<0.000000e+00> : vector<72x64xf32>
    %493 = vector.multi_reduction <add>, %492, %cst_12 [0] : vector<16x72x64xf32> to vector<72x64xf32>
    %494 = vector.broadcast %10 : vector<1x64xf32> to vector<72x64xf32>
    %495 = arith.addf %493, %494 : vector<72x64xf32>
    %cst_13 = arith.constant 0.000000e+00 : f32
    %496 = vector.broadcast %cst_13 : f32 to vector<72x64xf32>
    %497 = arith.maximumf %495, %496 : vector<72x64xf32>
    %498 = vector.shape_cast %497 : vector<72x64xf32> to vector<3x3x8x64xf32>
    %c0_14 = arith.constant 0 : index
    %c0_15 = arith.constant 0 : index
    %c0_16 = arith.constant 0 : index
    %499 = vector.load %arg6[%c0_14, %c0_15, %c0_16] : memref<9x64x64xf32, #tpu.memory_space<vmem>>, vector<9x64x64xf32>
    %c0_17 = arith.constant 0 : index
    %c0_18 = arith.constant 0 : index
    %500 = vector.load %arg7[%c0_17, %c0_18] : memref<1x64xf32, #tpu.memory_space<vmem>>, vector<1x64xf32>
    %501 = vector.extract_strided_slice %498 {offsets = [0, 0, 0, 0], sizes = [1, 1, 8, 64], strides = [1, 1, 1, 1]} : vector<3x3x8x64xf32> to vector<1x1x8x64xf32>
    %502 = vector.shape_cast %501 : vector<1x1x8x64xf32> to vector<8x64xf32>
    %503 = vector.shape_cast %502 : vector<8x64xf32> to vector<1x8x64xf32>
    %504 = vector.shape_cast %503 : vector<1x8x64xf32> to vector<8x64xf32>
    %505 = vector.extract_strided_slice %498 {offsets = [0, 1, 0, 0], sizes = [1, 1, 8, 64], strides = [1, 1, 1, 1]} : vector<3x3x8x64xf32> to vector<1x1x8x64xf32>
    %506 = vector.shape_cast %505 : vector<1x1x8x64xf32> to vector<8x64xf32>
    %507 = vector.shape_cast %506 : vector<8x64xf32> to vector<1x8x64xf32>
    %508 = vector.shape_cast %507 : vector<1x8x64xf32> to vector<8x64xf32>
    %509 = vector.extract_strided_slice %498 {offsets = [0, 2, 0, 0], sizes = [1, 1, 8, 64], strides = [1, 1, 1, 1]} : vector<3x3x8x64xf32> to vector<1x1x8x64xf32>
    %510 = vector.shape_cast %509 : vector<1x1x8x64xf32> to vector<8x64xf32>
    %511 = vector.shape_cast %510 : vector<8x64xf32> to vector<1x8x64xf32>
    %512 = vector.shape_cast %511 : vector<1x8x64xf32> to vector<8x64xf32>
    %513 = vector.extract_strided_slice %498 {offsets = [1, 0, 0, 0], sizes = [1, 1, 8, 64], strides = [1, 1, 1, 1]} : vector<3x3x8x64xf32> to vector<1x1x8x64xf32>
    %514 = vector.shape_cast %513 : vector<1x1x8x64xf32> to vector<8x64xf32>
    %515 = vector.shape_cast %514 : vector<8x64xf32> to vector<1x8x64xf32>
    %516 = vector.shape_cast %515 : vector<1x8x64xf32> to vector<8x64xf32>
    %517 = vector.extract_strided_slice %498 {offsets = [1, 1, 0, 0], sizes = [1, 1, 8, 64], strides = [1, 1, 1, 1]} : vector<3x3x8x64xf32> to vector<1x1x8x64xf32>
    %518 = vector.shape_cast %517 : vector<1x1x8x64xf32> to vector<8x64xf32>
    %519 = vector.shape_cast %518 : vector<8x64xf32> to vector<1x8x64xf32>
    %520 = vector.shape_cast %519 : vector<1x8x64xf32> to vector<8x64xf32>
    %521 = vector.extract_strided_slice %498 {offsets = [1, 2, 0, 0], sizes = [1, 1, 8, 64], strides = [1, 1, 1, 1]} : vector<3x3x8x64xf32> to vector<1x1x8x64xf32>
    %522 = vector.shape_cast %521 : vector<1x1x8x64xf32> to vector<8x64xf32>
    %523 = vector.shape_cast %522 : vector<8x64xf32> to vector<1x8x64xf32>
    %524 = vector.shape_cast %523 : vector<1x8x64xf32> to vector<8x64xf32>
    %525 = vector.extract_strided_slice %498 {offsets = [2, 0, 0, 0], sizes = [1, 1, 8, 64], strides = [1, 1, 1, 1]} : vector<3x3x8x64xf32> to vector<1x1x8x64xf32>
    %526 = vector.shape_cast %525 : vector<1x1x8x64xf32> to vector<8x64xf32>
    %527 = vector.shape_cast %526 : vector<8x64xf32> to vector<1x8x64xf32>
    %528 = vector.shape_cast %527 : vector<1x8x64xf32> to vector<8x64xf32>
    %529 = vector.extract_strided_slice %498 {offsets = [2, 1, 0, 0], sizes = [1, 1, 8, 64], strides = [1, 1, 1, 1]} : vector<3x3x8x64xf32> to vector<1x1x8x64xf32>
    %530 = vector.shape_cast %529 : vector<1x1x8x64xf32> to vector<8x64xf32>
    %531 = vector.shape_cast %530 : vector<8x64xf32> to vector<1x8x64xf32>
    %532 = vector.shape_cast %531 : vector<1x8x64xf32> to vector<8x64xf32>
    %533 = vector.extract_strided_slice %498 {offsets = [2, 2, 0, 0], sizes = [1, 1, 8, 64], strides = [1, 1, 1, 1]} : vector<3x3x8x64xf32> to vector<1x1x8x64xf32>
    %534 = vector.shape_cast %533 : vector<1x1x8x64xf32> to vector<8x64xf32>
    %535 = vector.shape_cast %534 : vector<8x64xf32> to vector<1x8x64xf32>
    %536 = vector.shape_cast %535 : vector<1x8x64xf32> to vector<8x64xf32>
    %537 = vector.shape_cast %504 : vector<8x64xf32> to vector<1x8x64xf32>
    %538 = vector.shape_cast %508 : vector<8x64xf32> to vector<1x8x64xf32>
    %539 = vector.shape_cast %512 : vector<8x64xf32> to vector<1x8x64xf32>
    %540 = vector.shape_cast %516 : vector<8x64xf32> to vector<1x8x64xf32>
    %541 = vector.shape_cast %520 : vector<8x64xf32> to vector<1x8x64xf32>
    %542 = vector.shape_cast %524 : vector<8x64xf32> to vector<1x8x64xf32>
    %543 = vector.shape_cast %528 : vector<8x64xf32> to vector<1x8x64xf32>
    %544 = vector.shape_cast %532 : vector<8x64xf32> to vector<1x8x64xf32>
    %545 = vector.shape_cast %536 : vector<8x64xf32> to vector<1x8x64xf32>
    %546 = tpu.concatenate %537, %538, %539, %540, %541, %542, %543, %544, %545 in 0 : vector<1x8x64xf32>, vector<1x8x64xf32>, vector<1x8x64xf32>, vector<1x8x64xf32>, vector<1x8x64xf32>, vector<1x8x64xf32>, vector<1x8x64xf32>, vector<1x8x64xf32>, vector<1x8x64xf32> -> vector<9x8x64xf32>
    "tpu.trace_start"() <{level = 10 : i32, message = "tmk,tkn->tmn"}> : () -> ()
    %cst_19 = arith.constant dense<0.000000e+00> : vector<9x8x64xf32>
    %547 = tpu.matmul %546, %499, %cst_19 {dimension_numbers = #tpu.dot_dimension_numbers<[2], [1], [1], [2], [0, 0, 0, 1, 1, 2], [0], [0]>} : vector<9x8x64xf32>, vector<9x64x64xf32>, vector<9x8x64xf32> -> vector<9x8x64xf32>
    "tpu.trace_stop"() : () -> ()
    %cst_20 = arith.constant dense<0.000000e+00> : vector<8x64xf32>
    %548 = vector.multi_reduction <add>, %547, %cst_20 [0] : vector<9x8x64xf32> to vector<8x64xf32>
    %549 = vector.broadcast %500 : vector<1x64xf32> to vector<8x64xf32>
    %550 = arith.addf %548, %549 : vector<8x64xf32>
    %cst_21 = arith.constant 0.000000e+00 : f32
    %551 = vector.broadcast %cst_21 : f32 to vector<8x64xf32>
    %552 = arith.maximumf %550, %551 : vector<8x64xf32>
    %c0_22 = arith.constant 0 : index
    %c0_23 = arith.constant 0 : index
    %553 = vector.load %arg8[%c0_22, %c0_23] : memref<64x512xf32, #tpu.memory_space<vmem>>, vector<64x512xf32>
    %cst_24 = arith.constant dense<0.000000e+00> : vector<8x512xf32>
    %554 = tpu.matmul %552, %553, %cst_24 {dimension_numbers = #tpu.dot_dimension_numbers<[1], [0], [0], [1], [0, 0, 1, 1], [], []>} : vector<8x64xf32>, vector<64x512xf32>, vector<8x512xf32> -> vector<8x512xf32>
    %c0_25 = arith.constant 0 : index
    %c0_26 = arith.constant 0 : index
    %555 = vector.load %arg9[%c0_25, %c0_26] : memref<1x512xf32, #tpu.memory_space<vmem>>, vector<1x512xf32>
    %556 = vector.broadcast %555 : vector<1x512xf32> to vector<8x512xf32>
    %557 = arith.addf %554, %556 : vector<8x512xf32>
    %cst_27 = arith.constant 0.000000e+00 : f32
    %558 = vector.broadcast %cst_27 : f32 to vector<8x512xf32>
    %559 = arith.maximumf %557, %558 : vector<8x512xf32>
    %c0_28 = arith.constant 0 : index
    %c0_29 = arith.constant 0 : index
    %560 = vector.load %arg10[%c0_28, %c0_29] : memref<512x128xf32, #tpu.memory_space<vmem>>, vector<512x128xf32>
    %cst_30 = arith.constant dense<0.000000e+00> : vector<8x128xf32>
    %561 = tpu.matmul %559, %560, %cst_30 {dimension_numbers = #tpu.dot_dimension_numbers<[1], [0], [0], [1], [0, 0, 1, 1], [], []>} : vector<8x512xf32>, vector<512x128xf32>, vector<8x128xf32> -> vector<8x128xf32>
    %c0_31 = arith.constant 0 : index
    %c0_32 = arith.constant 0 : index
    %562 = vector.load %arg11[%c0_31, %c0_32] : memref<1x128xf32, #tpu.memory_space<vmem>>, vector<1x128xf32>
    %563 = vector.broadcast %562 : vector<1x128xf32> to vector<8x128xf32>
    %564 = arith.addf %561, %563 : vector<8x128xf32>
    %c0_33 = arith.constant 0 : index
    %c0_34 = arith.constant 0 : index
    %565 = vector.load %arg12[%c0_33, %c0_34] : memref<8x128xf32, #tpu.memory_space<vmem>>, vector<8x128xf32>
    tpu.vector_store %arg12[%c0_33, %c0_34], %564 {strides = array<i32>} : memref<8x128xf32, #tpu.memory_space<vmem>>, vector<8x128xf32>,
    return
  }
  func.func @transform_0(%arg0: i32) -> (i32, i32) {
    %c0_i32 = arith.constant 0 : i32
    %c0_i32_0 = arith.constant 0 : i32
    return %arg0, %c0_i32 : i32, i32
  }
  func.func @transform_1(%arg0: i32) -> (i32, i32) {
    %c0_i32 = arith.constant 0 : i32
    %c0_i32_0 = arith.constant 0 : i32
    %c0_i32_1 = arith.constant 0 : i32
    return %c0_i32, %c0_i32_0 : i32, i32
  }
  func.func @transform_2(%arg0: i32) -> (i32, i32) {
    %c0_i32 = arith.constant 0 : i32
    %c0_i32_0 = arith.constant 0 : i32
    %c0_i32_1 = arith.constant 0 : i32
    return %c0_i32, %c0_i32_0 : i32, i32
  }
  func.func @transform_3(%arg0: i32) -> (i32, i32, i32) {
    %c0_i32 = arith.constant 0 : i32
    %c0_i32_0 = arith.constant 0 : i32
    %c0_i32_1 = arith.constant 0 : i32
    %c0_i32_2 = arith.constant 0 : i32
    return %c0_i32, %c0_i32_0, %c0_i32_1 : i32, i32, i32
  }
  func.func @transform_4(%arg0: i32) -> (i32, i32) {
    %c0_i32 = arith.constant 0 : i32
    %c0_i32_0 = arith.constant 0 : i32
    %c0_i32_1 = arith.constant 0 : i32
    return %c0_i32, %c0_i32_0 : i32, i32
  }
  func.func @transform_5(%arg0: i32) -> (i32, i32, i32) {
    %c0_i32 = arith.constant 0 : i32
    %c0_i32_0 = arith.constant 0 : i32
    %c0_i32_1 = arith.constant 0 : i32
    %c0_i32_2 = arith.constant 0 : i32
    return %c0_i32, %c0_i32_0, %c0_i32_1 : i32, i32, i32
  }
  func.func @transform_6(%arg0: i32) -> (i32, i32) {
    %c0_i32 = arith.constant 0 : i32
    %c0_i32_0 = arith.constant 0 : i32
    %c0_i32_1 = arith.constant 0 : i32
    return %c0_i32, %c0_i32_0 : i32, i32
  }
  func.func @transform_7(%arg0: i32) -> (i32, i32) {
    %c0_i32 = arith.constant 0 : i32
    %c0_i32_0 = arith.constant 0 : i32
    %c0_i32_1 = arith.constant 0 : i32
    return %c0_i32, %c0_i32_0 : i32, i32
  }
  func.func @transform_8(%arg0: i32) -> (i32, i32) {
    %c0_i32 = arith.constant 0 : i32
    %c0_i32_0 = arith.constant 0 : i32
    %c0_i32_1 = arith.constant 0 : i32
    return %c0_i32, %c0_i32_0 : i32, i32
  }
  func.func @transform_9(%arg0: i32) -> (i32, i32) {
    %c0_i32 = arith.constant 0 : i32
    %c0_i32_0 = arith.constant 0 : i32
    %c0_i32_1 = arith.constant 0 : i32
    return %c0_i32, %c0_i32_0 : i32, i32
  }
  func.func @transform_10(%arg0: i32) -> (i32, i32) {
    %c0_i32 = arith.constant 0 : i32
    %c0_i32_0 = arith.constant 0 : i32
    %c0_i32_1 = arith.constant 0 : i32
    return %c0_i32, %c0_i32_0 : i32, i32
  }
  func.func @transform_11(%arg0: i32) -> (i32, i32) {
    %c0_i32 = arith.constant 0 : i32
    %c0_i32_0 = arith.constant 0 : i32
    return %arg0, %c0_i32 : i32, i32
  }
}

</mosaic_0001>

<bundles_post_ra>
// kernel: qlearner_forward.1
= control target key start
LH: loop header
LB: loop body
LE: loop exit
PB: predicated region body
PF: predicated region fallthrough
CT: control target
= control target key end

     0   :  { %s6243_s17 = smov 0   ;;  %s8731_s0 = inlined_call_operand.vmem [shape: f32[1024,256], index: 0, kind: input, shape index: {}]   ;;  %s8732_s1 = inlined_call_operand.vmem [shape: f32[256,32], index: 1, kind: input, shape index: {}]   ;;  %s8733_s2 = inlined_call_operand.vmem [shape: f32[1,32], index: 2, kind: input, shape index: {}]   ;;  %s8734_s3 = inlined_call_operand.vmem [shape: f32[16,32,64], index: 3, kind: input, shape index: {}]   ;;  %s8735_s4 = inlined_call_operand.vmem [shape: f32[1,64], index: 4, kind: input, shape index: {}]   ;;  %s8736_s5 = inlined_call_operand.vmem [shape: f32[9,64,64], index: 5, kind: input, shape index: {}]   ;;  %s8737_s6 = inlined_call_operand.vmem [shape: f32[1,64], index: 6, kind: input, shape index: {}]   ;;  %s8738_s7 = inlined_call_operand.vmem [shape: f32[64,512], index: 7, kind: input, shape index: {}]   ;;  %s8739_s8 = inlined_call_operand.vmem [shape: f32[1,512], index: 8, kind: input, shape index: {}]   ;;  %s8740_s9 = inlined_call_operand.vmem [shape: f32[512,128], index: 9, kind: input, shape index: {}]   ;;  %s8741_s10 = inlined_call_operand.vmem [shape: f32[1,128], index: 10, kind: input, shape index: {}]   ;;  %s8742_s11 = inlined_call_operand.vmem [shape: f32[16,128], index: 11, kind: output, shape index: {}]  }
   0x1 LB: > { %s6249_s18 = sadd.s32 4294967295, %s6178_s17   ;;  %p4555_p0 = scmp.ge.s32.totalorder %s6178_s17, 1  ;;  %s6178_s17 = sphi %s6243_s17, %s21_s17  }
   0x2   : > { %p339_p1 = scmp.lt.s32.totalorder %s6178_s17, 3 }
   0x4   : > { %p340_p2 = pnand %p4555_p0, %p339_p1 }
   0x5   : > { %v518_v0 = vld [vmem:[%s8732_s1] sm:$0xff] (!%p340_p2)  ;;  %v519_v1 = vld [vmem:[%s8732_s1 + $0x8] sm:$0xff] (!%p340_p2)  ;;  %v520_v2 = vld [vmem:[%s8732_s1 + $0x10] sm:$0xff] (!%p340_p2)  ;;  %s4556_s25 = sshll.u32 (!%p340_p2), %s6249_s18, 6  ;;  %v8751_v3 = vmov (!%p340_p2), 0.0|0.0   ;;  %vm6181_vm0 = vmmov (!%p340_p2), 0  }
   0x6   : > { %343 = sbr.rel (%p340_p2) target bundleno = 1739 (0x6cb), region = 64  ;;  %5812 = vmatprep.subr.bf16.mxu0 (!%p340_p2), %v8751_v3  ;;  %v5813_v4 = vpack.c.bf16 (!%p340_p2), %v519_v1, %v518_v0  ;;  %v521_v5 = vld [vmem:[%s8732_s1 + $0x18] sm:$0xff] (!%p340_p2)  ;;  %p380_p3 = scmp.lt.s32.totalorder (!%p340_p2), %s4556_s25, 127  ;;  %5860 = vmatprep.subr.bf16.mxu1 (!%p340_p2), %v8751_v3  ;;  %v522_v7 = vld [vmem:[%s8732_s1 + $0x20] sm:$0xff] (!%p340_p2)  ;;  %v523_v8 = vld [vmem:[%s8732_s1 + $0x28] sm:$0xff] (!%p340_p2)  ;;  %vm1071_vm1 = vcmask (!%p340_p2), 261120  }
   0x7   : > { %v5816_v6 = vpack.c.bf16 (!%p340_p2), %v521_v5, %v520_v2  ;;  %v5819_v9 = vpack.c.bf16 (!%p340_p2), %v523_v8, %v522_v7  ;;  %v524_v10 = vld [vmem:[%s8732_s1 + $0x30] sm:$0xff] (!%p340_p2)  ;;  %v525_v11 = vld [vmem:[%s8732_s1 + $0x38] sm:$0xff] (!%p340_p2)  ;;  %v526_v14 = vld [vmem:[%s8732_s1 + $0x40] sm:$0xff] (!%p340_p2)  ;;  %vm3024_vm2 = vcmask (!%p340_p2), 523264   ;;  %p386_p4 = scmp.lt.s32.totalorder (!%p340_p2), %s6249_s18, 1 }
   0x8   : > { %5814 = vmatpush1.bf16.msra.mxu0 (!%p340_p2), %v5813_v4  ;;  %v5822_v13 = vpack.c.bf16 (!%p340_p2), %v525_v11, %v524_v10  ;;  %v527_v15 = vld [vmem:[%s8732_s1 + $0x48] sm:$0xff] (!%p340_p2)  ;;  %v528_v17 = vld [vmem:[%s8732_s1 + $0x50] sm:$0xff] (!%p340_p2)  ;;  %v529_v18 = vld [vmem:[%s8732_s1 + $0x58] sm:$0xff] (!%p340_p2) }
   0x9   : > { %5815 = vmatprep.subr.bf16.mxu0 (!%p340_p2), %v8751_v3  ;;  %v5825_v16 = vpack.c.bf16 (!%p340_p2), %v527_v15, %v526_v14  ;;  %v5828_v19 = vpack.c.bf16 (!%p340_p2), %v529_v18, %v528_v17  ;;  %v530_v20 = vld [vmem:[%s8732_s1 + $0x60] sm:$0xff] (!%p340_p2)  ;;  %v531_v21 = vld [vmem:[%s8732_s1 + $0x68] sm:$0xff] (!%p340_p2)  ;;  %v532_v23 = vld [vmem:[%s8732_s1 + $0x70] sm:$0xff] (!%p340_p2) }
   0xa   : > { %v5831_v22 = vpack.c.bf16 (!%p340_p2), %v531_v21, %v530_v20  ;;  %v533_v24 = vld [vmem:[%s8732_s1 + $0x78] sm:$0xff] (!%p340_p2)  ;;  %v534_v26 = vld [vmem:[%s8732_s1 + $0x80] sm:$0xff] (!%p340_p2)  ;;  %v535_v27 = vld [vmem:[%s8732_s1 + $0x88] sm:$0xff] (!%p340_p2) }
   0xb   : > { %v5834_v25 = vpack.c.bf16 (!%p340_p2), %v533_v24, %v532_v23  ;;  %v5837_v28 = vpack.c.bf16 (!%p340_p2), %v535_v27, %v534_v26  ;;  %v536_v29 = vld [vmem:[%s8732_s1 + $0x90] sm:$0xff] (!%p340_p2)  ;;  %v537_v30 = vld [vmem:[%s8732_s1 + $0x98] sm:$0xff] (!%p340_p2)  ;;  %v538_v32 = vld [vmem:[%s8732_s1 + $0xa0] sm:$0xff] (!%p340_p2) }
   0xc   : > { %5817 = vmatpush1.bf16.msra.mxu0 (!%p340_p2), %v5816_v6  ;;  %v5840_v31 = vpack.c.bf16 (!%p340_p2), %v537_v30, %v536_v29  ;;  %v539_v33 = vld [vmem:[%s8732_s1 + $0xa8] sm:$0xff] (!%p340_p2)  ;;  %v540_v35 = vld [vmem:[%s8732_s1 + $0xb0] sm:$0xff] (!%p340_p2)  ;;  %v541_v36 = vld [vmem:[%s8732_s1 + $0xb8] sm:$0xff] (!%p340_p2) }
   0xd   : > { %s8777_s25 = smov (!%p380_p3, %s4556_s25), 127  ;;  %5818 = vmatprep.subr.bf16.mxu0 %v8751_v3  ;;  %v5843_v34 = vpack.c.bf16 %v539_v33, %v538_v32  ;;  %v5846_v37 = vpack.c.bf16 %v541_v36, %v540_v35  ;;  %v542_v38 = vld [vmem:[%s8732_s1 + $0xc0] sm:$0xff]  ;;  %v543_v39 = vld [vmem:[%s8732_s1 + $0xc8] sm:$0xff]  ;;  %v544_v41 = vld [vmem:[%s8732_s1 + $0xd0] sm:$0xff]  ;;  %s8779_s18 = smov (!%p386_p4, %s6249_s18), 1 }
   0xe   : > { %s4721_s13 = sshll.u32 %s8777_s25, 4  ;;  %v5849_v40 = vpack.c.bf16 %v543_v39, %v542_v38  ;;  %v545_v42 = vld [vmem:[%s8732_s1 + $0xd8] sm:$0xff]  ;;  %v546_v44 = vld [vmem:[%s8732_s1 + $0xe0] sm:$0xff]  ;;  %v547_v45 = vld [vmem:[%s8732_s1 + $0xe8] sm:$0xff]  ;;  %v6182_v39 = vmov 0.0   ;;  %s4559_s24 = sshll.u32 %s8779_s18, 3 }
   0xf   : > { %s6278_s16 = scalar_lea.vmem %s8731_s0, %s4721_s13  ;;  %v5852_v43 = vpack.c.bf16 %v545_v42, %v544_v41  ;;  %v5855_v46 = vpack.c.bf16 %v547_v45, %v546_v44  ;;  %v548_v47 = vld [vmem:[%s8732_s1 + $0xf0] sm:$0xff]  ;;  %v549_v48 = vld [vmem:[%s8732_s1 + $0xf8] sm:$0xff]  ;;  %v1006_v29 = vld [vmem:[%s8734_s3] sm:$0xff]  ;;  %5089 = vmatprep.mubr.msk.f32.mxu1 %vm6181_vm0, %v6182_v39  ;;  %s389_s27 = scalar_lea.vmem %s8742_s11, %s4559_s24 }
  0x10   : > { %v391_v12 = vld [vmem:[%s6278_s16 + $0x8] sm:$0xff]  ;;  %5820 = vmatpush1.bf16.msra.mxu0 %v5819_v9  ;;  %v5858_v49 = vpack.c.bf16 %v549_v48, %v548_v47  ;;  %v390_v50 = vld [vmem:[%s6278_s16] sm:$0xff]  ;;  %v393_v51 = vld [vmem:[%s6278_s16 + $0x18] sm:$0xff] }
  0x11   : > { %621 = vmatprep.mubr.f32.mxu0 %v391_v12  ;;  %5821 = vmatprep.subr.bf16.mxu0 %v8751_v3  ;;  %v392_v52 = vld [vmem:[%s6278_s16 + $0x10] sm:$0xff]  ;;  %v395_v53 = vld [vmem:[%s6278_s16 + $0x28] sm:$0xff]  ;;  %v394_v54 = vld [vmem:[%s6278_s16 + $0x20] sm:$0xff] }
  0x12   : > { %v397_v55 = vld [vmem:[%s6278_s16 + $0x38] sm:$0xff]  ;;  %v396_v56 = vld [vmem:[%s6278_s16 + $0x30] sm:$0xff]  ;;  %v399_v57 = vld [vmem:[%s6278_s16 + $0x48] sm:$0xff] }
  0x13   : > { %v398_v58 = vld [vmem:[%s6278_s16 + $0x40] sm:$0xff]  ;;  %v401_v59 = vld [vmem:[%s6278_s16 + $0x58] sm:$0xff]  ;;  %v400_v60 = vld [vmem:[%s6278_s16 + $0x50] sm:$0xff] }
  0x14   : > { %5823 = vmatpush1.bf16.msra.mxu0 %v5822_v13  ;;  %v403_v61 = vld [vmem:[%s6278_s16 + $0x68] sm:$0xff]  ;;  %v402_v62 = vld [vmem:[%s6278_s16 + $0x60] sm:$0xff]  ;;  %v405_v63 = vld [vmem:[%s6278_s16 + $0x78] sm:$0xff] }
  0x15   : > { %5824 = vmatprep.subr.bf16.mxu0 %v8751_v3  ;;  %v404_v0 = vld [vmem:[%s6278_s16 + $0x70] sm:$0xff]  ;;  %v407_v1 = vld [vmem:[%s6278_s16 + $0x88] sm:$0xff]  ;;  %v406_v2 = vld [vmem:[%s6278_s16 + $0x80] sm:$0xff] }
  0x16   : > { %v409_v4 = vld [vmem:[%s6278_s16 + $0x98] sm:$0xff]  ;;  %v408_v5 = vld [vmem:[%s6278_s16 + $0x90] sm:$0xff]  ;;  %v411_v6 = vld [vmem:[%s6278_s16 + $0xa8] sm:$0xff] }
  0x17   : > { %v410_v7 = vld [vmem:[%s6278_s16 + $0xa0] sm:$0xff]  ;;  %v413_v8 = vld [vmem:[%s6278_s16 + $0xb8] sm:$0xff]  ;;  %v412_v9 = vld [vmem:[%s6278_s16 + $0xb0] sm:$0xff] }
  0x18   : > { %5826 = vmatpush1.bf16.msra.mxu0 %v5825_v16  ;;  %v415_v10 = vld [vmem:[%s6278_s16 + $0xc8] sm:$0xff]  ;;  %v414_v11 = vld [vmem:[%s6278_s16 + $0xc0] sm:$0xff]  ;;  %v417_v12 = vld [vmem:[%s6278_s16 + $0xd8] sm:$0xff] }
  0x19   : > { %5827 = vmatprep.subr.bf16.mxu0 %v8751_v3  ;;  %v416_v13 = vld [vmem:[%s6278_s16 + $0xd0] sm:$0xff]  ;;  %v419_v14 = vld [vmem:[%s6278_s16 + $0xe8] sm:$0xff]  ;;  %v418_v15 = vld [vmem:[%s6278_s16 + $0xe0] sm:$0xff] }
  0x1a   : > { %v421_v16 = vld [vmem:[%s6278_s16 + $0xf8] sm:$0xff]  ;;  %v420_v17 = vld [vmem:[%s6278_s16 + $0xf0] sm:$0xff]  ;;  %v423_v18 = vld [vmem:[%s6278_s16 + $0x108] sm:$0xff] }
  0x1b   : > { %v425_v20 = vld [vmem:[%s6278_s16 + $0x118] sm:$0xff]  ;;  %v424_v21 = vld [vmem:[%s6278_s16 + $0x110] sm:$0xff]  ;;  %v426_v23 = vld [vmem:[%s6278_s16 + $0x120] sm:$0xff] }
  0x1c   : > { %5829 = vmatpush1.bf16.msra.mxu0 %v5828_v19  ;;  %v422_v19 = vld [vmem:[%s6278_s16 + $0x100] sm:$0xff]  ;;  %v429_v24 = vld [vmem:[%s6278_s16 + $0x138] sm:$0xff]  ;;  %v431_v26 = vld [vmem:[%s6278_s16 + $0x148] sm:$0xff] }
  0x1d   : > { %5830 = vmatprep.subr.bf16.mxu0 %v8751_v3  ;;  %v430_v27 = vld [vmem:[%s6278_s16 + $0x140] sm:$0xff]  ;;  %v1007_v30 = vld [vmem:[%s8734_s3 + $0x8] sm:$0xff]  ;;  %v432_v32 = vld [vmem:[%s6278_s16 + $0x150] sm:$0xff] }
  0x1e   : > { %v435_v33 = vld [vmem:[%s6278_s16 + $0x168] sm:$0xff]  ;;  %v1009_v35 = vld [vmem:[%s8734_s3 + $0x18] sm:$0xff]  ;;  %v438_v42 = vld [vmem:[%s6278_s16 + $0x180] sm:$0xff] }
  0x1f   : > { %v437_v38 = vld [vmem:[%s6278_s16 + $0x178] sm:$0xff]  ;;  %v439_v41 = vld [vmem:[%s6278_s16 + $0x188] sm:$0xff]  ;;  %v440_v44 = vld [vmem:[%s6278_s16 + $0x190] sm:$0xff] }
  0x20   : > { %5832 = vmatpush1.bf16.msra.mxu0 %v5831_v22  ;;  %v427_v22 = vld [vmem:[%s6278_s16 + $0x128] sm:$0xff]  ;;  %v445_v47 = vld [vmem:[%s6278_s16 + $0x1b8] sm:$0xff]  ;;  %v444_v48 = vld [vmem:[%s6278_s16 + $0x1b0] sm:$0xff] }
  0x21   : > { %5833 = vmatprep.subr.bf16.mxu0 %v8751_v3  ;;  %v443_v45 = vld [vmem:[%s6278_s16 + $0x1a8] sm:$0xff] }
  0x24   : > { %5835 = vmatpush1.bf16.msra.mxu0 %v5834_v25  ;;  %v428_v25 = vld [vmem:[%s6278_s16 + $0x130] sm:$0xff] }
  0x25   : > { %5836 = vmatprep.subr.bf16.mxu0 %v8751_v3 }
  0x28   : > { %5838 = vmatpush1.bf16.msra.mxu0 %v5837_v28  ;;  %v433_v28 = vld [vmem:[%s6278_s16 + $0x158] sm:$0xff] }
  0x29   : > { %5839 = vmatprep.subr.bf16.mxu0 %v8751_v3 }
  0x2c   : > { %5841 = vmatpush1.bf16.msra.mxu0 %v5840_v31  ;;  %v5861_v31 = vpack.c.bf16 %v1007_v30, %v1006_v29  ;;  %v482_v29 = vld [vmem:[%s6278_s16 + $0x2e0] sm:$0xff]  ;;  %v485_v30 = vld [vmem:[%s6278_s16 + $0x2f8] sm:$0xff] }
  0x2d   : > { %5842 = vmatprep.subr.bf16.mxu0 %v8751_v3 }
  0x2e   : > { %5862 = vmatpush3.bf16.msra.mxu1 %v5861_v31  ;;  %v484_v31 = vld [vmem:[%s6278_s16 + $0x2f0] sm:$0xff] }
  0x2f   : > { %5863 = vmatprep.subr.bf16.mxu1 %v8751_v3 }
  0x30   : > { %5844 = vmatpush1.bf16.msra.mxu0 %v5843_v34  ;;  %v1008_v34 = vld [vmem:[%s8734_s3 + $0x10] sm:$0xff] }
  0x31   : > { %5845 = vmatprep.subr.bf16.mxu0 %v8751_v3  ;;  %v5864_v36 = vpack.c.bf16 %v1009_v35, %v1008_v34  ;;  %v489_v34 = vld [vmem:[%s6278_s16 + $0x318] sm:$0xff]  ;;  %v488_v35 = vld [vmem:[%s6278_s16 + $0x310] sm:$0xff] }
  0x33   : > { %5865 = vmatpush3.bf16.msra.mxu1 %v5864_v36  ;;  %v491_v36 = vld [vmem:[%s6278_s16 + $0x328] sm:$0xff] }
  0x34   : > { %5847 = vmatpush1.bf16.msra.mxu0 %v5846_v37  ;;  %v434_v37 = vld [vmem:[%s6278_s16 + $0x160] sm:$0xff]  ;;  %5866 = vmatprep.subr.bf16.mxu1 %v8751_v3 }
  0x35   : > { %5848 = vmatprep.subr.bf16.mxu0 %v8751_v3 }
  0x38   : > { %5850 = vmatpush1.bf16.msra.mxu0 %v5849_v40  ;;  %v436_v40 = vld [vmem:[%s6278_s16 + $0x170] sm:$0xff] }
  0x39   : > { %5851 = vmatprep.subr.bf16.mxu0 %v8751_v3 }
  0x3c   : > { %5853 = vmatpush1.bf16.msra.mxu0 %v5852_v43  ;;  %v441_v43 = vld [vmem:[%s6278_s16 + $0x198] sm:$0xff] }
  0x3d   : > { %5854 = vmatprep.subr.bf16.mxu0 %v8751_v3 }
  0x40   : > { %5856 = vmatpush1.bf16.msra.mxu0 %v5855_v46  ;;  %v442_v46 = vld [vmem:[%s6278_s16 + $0x1a0] sm:$0xff] }
  0x41   : > { %5857 = vmatprep.subr.bf16.mxu0 %v8751_v3 }
  0x44   : > { %5859 = vmatpush1.bf16.msra.mxu0 %v5858_v49  ;;  %v447_v49 = vld [vmem:[%s6278_s16 + $0x1c8] sm:$0xff] }
  0x45   : > { %5914 = vmatprep.subr.bf16.mxu0 %v8751_v3 }
  0x47   : > { %622 = vmatmul.mubr.f32.vlgmr.msra.gmra.mrb[0].mxu0 %v390_v50  ;;  %v446_v50 = vld [vmem:[%s6278_s16 + $0x1c0] sm:$0xff] }
  0x48   : > { %626 = vmatprep.mubr.f32.mxu0 %v393_v51  ;;  %v449_v51 = vld [vmem:[%s6278_s16 + $0x1d8] sm:$0xff] }
  0x4b   : > { %627 = vmatmul.mubr.f32.gmra.mrb[2].mxu0 %v392_v52  ;;  %v448_v52 = vld [vmem:[%s6278_s16 + $0x1d0] sm:$0xff] }
  0x4c   : > { %631 = vmatprep.mubr.f32.mxu0 %v395_v53  ;;  %v451_v53 = vld [vmem:[%s6278_s16 + $0x1e8] sm:$0xff] }
  0x4f   : > { %632 = vmatmul.mubr.f32.gmra.mrb[4].mxu0 %v394_v54  ;;  %v450_v54 = vld [vmem:[%s6278_s16 + $0x1e0] sm:$0xff] }
  0x50   : > { %636 = vmatprep.mubr.f32.mxu0 %v397_v55  ;;  %v453_v55 = vld [vmem:[%s6278_s16 + $0x1f8] sm:$0xff] }
  0x53   : > { %637 = vmatmul.mubr.f32.gmra.mrb[6].mxu0 %v396_v56  ;;  %v452_v56 = vld [vmem:[%s6278_s16 + $0x1f0] sm:$0xff] }
  0x54   : > { %641 = vmatprep.mubr.f32.mxu0 %v399_v57  ;;  %v455_v57 = vld [vmem:[%s6278_s16 + $0x208] sm:$0xff] }
  0x57   : > { %642 = vmatmul.mubr.f32.gmra.mrb[8].mxu0 %v398_v58  ;;  %v454_v58 = vld [vmem:[%s6278_s16 + $0x200] sm:$0xff] }
  0x58   : > { %646 = vmatprep.mubr.f32.mxu0 %v401_v59  ;;  %v457_v59 = vld [vmem:[%s6278_s16 + $0x218] sm:$0xff] }
  0x5b   : > { %647 = vmatmul.mubr.f32.gmra.mrb[10].mxu0 %v400_v60  ;;  %v456_v60 = vld [vmem:[%s6278_s16 + $0x210] sm:$0xff] }
  0x5c   : > { %651 = vmatprep.mubr.f32.mxu0 %v403_v61  ;;  %v459_v61 = vld [vmem:[%s6278_s16 + $0x228] sm:$0xff] }
  0x5f   : > { %652 = vmatmul.mubr.f32.gmra.mrb[12].mxu0 %v402_v62  ;;  %v458_v62 = vld [vmem:[%s6278_s16 + $0x220] sm:$0xff] }
  0x60   : > { %656 = vmatprep.mubr.f32.mxu0 %v405_v63  ;;  %v461_v63 = vld [vmem:[%s6278_s16 + $0x238] sm:$0xff] }
  0x63   : > { %657 = vmatmul.mubr.f32.gmra.mrb[14].mxu0 %v404_v0  ;;  %v460_v0 = vld [vmem:[%s6278_s16 + $0x230] sm:$0xff] }
  0x64   : > { %661 = vmatprep.mubr.f32.mxu0 %v407_v1  ;;  %v463_v1 = vld [vmem:[%s6278_s16 + $0x248] sm:$0xff] }
  0x67   : > { %662 = vmatmul.mubr.f32.gmra.mrb[16].mxu0 %v406_v2  ;;  %v462_v2 = vld [vmem:[%s6278_s16 + $0x240] sm:$0xff] }
  0x68   : > { %666 = vmatprep.mubr.f32.mxu0 %v409_v4  ;;  %v465_v4 = vld [vmem:[%s6278_s16 + $0x258] sm:$0xff] }
  0x6b   : > { %667 = vmatmul.mubr.f32.gmra.mrb[18].mxu0 %v408_v5  ;;  %v464_v5 = vld [vmem:[%s6278_s16 + $0x250] sm:$0xff] }
  0x6c   : > { %671 = vmatprep.mubr.f32.mxu0 %v411_v6  ;;  %v467_v6 = vld [vmem:[%s6278_s16 + $0x268] sm:$0xff] }
  0x6f   : > { %672 = vmatmul.mubr.f32.gmra.mrb[20].mxu0 %v410_v7  ;;  %v1042_v7 = vld [vmem:[%s8734_s3 + $0x120] sm:$0xff] }
  0x70   : > { %676 = vmatprep.mubr.f32.mxu0 %v413_v8  ;;  %v1043_v8 = vld [vmem:[%s8734_s3 + $0x128] sm:$0xff] }
  0x73   : > { %677 = vmatmul.mubr.f32.gmra.mrb[22].mxu0 %v412_v9  ;;  %v5915_v9 = vpack.c.bf16 %v1043_v8, %v1042_v7  ;;  %v504_v8 = vld [vmem:[%s6278_s16 + $0x390] sm:$0xff] }
  0x74   : > { %681 = vmatprep.mubr.f32.mxu0 %v415_v10  ;;  %v466_v10 = vld [vmem:[%s6278_s16 + $0x260] sm:$0xff] }
  0x75   : > { %5916 = vmatpush3.bf16.msra.mxu0 %v5915_v9  ;;  %v507_v9 = vld [vmem:[%s6278_s16 + $0x3a8] sm:$0xff] }
  0x76   : > { %5917 = vmatprep.subr.bf16.mxu0 %v8751_v3 }
  0x77   : > { %682 = vmatmul.mubr.f32.gmra.mrb[24].mxu0 %v414_v11  ;;  %v469_v11 = vld [vmem:[%s6278_s16 + $0x278] sm:$0xff] }
  0x78   : > { %686 = vmatprep.mubr.f32.mxu0 %v417_v12  ;;  %v1044_v12 = vld [vmem:[%s8734_s3 + $0x130] sm:$0xff] }
  0x7b   : > { %687 = vmatmul.mubr.f32.gmra.mrb[26].mxu0 %v416_v13  ;;  %v1045_v13 = vld [vmem:[%s8734_s3 + $0x138] sm:$0xff] }
  0x7c   : > { %691 = vmatprep.mubr.f32.mxu0 %v419_v14  ;;  %v5918_v14 = vpack.c.bf16 %v1045_v13, %v1044_v12  ;;  %v506_v13 = vld [vmem:[%s6278_s16 + $0x3a0] sm:$0xff] }
  0x7e   : > { %5919 = vmatpush3.bf16.msra.mxu0 %v5918_v14 }
  0x7f   : > { %692 = vmatmul.mubr.f32.gmra.mrb[28].mxu0 %v418_v15  ;;  %v468_v15 = vld [vmem:[%s6278_s16 + $0x270] sm:$0xff]  ;;  %5926 = vmatprep.subr.bf16.mxu0 %v8751_v3 }
  0x80   : > { %696 = vmatprep.mubr.f32.mxu0 %v421_v16  ;;  %v471_v16 = vld [vmem:[%s6278_s16 + $0x288] sm:$0xff] }
  0x83   : > { %697 = vmatmul.mubr.f32.gmra.mrb[30].mxu0 %v420_v17  ;;  %v470_v17 = vld [vmem:[%s6278_s16 + $0x280] sm:$0xff] }
  0x84   : > { %701 = vmatprep.mubr.f32.mxu0 %v423_v18  ;;  %v473_v18 = vld [vmem:[%s6278_s16 + $0x298] sm:$0xff] }
  0x87   : > { %702 = vmatmul.mubr.f32.gmra.mrb[32].mxu0 %v422_v19  ;;  %v472_v19 = vld [vmem:[%s6278_s16 + $0x290] sm:$0xff] }
  0x88   : > { %706 = vmatprep.mubr.f32.mxu0 %v425_v20  ;;  %v475_v20 = vld [vmem:[%s6278_s16 + $0x2a8] sm:$0xff] }
  0x8b   : > { %707 = vmatmul.mubr.f32.gmra.mrb[34].mxu0 %v424_v21  ;;  %v474_v21 = vld [vmem:[%s6278_s16 + $0x2a0] sm:$0xff] }
  0x8c   : > { %711 = vmatprep.mubr.f32.mxu0 %v427_v22  ;;  %v477_v22 = vld [vmem:[%s6278_s16 + $0x2b8] sm:$0xff] }
  0x8f   : > { %712 = vmatmul.mubr.f32.gmra.mrb[36].mxu0 %v426_v23  ;;  %v476_v23 = vld [vmem:[%s6278_s16 + $0x2b0] sm:$0xff] }
  0x90   : > { %716 = vmatprep.mubr.f32.mxu0 %v429_v24  ;;  %v479_v24 = vld [vmem:[%s6278_s16 + $0x2c8] sm:$0xff] }
  0x93   : > { %717 = vmatmul.mubr.f32.gmra.mrb[38].mxu0 %v428_v25  ;;  %v478_v25 = vld [vmem:[%s6278_s16 + $0x2c0] sm:$0xff] }
  0x94   : > { %721 = vmatprep.mubr.f32.mxu0 %v431_v26  ;;  %v481_v26 = vld [vmem:[%s6278_s16 + $0x2d8] sm:$0xff] }
  0x97   : > { %722 = vmatmul.mubr.f32.gmra.mrb[40].mxu0 %v430_v27  ;;  %v480_v27 = vld [vmem:[%s6278_s16 + $0x2d0] sm:$0xff] }
  0x98   : > { %726 = vmatprep.mubr.f32.mxu0 %v433_v28  ;;  %v483_v28 = vld [vmem:[%s6278_s16 + $0x2e8] sm:$0xff] }
  0x9b   : > { %727 = vmatmul.mubr.f32.gmra.mrb[42].mxu0 %v432_v32  ;;  %v487_v32 = vld [vmem:[%s6278_s16 + $0x308] sm:$0xff] }
  0x9c   : > { %731 = vmatprep.mubr.f32.mxu0 %v435_v33  ;;  %v486_v33 = vld [vmem:[%s6278_s16 + $0x300] sm:$0xff] }
  0x9f   : > { %732 = vmatmul.mubr.f32.gmra.mrb[44].mxu0 %v434_v37  ;;  %v490_v37 = vld [vmem:[%s6278_s16 + $0x320] sm:$0xff] }
  0xa0   : > { %736 = vmatprep.mubr.f32.mxu0 %v437_v38  ;;  %v493_v38 = vld [vmem:[%s6278_s16 + $0x338] sm:$0xff] }
  0xa3   : > { %737 = vmatmul.mubr.f32.gmra.mrb[46].mxu0 %v436_v40  ;;  %v492_v40 = vld [vmem:[%s6278_s16 + $0x330] sm:$0xff] }
  0xa4   : > { %741 = vmatprep.mubr.f32.mxu0 %v439_v41  ;;  %v495_v41 = vld [vmem:[%s6278_s16 + $0x348] sm:$0xff] }
  0xa7   : > { %742 = vmatmul.mubr.f32.gmra.mrb[48].mxu0 %v438_v42  ;;  %v494_v42 = vld [vmem:[%s6278_s16 + $0x340] sm:$0xff] }
  0xa8   : > { %746 = vmatprep.mubr.f32.mxu0 %v441_v43  ;;  %v497_v43 = vld [vmem:[%s6278_s16 + $0x358] sm:$0xff] }
  0xab   : > { %747 = vmatmul.mubr.f32.gmra.mrb[50].mxu0 %v440_v44  ;;  %v6513_v44 = vld [vmem:[%s8733_s2] ss:$0 sm:$0xff] }
  0xac   : > { %751 = vmatprep.mubr.f32.mxu0 %v443_v45  ;;  %v496_v45 = vld [vmem:[%s6278_s16 + $0x350] sm:$0xff] }
  0xaf   : > { %752 = vmatmul.mubr.f32.gmra.mrb[52].mxu0 %v442_v46  ;;  %v499_v46 = vld [vmem:[%s6278_s16 + $0x368] sm:$0xff] }
  0xb0   : > { %756 = vmatprep.mubr.f32.mxu0 %v445_v47 }
  0xb3   : > { %757 = vmatmul.mubr.f32.gmra.mrb[54].mxu0 %v444_v48  ;;  %v1010_v48 = vld [vmem:[%s8734_s3 + $0x20] sm:$0xff] }
  0xb4   : > { %761 = vmatprep.mubr.f32.mxu0 %v447_v49  ;;  %v1011_v49 = vld [vmem:[%s8734_s3 + $0x28] sm:$0xff] }
  0xb7   : > { %762 = vmatmul.mubr.f32.gmra.mrb[56].mxu0 %v446_v50 }
  0xb8   : > { %766 = vmatprep.mubr.f32.mxu0 %v449_v51 }
  0xbb   : > { %767 = vmatmul.mubr.f32.gmra.mrb[58].mxu0 %v448_v52  ;;  %v498_v52 = vld [vmem:[%s6278_s16 + $0x360] sm:$0xff] }
  0xbc   : > { %771 = vmatprep.mubr.f32.mxu0 %v451_v53 }
  0xbf   : > { %772 = vmatmul.mubr.f32.gmra.mrb[60].mxu0 %v450_v54  ;;  %v501_v54 = vld [vmem:[%s6278_s16 + $0x378] sm:$0xff] }
  0xc0   : > { %776 = vmatprep.mubr.f32.mxu0 %v453_v55  ;;  %v5867_v55 = vpack.c.bf16 %v1011_v49, %v1010_v48 }
  0xc3   : > { %777 = vmatmul.mubr.f32.gmra.mrb[62].mxu0 %v452_v56 }
  0xc4   : > { %781 = vmatprep.mubr.f32.mxu0 %v455_v57 }
  0xc7   : > { %782 = vmatmul.mubr.f32.gmra.mrb[64].mxu0 %v454_v58  ;;  %v500_v58 = vld [vmem:[%s6278_s16 + $0x370] sm:$0xff] }
  0xc8   : > { %786 = vmatprep.mubr.f32.mxu0 %v457_v59  ;;  %v503_v59 = vld [vmem:[%s6278_s16 + $0x388] sm:$0xff] }
  0xcb   : > { %787 = vmatmul.mubr.f32.gmra.mrb[66].mxu0 %v456_v60  ;;  %v1012_v60 = vld [vmem:[%s8734_s3 + $0x30] sm:$0xff] }
  0xcc   : > { %791 = vmatprep.mubr.f32.mxu0 %v459_v61  ;;  %v1013_v61 = vld [vmem:[%s8734_s3 + $0x38] sm:$0xff] }
  0xcf   : > { %792 = vmatmul.mubr.f32.gmra.mrb[68].mxu0 %v458_v62 }
  0xd0   : > { %796 = vmatprep.mubr.f32.mxu0 %v461_v63  ;;  %v5870_v63 = vpack.c.bf16 %v1013_v61, %v1012_v60 }
  0xd3   : > { %797 = vmatmul.mubr.f32.gmra.mrb[70].mxu0 %v460_v0 }
  0xd4   : > { %801 = vmatprep.mubr.f32.mxu0 %v463_v1 }
  0xd7   : > { %802 = vmatmul.mubr.f32.gmra.mrb[72].mxu0 %v462_v2  ;;  %v502_v2 = vld [vmem:[%s6278_s16 + $0x380] sm:$0xff] }
  0xd8   : > { %806 = vmatprep.mubr.f32.mxu0 %v465_v4 }
  0xdb   : > { %807 = vmatmul.mubr.f32.gmra.mrb[74].mxu0 %v464_v5  ;;  %v505_v5 = vld [vmem:[%s6278_s16 + $0x398] sm:$0xff] }
  0xdc   : > { %811 = vmatprep.mubr.f32.mxu0 %v467_v6 }
  0xdf   : > { %812 = vmatmul.mubr.f32.gmra.mrb[76].mxu0 %v466_v10 }
  0xe0   : > { %816 = vmatprep.mubr.f32.mxu0 %v469_v11 }
  0xe3   : > { %817 = vmatmul.mubr.f32.gmra.mrb[78].mxu0 %v468_v15  ;;  %v509_v15 = vld [vmem:[%s6278_s16 + $0x3b8] sm:$0xff] }
  0xe4   : > { %821 = vmatprep.mubr.f32.mxu0 %v471_v16 }
  0xe7   : > { %822 = vmatmul.mubr.f32.gmra.mrb[80].mxu0 %v470_v17 }
  0xe8   : > { %826 = vmatprep.mubr.f32.mxu0 %v473_v18  ;;  %v508_v18 = vld [vmem:[%s6278_s16 + $0x3b0] sm:$0xff] }
  0xeb   : > { %827 = vmatmul.mubr.f32.gmra.mrb[82].mxu0 %v472_v19  ;;  %v511_v19 = vld [vmem:[%s6278_s16 + $0x3c8] sm:$0xff] }
  0xec   : > { %831 = vmatprep.mubr.f32.mxu0 %v475_v20 }
  0xef   : > { %832 = vmatmul.mubr.f32.gmra.mrb[84].mxu0 %v474_v21 }
  0xf0   : > { %836 = vmatprep.mubr.f32.mxu0 %v477_v22  ;;  %v510_v22 = vld [vmem:[%s6278_s16 + $0x3c0] sm:$0xff] }
  0xf3   : > { %837 = vmatmul.mubr.f32.gmra.mrb[86].mxu0 %v476_v23  ;;  %v513_v23 = vld [vmem:[%s6278_s16 + $0x3d8] sm:$0xff] }
  0xf4   : > { %841 = vmatprep.mubr.f32.mxu0 %v479_v24 }
  0xf7   : > { %842 = vmatmul.mubr.f32.gmra.mrb[88].mxu0 %v478_v25 }
  0xf8   : > { %846 = vmatprep.mubr.f32.mxu0 %v481_v26  ;;  %v512_v26 = vld [vmem:[%s6278_s16 + $0x3d0] sm:$0xff] }
  0xfb   : > { %847 = vmatmul.mubr.f32.gmra.mrb[90].mxu0 %v480_v27  ;;  %v515_v27 = vld [vmem:[%s6278_s16 + $0x3e8] sm:$0xff] }
  0xfc   : > { %851 = vmatprep.mubr.f32.mxu0 %v483_v28 }
  0xff   : > { %852 = vmatmul.mubr.f32.gmra.mrb[92].mxu0 %v482_v29 }
 0x100   : > { %856 = vmatprep.mubr.f32.mxu0 %v485_v30  ;;  %v514_v30 = vld [vmem:[%s6278_s16 + $0x3e0] sm:$0xff] }
 0x103   : > { %857 = vmatmul.mubr.f32.gmra.mrb[94].mxu0 %v484_v31  ;;  %v517_v31 = vld [vmem:[%s6278_s16 + $0x3f8] sm:$0xff] }
 0x104   : > { %861 = vmatprep.mubr.f32.mxu0 %v487_v32 }
 0x107   : > { %862 = vmatmul.mubr.f32.gmra.mrb[96].mxu0 %v486_v33 }
 0x108   : > { %866 = vmatprep.mubr.f32.mxu0 %v489_v34  ;;  %v516_v34 = vld [vmem:[%s6278_s16 + $0x3f0] sm:$0xff] }
 0x10b   : > { %867 = vmatmul.mubr.f32.gmra.mrb[98].mxu0 %v488_v35 }
 0x10c   : > { %871 = vmatprep.mubr.f32.mxu0 %v491_v36 }
 0x10f   : > { %872 = vmatmul.mubr.f32.gmra.mrb[100].mxu0 %v490_v37 }
 0x110   : > { %876 = vmatprep.mubr.f32.mxu0 %v493_v38 }
 0x113   : > { %877 = vmatmul.mubr.f32.gmra.mrb[102].mxu0 %v492_v40 }
 0x114   : > { %881 = vmatprep.mubr.f32.mxu0 %v495_v41 }
 0x117   : > { %882 = vmatmul.mubr.f32.gmra.mrb[104].mxu0 %v494_v42 }
 0x118   : > { %886 = vmatprep.mubr.f32.mxu0 %v497_v43 }
 0x11a   : > { %v623_v47 = vpop.f32.mrb[0].mxu0 }
 0x11b   : > { %v624_v50 = vadd.f32 %v6513_v44, %v623_v47  ;;  %v625_v51 = vpop.f32.mrb[1].mxu0  ;;  %887 = vmatmul.mubr.f32.gmra.mrb[106].mxu0 %v496_v45 }
 0x11c   : > { %891 = vmatprep.mubr.f32.mxu0 %v499_v46 }
 0x11d   : > { %v942_v53 = vmax.f32 %v624_v50, 0.0 }
 0x11e   : > { %v6526_v56 = vpop.f32.mrb[2].mxu0 }
 0x11f   : > { %v630_v57 = vpop.f32.mrb[3].mxu0  ;;  %5090 = vmatmul.mubr.msk.f32.vlgmr.msra.gmra.mrb[0].mxu1 %vm1071_vm1, %v942_v53  ;;  %892 = vmatmul.mubr.f32.gmra.mrb[108].mxu0 %v498_v52 }
 0x120   : > { %5092 = vmatprep.mubr.msk.f32.mxu1 %vm6181_vm0, %v6182_v39  ;;  %896 = vmatprep.mubr.f32.mxu0 %v501_v54 }
 0x121   : > { %5868 = vmatpush3.bf16.msra.mxu1 %v5867_v55 }
 0x122   : > { %v633_v62 = vpop.f32.mrb[4].mxu0  ;;  %5869 = vmatprep.subr.bf16.mxu1 %v8751_v3 }
 0x123   : > { %v6541_v0 = vadd.f32 %v6513_v44, %v633_v62  ;;  %v635_v1 = vpop.f32.mrb[5].mxu0  ;;  %897 = vmatmul.mubr.f32.gmra.mrb[110].mxu0 %v500_v58 }
 0x124   : > { %901 = vmatprep.mubr.f32.mxu0 %v503_v59 }
 0x125   : > { %v944_v4 = vmax.f32 %v6541_v0, 0.0  ;;  %5871 = vmatpush3.bf16.msra.mxu1 %v5870_v63 }
 0x126   : > { %v6546_v6 = vpop.f32.mrb[6].mxu0  ;;  %5872 = vmatprep.subr.bf16.mxu1 %v8751_v3 }
 0x127   : > { %v640_v7 = vpop.f32.mrb[7].mxu0  ;;  %5093 = vmatmul.mubr.msk.f32.gmra.mrb[2].mxu1 %vm1071_vm1, %v944_v4  ;;  %902 = vmatmul.mubr.f32.gmra.mrb[112].mxu0 %v502_v2 }
 0x128   : > { %5095 = vmatprep.mubr.msk.f32.mxu1 %vm6181_vm0, %v6182_v39  ;;  %906 = vmatprep.mubr.f32.mxu0 %v505_v5 }
 0x12a   : > { %v643_v10 = vpop.f32.mrb[8].mxu0 }
 0x12b   : > { %v6557_v11 = vadd.f32 %v6513_v44, %v643_v10  ;;  %v645_v12 = vpop.f32.mrb[9].mxu0  ;;  %907 = vmatmul.mubr.f32.gmra.mrb[114].mxu0 %v504_v8  ;;  %v1050_v10 = vld [vmem:[%s8734_s3 + $0x160] sm:$0xff] }
 0x12c   : > { %911 = vmatprep.mubr.f32.mxu0 %v507_v9  ;;  %v1051_v12 = vld [vmem:[%s8734_s3 + $0x168] sm:$0xff] }
 0x12d   : > { %v946_v14 = vmax.f32 %v6557_v11, 0.0 }
 0x12e   : > { %v6562_v16 = vpop.f32.mrb[10].mxu0 }
 0x12f   : > { %v650_v17 = vpop.f32.mrb[11].mxu0  ;;  %5096 = vmatmul.mubr.msk.f32.gmra.mrb[4].mxu1 %vm1071_vm1, %v946_v14  ;;  %912 = vmatmul.mubr.f32.gmra.mrb[116].mxu0 %v506_v13 }
 0x130   : > { %916 = vmatprep.mubr.f32.mxu0 %v509_v15  ;;  %5098 = vmatprep.mubr.msk.f32.mxu1 %vm6181_vm0, %v6182_v39  ;;  %v5927_v15 = vpack.c.bf16 %v1051_v12, %v1050_v10 }
 0x132   : > { %v6571_v20 = vpop.f32.mrb[12].mxu0 }
 0x133   : > { %v655_v21 = vpop.f32.mrb[13].mxu0  ;;  %917 = vmatmul.mubr.f32.gmra.mrb[118].mxu0 %v508_v18 }
 0x134   : > { %921 = vmatprep.mubr.f32.mxu0 %v511_v19  ;;  %v1052_v21 = vld [vmem:[%s8734_s3 + $0x170] sm:$0xff] }
 0x136   : > { %v6575_v24 = vpop.f32.mrb[14].mxu0 }
 0x137   : > { %v660_v25 = vpop.f32.mrb[15].mxu0  ;;  %922 = vmatmul.mubr.f32.gmra.mrb[120].mxu0 %v510_v22  ;;  %v1053_v22 = vld [vmem:[%s8734_s3 + $0x178] sm:$0xff] }
 0x138   : > { %926 = vmatprep.mubr.f32.mxu0 %v513_v23  ;;  %v5930_v25 = vpack.c.bf16 %v1053_v22, %v1052_v21 }
 0x13a   : > { %v6579_v28 = vpop.f32.mrb[16].mxu0 }
 0x13b   : > { %v665_v29 = vpop.f32.mrb[17].mxu0  ;;  %927 = vmatmul.mubr.f32.gmra.mrb[122].mxu0 %v512_v26 }
 0x13c   : > { %931 = vmatprep.mubr.f32.mxu0 %v515_v27 }
 0x13e   : > { %v6583_v32 = vpop.f32.mrb[18].mxu0 }
 0x13f   : > { %v670_v33 = vpop.f32.mrb[19].mxu0  ;;  %932 = vmatmul.mubr.f32.gmra.mrb[124].mxu0 %v514_v30 }
 0x140   : > { %936 = vmatprep.mubr.f32.mxu0 %v517_v31 }
 0x142   : > { %v6586_v35 = vpop.f32.mrb[20].mxu0 }
 0x143   : > { %v675_v36 = vpop.f32.mrb[21].mxu0  ;;  %937 = vmatmul.mubr.f32.gmra.mrb[126].mxu0 %v516_v34 }
 0x144   : > { %5404 = vmatprep.mubr.msk.f32.mxu0 %vm6181_vm0, %v6182_v39 }
 0x146   : > { %v6590_v37 = vpop.f32.mrb[22].mxu0 }
 0x147   : > { %v680_v38 = vpop.f32.mrb[23].mxu0 }
 0x14a   : > { %v6592_v40 = vpop.f32.mrb[24].mxu0 }
 0x14b   : > { %v685_v41 = vpop.f32.mrb[25].mxu0 }
 0x14e   : > { %v6594_v42 = vpop.f32.mrb[26].mxu0 }
 0x14f   : > { %v690_v43 = vpop.f32.mrb[27].mxu0 }
 0x152   : > { %v6596_v45 = vpop.f32.mrb[28].mxu0 }
 0x153   : > { %v695_v46 = vpop.f32.mrb[29].mxu0 }
 0x156   : > { %v6598_v47 = vpop.f32.mrb[30].mxu0 }
 0x157   : > { %v700_v48 = vpop.f32.mrb[31].mxu0 }
 0x15a   : > { %v703_v49 = vpop.f32.mrb[32].mxu0 }
 0x15b   : > { %v6601_v50 = vadd.f32 %v6513_v44, %v703_v49  ;;  %v705_v51 = vpop.f32.mrb[33].mxu0 }
 0x15d   : > { %v8745_v52 = vmax.f32 %v6601_v50, 0.0 }
 0x15e   : > { %v708_v53 = vpop.f32.mrb[34].mxu0 }
 0x15f   : > { %v6605_v54 = vadd.f32 %v6513_v44, %v708_v53  ;;  %v710_v55 = vpop.f32.mrb[35].mxu0  ;;  %5099 = vmatmul.mubr.msk.f32.gmra.mrb[6].mxu1 %vm1071_vm1, %v8745_v52  ;;  %v1061_v52 = vld [vmem:[%s8734_s3 + $0x1b8] sm:$0xff] }
 0x160   : > { %5101 = vmatprep.mubr.msk.f32.mxu1 %vm6181_vm0, %v6182_v39 }
 0x161   : > { %v959_v57 = vmax.f32 %v6605_v54, 0.0 }
 0x162   : > { %v713_v58 = vpop.f32.mrb[36].mxu0 }
 0x163   : > { %v714_v59 = vadd.f32 %v6513_v44, %v713_v58  ;;  %v715_v60 = vpop.f32.mrb[37].mxu0  ;;  %5405 = vmatmul.mubr.msk.f32.vlgmr.msra.gmra.mrb[128].mxu0 %vm1071_vm1, %v959_v57 }
 0x164   : > { %5407 = vmatprep.mubr.msk.f32.mxu0 %vm6181_vm0, %v6182_v39  ;;  %5928 = vmatpush3.bf16.msra.mxu0 %v5927_v15 }
 0x165   : > { %v6619_v61 = vmax.f32 %v714_v59, 0.0  ;;  %5929 = vmatprep.subr.bf16.mxu0 %v8751_v3 }
 0x166   : > { %v718_v62 = vpop.f32.mrb[38].mxu0 }
 0x167   : > { %v719_v63 = vadd.f32 %v6513_v44, %v718_v62  ;;  %v720_v1 = vpop.f32.mrb[39].mxu0  ;;  %5102 = vmatmul.mubr.msk.f32.gmra.mrb[8].mxu1 %vm1071_vm1, %v6619_v61 }
 0x168   : > { %5104 = vmatprep.mubr.msk.f32.mxu1 %vm6181_vm0, %v6182_v39  ;;  %5931 = vmatpush3.bf16.msra.mxu0 %v5930_v25 }
 0x169   : > { %v6626_v2 = vmax.f32 %v719_v63, 0.0  ;;  %5938 = vmatprep.subr.bf16.mxu0 %v8751_v3 }
 0x16a   : > { %v723_v5 = vpop.f32.mrb[40].mxu0 }
 0x16b   : > { %v724_v7 = vadd.f32 %v6513_v44, %v723_v5  ;;  %v725_v8 = vpop.f32.mrb[41].mxu0  ;;  %5408 = vmatmul.mubr.msk.f32.gmra.mrb[130].mxu0 %vm1071_vm1, %v6626_v2 }
 0x16c   : > { %5410 = vmatprep.mubr.msk.f32.mxu0 %vm6181_vm0, %v6182_v39 }
 0x16d   : > { %v6633_v9 = vmax.f32 %v724_v7, 0.0 }
 0x16e   : > { %v728_v13 = vpop.f32.mrb[42].mxu0 }
 0x16f   : > { %v729_v17 = vadd.f32 %v6513_v44, %v728_v13  ;;  %v730_v18 = vpop.f32.mrb[43].mxu0  ;;  %5105 = vmatmul.mubr.msk.f32.gmra.mrb[10].mxu1 %vm1071_vm1, %v6633_v9 }
 0x170   : > { %5107 = vmatprep.mubr.msk.f32.mxu1 %vm6181_vm0, %v6182_v39 }
 0x171   : > { %v6646_v19 = vmax.f32 %v729_v17, 0.0 }
 0x172   : > { %v6655_v23 = vpop.f32.mrb[44].mxu0 }
 0x173   : > { %v735_v26 = vpop.f32.mrb[45].mxu0  ;;  %5411 = vmatmul.mubr.msk.f32.gmra.mrb[132].mxu0 %vm1071_vm1, %v6646_v19 }
 0x174   : > { %5413 = vmatprep.mubr.msk.f32.mxu0 %vm6181_vm0, %v6182_v39 }
 0x176   : > { %v6662_v27 = vpop.f32.mrb[46].mxu0 }
 0x177   : > { %v740_v29 = vpop.f32.mrb[47].mxu0 }
 0x17a   : > { %v6664_v30 = vpop.f32.mrb[48].mxu0 }
 0x17b   : > { %v745_v31 = vpop.f32.mrb[49].mxu0 }
 0x17e   : > { %v6666_v33 = vpop.f32.mrb[50].mxu0 }
 0x17f   : > { %v750_v34 = vpop.f32.mrb[51].mxu0 }
 0x180   : > { %v629_v34 = vadd.f32 %v6513_v44, %v6526_v56 }
 0x182   : > { %v6668_v36 = vpop.f32.mrb[52].mxu0 }
 0x183   : > { %v755_v38 = vpop.f32.mrb[53].mxu0 }
 0x186   : > { %v6670_v41 = vpop.f32.mrb[54].mxu0 }
 0x187   : > { %v760_v43 = vpop.f32.mrb[55].mxu0 }
 0x188   : > { %v1014_v43 = vld [vmem:[%s8734_s3 + $0x40] sm:$0xff] }
 0x18a   : > { %v6672_v46 = vpop.f32.mrb[56].mxu0 }
 0x18b   : > { %v765_v48 = vpop.f32.mrb[57].mxu0 }
 0x18c   : > { %v1015_v48 = vld [vmem:[%s8734_s3 + $0x48] sm:$0xff] }
 0x18d   : > { %v5873_v56 = vpack.c.bf16 %v1015_v48, %v1014_v43 }
 0x18e   : > { %v6674_v49 = vpop.f32.mrb[58].mxu0 }
 0x18f   : > { %v770_v51 = vpop.f32.mrb[59].mxu0 }
 0x192   : > { %v6676_v53 = vpop.f32.mrb[60].mxu0 }
 0x193   : > { %v775_v55 = vpop.f32.mrb[61].mxu0 }
 0x196   : > { %v6678_v58 = vpop.f32.mrb[62].mxu0 }
 0x197   : > { %v780_v59 = vpop.f32.mrb[63].mxu0 }
 0x19a   : > { %v783_v60 = vpop.f32.mrb[64].mxu0 }
 0x19b   : > { %v6681_v62 = vadd.f32 %v6513_v44, %v783_v60  ;;  %v785_v63 = vpop.f32.mrb[65].mxu0  ;;  %v943_v60 = vmax.f32 %v629_v34, 0.0 }
 0x19c   : > { %v6730_v63 = vadd.f32 %v6513_v44, %v6546_v6 }
 0x19d   : > { %v8744_v1 = vmax.f32 %v6681_v62, 0.0 }
 0x19e   : > { %v788_v5 = vpop.f32.mrb[66].mxu0 }
 0x19f   : > { %v6685_v7 = vadd.f32 %v6513_v44, %v788_v5  ;;  %v790_v8 = vpop.f32.mrb[67].mxu0  ;;  %5108 = vmatmul.mubr.msk.f32.gmra.mrb[12].mxu1 %vm1071_vm1, %v8744_v1  ;;  %v1016_v5 = vld [vmem:[%s8734_s3 + $0x50] sm:$0xff] }
 0x1a0   : > { %5110 = vmatprep.mubr.msk.f32.mxu1 %vm6181_vm0, %v6182_v39  ;;  %v1017_v8 = vld [vmem:[%s8734_s3 + $0x58] sm:$0xff] }
 0x1a1   : > { %v975_v10 = vmax.f32 %v6685_v7, 0.0  ;;  %v5876_v6 = vpack.c.bf16 %v1017_v8, %v1016_v5  ;;  %v1018_v5 = vld [vmem:[%s8734_s3 + $0x60] sm:$0xff]  ;;  %v1019_v7 = vld [vmem:[%s8734_s3 + $0x68] sm:$0xff] }
 0x1a2   : > { %v793_v12 = vpop.f32.mrb[68].mxu0 }
 0x1a3   : > { %v794_v13 = vadd.f32 %v6513_v44, %v793_v12  ;;  %v795_v15 = vpop.f32.mrb[69].mxu0  ;;  %5414 = vmatmul.mubr.msk.f32.gmra.mrb[134].mxu0 %vm1071_vm1, %v975_v10 }
 0x1a4   : > { %5416 = vmatprep.mubr.msk.f32.mxu0 %vm6181_vm0, %v6182_v39 }
 0x1a5   : > { %v6699_v17 = vmax.f32 %v794_v13, 0.0 }
 0x1a6   : > { %v798_v18 = vpop.f32.mrb[70].mxu0 }
 0x1a7   : > { %v799_v21 = vadd.f32 %v6513_v44, %v798_v18  ;;  %v800_v22 = vpop.f32.mrb[71].mxu0  ;;  %5111 = vmatmul.mubr.msk.f32.gmra.mrb[14].mxu1 %vm1071_vm1, %v6699_v17  ;;  %v8750_v18 = vmax.f32 %v6730_v63, 0.0 }
 0x1a8   : > { %5113 = vmatprep.mubr.msk.f32.mxu1 %vm6181_vm0, %v6182_v39 }
 0x1a9   : > { %v6706_v25 = vmax.f32 %v799_v21, 0.0  ;;  %v6750_v21 = vadd.f32 %v6513_v44, %v6562_v16 }
 0x1aa   : > { %v803_v26 = vpop.f32.mrb[72].mxu0 }
 0x1ab   : > { %v804_v29 = vadd.f32 %v6513_v44, %v803_v26  ;;  %v805_v31 = vpop.f32.mrb[73].mxu0  ;;  %5417 = vmatmul.mubr.msk.f32.gmra.mrb[136].mxu0 %vm1071_vm1, %v6706_v25 }
 0x1ac   : > { %5419 = vmatprep.mubr.msk.f32.mxu0 %vm6181_vm0, %v6182_v39 }
 0x1ad   : > { %v6715_v38 = vmax.f32 %v804_v29, 0.0  ;;  %v8749_v29 = vmax.f32 %v6750_v21, 0.0 }
 0x1ae   : > { %v808_v51 = vpop.f32.mrb[74].mxu0 }
 0x1af   : > { %5114 = vmatmul.mubr.msk.f32.gmra.mrb[16].mxu1 %vm1071_vm1, %v6715_v38  ;;  %v809_v55 = vadd.f32 %v6513_v44, %v808_v51  ;;  %v810_v59 = vpop.f32.mrb[75].mxu0 }
 0x1b0   : > { %5124 = vmatprep.mubr.msk.f32.mxu1 %vm6181_vm0, %v6182_v39 }
 0x1b1   : > { %v6738_v12 = vmax.f32 %v809_v55, 0.0 }
 0x1b2   : > { %v6740_v13 = vpop.f32.mrb[76].mxu0 }
 0x1b3   : > { %5125 = vmatmul.mubr.msk.f32.vlgmr.msra.gmra.mrb[18].mxu1 %vm1071_vm1, %v943_v60  ;;  %v815_v15 = vpop.f32.mrb[77].mxu0  ;;  %5420 = vmatmul.mubr.msk.f32.gmra.mrb[138].mxu0 %vm1071_vm1, %v6738_v12 }
 0x1b4   : > { %5874 = vmatpush3.bf16.msra.mxu1 %v5873_v56  ;;  %5127 = vmatprep.mubr.msk.f32.mxu1 %vm6181_vm0, %v6182_v39  ;;  %v5879_v15 = vpack.c.bf16 %v1019_v7, %v1018_v5 }
 0x1b5   : > { %5875 = vmatprep.subr.bf16.mxu1 %v8751_v3  ;;  %5422 = vmatprep.mubr.msk.f32.mxu0 %vm6181_vm0, %v6182_v39 }
 0x1b6   : > { %v6755_v22 = vpop.f32.mrb[78].mxu0 }
 0x1b7   : > { %5128 = vmatmul.mubr.msk.f32.gmra.mrb[20].mxu1 %vm1071_vm1, %v8750_v18  ;;  %v820_v26 = vpop.f32.mrb[79].mxu0 }
 0x1b8   : > { %5130 = vmatprep.mubr.msk.f32.mxu1 %vm6181_vm0, %v6182_v39  ;;  %5877 = vmatpush3.bf16.msra.mxu1 %v5876_v6  ;;  %v1020_v6 = vld [vmem:[%s8734_s3 + $0x70] sm:$0xff]  ;;  %v1021_v26 = vld [vmem:[%s8734_s3 + $0x78] sm:$0xff] }
 0x1b9   : > { %5878 = vmatprep.subr.bf16.mxu1 %v8751_v3 }
 0x1ba   : > { %v6764_v16 = vpop.f32.mrb[80].mxu0 }
 0x1bb   : > { %5131 = vmatmul.mubr.msk.f32.gmra.mrb[22].mxu1 %vm1071_vm1, %v8749_v29  ;;  %v825_v31 = vpop.f32.mrb[81].mxu0 }
 0x1bc   : > { %5133 = vmatprep.mubr.msk.f32.mxu1 %vm6181_vm0, %v6182_v39 }
 0x1be   : > { %v6771_v34 = vpop.f32.mrb[82].mxu0 }
 0x1bf   : > { %5134 = vmatmul.mubr.msk.f32.gmra.mrb[24].mxu1 %vm1071_vm1, %v959_v57  ;;  %v830_v43 = vpop.f32.mrb[83].mxu0 }
 0x1c0   : > { %5136 = vmatprep.mubr.msk.f32.mxu1 %vm6181_vm0, %v6182_v39 }
 0x1c2   : > { %v6778_v48 = vpop.f32.mrb[84].mxu0 }
 0x1c3   : > { %5137 = vmatmul.mubr.msk.f32.gmra.mrb[26].mxu1 %vm1071_vm1, %v6626_v2  ;;  %v835_v51 = vpop.f32.mrb[85].mxu0 }
 0x1c4   : > { %5139 = vmatprep.mubr.msk.f32.mxu1 %vm6181_vm0, %v6182_v39  ;;  %v5882_v51 = vpack.c.bf16 %v1021_v26, %v1020_v6 }
 0x1c6   : > { %v6784_v55 = vpop.f32.mrb[86].mxu0 }
 0x1c7   : > { %5140 = vmatmul.mubr.msk.f32.gmra.mrb[28].mxu1 %vm1071_vm1, %v6646_v19  ;;  %v840_v54 = vpop.f32.mrb[87].mxu0 }
 0x1c8   : > { %5142 = vmatprep.mubr.msk.f32.mxu1 %vm6181_vm0, %v6182_v39  ;;  %v654_v54 = vadd.f32 %v6513_v44, %v6571_v20 }
 0x1ca   : > { %v6790_v57 = vpop.f32.mrb[88].mxu0 }
 0x1cb   : > { %5143 = vmatmul.mubr.msk.f32.gmra.mrb[30].mxu1 %vm1071_vm1, %v975_v10  ;;  %v845_v59 = vpop.f32.mrb[89].mxu0 }
 0x1cc   : > { %5145 = vmatprep.mubr.msk.f32.mxu1 %vm6181_vm0, %v6182_v39 }
 0x1ce   : > { %v6797_v56 = vpop.f32.mrb[90].mxu0 }
 0x1cf   : > { %5146 = vmatmul.mubr.msk.f32.gmra.mrb[32].mxu1 %vm1071_vm1, %v6706_v25  ;;  %v850_v60 = vpop.f32.mrb[91].mxu0 }
 0x1d0   : > { %5148 = vmatprep.mubr.msk.f32.mxu1 %vm6181_vm0, %v6182_v39 }
 0x1d2   : > { %v6809_v10 = vpop.f32.mrb[92].mxu0 }
 0x1d3   : > { %5149 = vmatmul.mubr.msk.f32.gmra.mrb[34].mxu1 %vm1071_vm1, %v6738_v12  ;;  %v855_v8 = vpop.f32.mrb[93].mxu0 }
 0x1d4   : > { %5159 = vmatprep.mubr.msk.f32.mxu1 %vm6181_vm0, %v6182_v39  ;;  %v6854_v8 = vadd.f32 %v6513_v44, %v6655_v23 }
 0x1d6   : > { %v6821_v31 = vpop.f32.mrb[94].mxu0 }
 0x1d7   : > { %5160 = vmatmul.mubr.msk.f32.vlgmr.msra.gmra.mrb[36].mxu1 %vm1071_vm1, %v944_v4  ;;  %v860_v43 = vpop.f32.mrb[95].mxu0  ;;  %v948_v4 = vmax.f32 %v654_v54, 0.0 }
 0x1d8   : > { %5880 = vmatpush3.bf16.msra.mxu1 %v5879_v15  ;;  %5162 = vmatprep.mubr.msk.f32.mxu1 %vm6181_vm0, %v6182_v39  ;;  %v8743_v43 = vmax.f32 %v6854_v8, 0.0 }
 0x1d9   : > { %5881 = vmatprep.subr.bf16.mxu1 %v8751_v3 }
 0x1da   : > { %v6831_v59 = vpop.f32.mrb[96].mxu0 }
 0x1db   : > { %5163 = vmatmul.mubr.msk.f32.gmra.mrb[38].mxu1 %vm1071_vm1, %v946_v14  ;;  %v865_v0 = vpop.f32.mrb[97].mxu0 }
 0x1dc   : > { %5165 = vmatprep.mubr.msk.f32.mxu1 %vm6181_vm0, %v6182_v39  ;;  %5883 = vmatpush3.bf16.msra.mxu1 %v5882_v51 }
 0x1dd   : > { %5884 = vmatprep.subr.bf16.mxu1 %v8751_v3 }
 0x1de   : > { %v868_v60 = vpop.f32.mrb[98].mxu0 }
 0x1df   : > { %5166 = vmatmul.mubr.msk.f32.gmra.mrb[40].mxu1 %vm1071_vm1, %v948_v4  ;;  %v869_v20 = vadd.f32 %v6513_v44, %v868_v60  ;;  %v870_v5 = vpop.f32.mrb[99].mxu0  ;;  %v6879_v4 = vadd.f32 %v6513_v44, %v6740_v13  ;;  %v1058_v13 = vld [vmem:[%s8734_s3 + $0x1a0] sm:$0xff] }
 0x1e0   : > { %5168 = vmatprep.mubr.msk.f32.mxu1 %vm6181_vm0, %v6182_v39 }
 0x1e1   : > { %v991_v11 = vmax.f32 %v869_v20, 0.0 }
 0x1e2   : > { %v6843_v7 = vpop.f32.mrb[100].mxu0 }
 0x1e3   : > { %5169 = vmatmul.mubr.msk.f32.gmra.mrb[42].mxu1 %vm1071_vm1, %v6619_v61  ;;  %v875_v14 = vpop.f32.mrb[101].mxu0  ;;  %5423 = vmatmul.mubr.msk.f32.gmra.mrb[140].mxu0 %vm1071_vm1, %v991_v11 }
 0x1e4   : > { %5171 = vmatprep.mubr.msk.f32.mxu1 %vm6181_vm0, %v6182_v39  ;;  %5425 = vmatprep.mubr.msk.f32.mxu0 %vm6181_vm0, %v6182_v39 }
 0x1e6   : > { %v878_v15 = vpop.f32.mrb[102].mxu0 }
 0x1e7   : > { %5172 = vmatmul.mubr.msk.f32.gmra.mrb[44].mxu1 %vm1071_vm1, %v6633_v9  ;;  %v6859_v6 = vadd.f32 %v6513_v44, %v878_v15  ;;  %v880_v26 = vpop.f32.mrb[103].mxu0  ;;  %v1059_v15 = vld [vmem:[%s8734_s3 + $0x1a8] sm:$0xff] }
 0x1e8   : > { %5174 = vmatprep.mubr.msk.f32.mxu1 %vm6181_vm0, %v6182_v39  ;;  %v8747_v26 = vmax.f32 %v6879_v4, 0.0 }
 0x1e9   : > { %v8748_v51 = vmax.f32 %v6859_v6, 0.0 }
 0x1ea   : > { %v6865_v54 = vpop.f32.mrb[104].mxu0 }
 0x1eb   : > { %5175 = vmatmul.mubr.msk.f32.gmra.mrb[46].mxu1 %vm1071_vm1, %v8743_v43  ;;  %v885_v23 = vpop.f32.mrb[105].mxu0  ;;  %5426 = vmatmul.mubr.msk.f32.gmra.mrb[142].mxu0 %vm1071_vm1, %v8748_v51  ;;  %v5939_v43 = vpack.c.bf16 %v1059_v15, %v1058_v13  ;;  %v739_v15 = vadd.f32 %v6513_v44, %v6662_v27  ;;  %v1024_v51 = vld [vmem:[%s8734_s3 + $0x90] sm:$0xff] }
 0x1ec   : > { %5177 = vmatprep.mubr.msk.f32.mxu1 %vm6181_vm0, %v6182_v39  ;;  %5428 = vmatprep.mubr.msk.f32.mxu0 %vm6181_vm0, %v6182_v39 }
 0x1ee   : > { %v888_v0 = vpop.f32.mrb[106].mxu0 }
 0x1ef   : > { %v6882_v60 = vadd.f32 %v6513_v44, %v888_v0  ;;  %5178 = vmatmul.mubr.msk.f32.gmra.mrb[48].mxu1 %vm1071_vm1, %v6699_v17  ;;  %v890_v20 = vpop.f32.mrb[107].mxu0 }
 0x1f0   : > { %5180 = vmatprep.mubr.msk.f32.mxu1 %vm6181_vm0, %v6182_v39  ;;  %v1022_v20 = vld [vmem:[%s8734_s3 + $0x80] sm:$0xff] }
 0x1f1   : > { %v8746_v5 = vmax.f32 %v6882_v60, 0.0 }
 0x1f2   : > { %v6889_v11 = vpop.f32.mrb[0].mxu1  ;;  %v6891_v14 = vpop.f32.mrb[108].mxu0 }
 0x1f3   : > { %v5091_v23 = vpop.f32.mrb[1].mxu1  ;;  %5181 = vmatmul.mubr.msk.f32.gmra.mrb[50].mxu1 %vm1071_vm1, %v6715_v38  ;;  %5429 = vmatmul.mubr.msk.f32.gmra.mrb[144].mxu0 %vm1071_vm1, %v8746_v5  ;;  %v895_v0 = vpop.f32.mrb[109].mxu0 }
 0x1f4   : > { %5183 = vmatprep.mubr.msk.f32.mxu1 %vm6181_vm0, %v6182_v39  ;;  %5474 = vmatprep.mubr.msk.f32.mxu0 %vm6181_vm0, %v6182_v39  ;;  %v1023_v23 = vld [vmem:[%s8734_s3 + $0x88] sm:$0xff]  ;;  %v1060_v0 = vld [vmem:[%s8734_s3 + $0x1b0] sm:$0xff] }
 0x1f5   : > { %v5885_v13 = vpack.c.bf16 %v1023_v23, %v1022_v20  ;;  %v5942_v29 = vpack.c.bf16 %v1061_v52, %v1060_v0  ;;  %v8760_v23 = vmax.f32 %v6730_v63, 0.0  ;;  %v8761_v52 = vmov 0.0|0.0  }
 0x1f6   : > { %v6915_v1 = vpop.f32.mrb[110].mxu0 }
 0x1f7   : > { %5184 = vmatmul.mubr.msk.f32.gmra.mrb[52].mxu1 %vm1071_vm1, %v8747_v26  ;;  %5475 = vmatmul.mubr.msk.f32.vlgmr.msra.gmra.mrb[146].mxu0 %vm1071_vm1, %v6626_v2  ;;  %v900_v5 = vpop.f32.mrb[111].mxu0 }
 0x1f8   : > { %5194 = vmatprep.mubr.msk.f32.mxu1 %vm6181_vm0, %v6182_v39  ;;  %5477 = vmatprep.mubr.msk.f32.mxu0 %vm6181_vm0, %v6182_v39  ;;  %v1025_v5 = vld [vmem:[%s8734_s3 + $0x98] sm:$0xff] }
 0x1f9   : > { %5940 = vmatpush3.bf16.msra.mxu0 %v5939_v43  ;;  %v659_v43 = vadd.f32 %v6513_v44, %v6575_v24  ;;  %v5888_v63 = vpack.c.bf16 %v1025_v5, %v1024_v51  ;;  %v819_v51 = vadd.f32 %v6513_v44, %v6755_v22 }
 0x1fa   : > { %v6934_v26 = vpop.f32.mrb[2].mxu1  ;;  %5941 = vmatprep.subr.bf16.mxu0 %v8751_v3  ;;  %v6943_v18 = vpop.f32.mrb[112].mxu0  ;;  %v965_v3 = vmax.f32 %v739_v15, 0.0 }
 0x1fb   : > { %v5094_v20 = vpop.f32.mrb[3].mxu1  ;;  %5195 = vmatmul.mubr.msk.f32.vlgmr.msra.gmra.mrb[54].mxu1 %vm1071_vm1, %v8760_v23  ;;  %5478 = vmatmul.mubr.msk.f32.gmra.mrb[148].mxu0 %vm1071_vm1, %v6646_v19  ;;  %v905_v27 = vpop.f32.mrb[113].mxu0  ;;  %v949_v24 = vmax.f32 %v659_v43, 0.0 }
 0x1fc   : > { %5886 = vmatpush3.bf16.msra.mxu1 %v5885_v13  ;;  %5197 = vmatprep.mubr.msk.f32.mxu1 %vm6181_vm0, %v6182_v39  ;;  %v8762_v20 = vmax.f32 %v6750_v21, 0.0  ;;  %v981_v27 = vmax.f32 %v819_v51, 0.0 }
 0x1fd   : > { %5480 = vmatprep.mubr.msk.f32.mxu0 %vm6181_vm0, %v6182_v39  ;;  %5887 = vmatprep.subr.bf16.mxu1 %v8761_v52 }
 0x1fe   : > { %5943 = vmatpush3.bf16.msra.mxu0 %v5942_v29  ;;  %v6957_v0 = vpop.f32.mrb[114].mxu0 }
 0x1ff   : > { %5198 = vmatmul.mubr.msk.f32.gmra.mrb[56].mxu1 %vm1071_vm1, %v8762_v20  ;;  %5481 = vmatmul.mubr.msk.f32.gmra.mrb[150].mxu0 %vm1071_vm1, %v965_v3  ;;  %v910_v13 = vpop.f32.mrb[115].mxu0  ;;  %v8763_v20 = vmax.f32 %v6859_v6, 0.0 }
 0x200   : > { %5200 = vmatprep.mubr.msk.f32.mxu1 %vm6181_vm0, %v6182_v39  ;;  %5483 = vmatprep.mubr.msk.f32.mxu0 %vm6181_vm0, %v6182_v39 }
 0x201   : > { %5889 = vmatpush3.bf16.msra.mxu1 %v5888_v63  ;;  %5950 = vmatprep.subr.bf16.mxu0 %v8761_v52 }
 0x202   : > { %v6968_v29 = vpop.f32.mrb[4].mxu1  ;;  %5890 = vmatprep.subr.bf16.mxu1 %v8761_v52  ;;  %v6971_v21 = vpop.f32.mrb[116].mxu0 }
 0x203   : > { %v5097_v15 = vpop.f32.mrb[5].mxu1  ;;  %5201 = vmatmul.mubr.msk.f32.gmra.mrb[58].mxu1 %vm1071_vm1, %v949_v24  ;;  %5484 = vmatmul.mubr.msk.f32.gmra.mrb[152].mxu0 %vm1071_vm1, %v6706_v25  ;;  %v915_v5 = vpop.f32.mrb[117].mxu0 }
 0x204   : > { %5203 = vmatprep.mubr.msk.f32.mxu1 %vm6181_vm0, %v6182_v39  ;;  %5486 = vmatprep.mubr.msk.f32.mxu0 %vm6181_vm0, %v6182_v39 }
 0x206   : > { %v6982_v23 = vpop.f32.mrb[118].mxu0 }
 0x207   : > { %5204 = vmatmul.mubr.msk.f32.gmra.mrb[60].mxu1 %vm1071_vm1, %v6626_v2  ;;  %5487 = vmatmul.mubr.msk.f32.gmra.mrb[154].mxu0 %vm1071_vm1, %v6738_v12  ;;  %v920_v22 = vpop.f32.mrb[119].mxu0 }
 0x208   : > { %5206 = vmatprep.mubr.msk.f32.mxu1 %vm6181_vm0, %v6182_v39  ;;  %5489 = vmatprep.mubr.msk.f32.mxu0 %vm6181_vm0, %v6182_v39 }
 0x20a   : > { %v6992_v43 = vpop.f32.mrb[120].mxu0 }
 0x20b   : > { %5207 = vmatmul.mubr.msk.f32.gmra.mrb[62].mxu1 %vm1071_vm1, %v6646_v19  ;;  %5490 = vmatmul.mubr.msk.f32.gmra.mrb[156].mxu0 %vm1071_vm1, %v981_v27  ;;  %v925_v63 = vpop.f32.mrb[121].mxu0  ;;  %v899_v19 = vadd.f32 %v6513_v44, %v6915_v1  ;;  %v7026_v1 = vadd.f32 %v6513_v44, %v6666_v33  ;;  %v664_v33 = vadd.f32 %v6513_v44, %v6579_v28  ;;  %v1068_v28 = vld [vmem:[%s8734_s3 + $0x1f0] sm:$0xff] }
 0x20c   : > { %5209 = vmatprep.mubr.msk.f32.mxu1 %vm6181_vm0, %v6182_v39  ;;  %5492 = vmatprep.mubr.msk.f32.mxu0 %vm6181_vm0, %v6182_v39  ;;  %v759_v63 = vadd.f32 %v6513_v44, %v6670_v41  ;;  %v1069_v41 = vld [vmem:[%s8734_s3 + $0x1f8] sm:$0xff] }
 0x20d   : > { %v997_v51 = vmax.f32 %v899_v19, 0.0  ;;  %v967_v22 = vmax.f32 %v7026_v1, 0.0 }
 0x20e   : > { %v7001_v2 = vpop.f32.mrb[122].mxu0 }
 0x20f   : > { %5210 = vmatmul.mubr.msk.f32.gmra.mrb[64].mxu1 %vm1071_vm1, %v965_v3  ;;  %5493 = vmatmul.mubr.msk.f32.gmra.mrb[158].mxu0 %vm1071_vm1, %v8763_v20  ;;  %v930_v13 = vpop.f32.mrb[123].mxu0  ;;  %v8764_v3 = vmax.f32 %v6882_v60, 0.0  ;;  %v1067_v60 = vld [vmem:[%s8734_s3 + $0x1e8] sm:$0xff] }
 0x210   : > { %5212 = vmatprep.mubr.msk.f32.mxu1 %vm6181_vm0, %v6182_v39  ;;  %5495 = vmatprep.mubr.msk.f32.mxu0 %vm6181_vm0, %v6182_v39  ;;  %v1027_v20 = vld [vmem:[%s8734_s3 + $0xa8] sm:$0xff] }
 0x212   : > { %v7013_v24 = vpop.f32.mrb[124].mxu0 }
 0x213   : > { %5213 = vmatmul.mubr.msk.f32.gmra.mrb[66].mxu1 %vm1071_vm1, %v6706_v25  ;;  %5496 = vmatmul.mubr.msk.f32.gmra.mrb[160].mxu0 %vm1071_vm1, %v8764_v3  ;;  %v935_v6 = vpop.f32.mrb[125].mxu0  ;;  %v1066_v25 = vld [vmem:[%s8734_s3 + $0x1e0] sm:$0xff]  ;;  %v7072_v3 = vmax.f32 %v759_v63, 0.0 }
 0x214   : > { %5215 = vmatprep.mubr.msk.f32.mxu1 %vm6181_vm0, %v6182_v39  ;;  %5498 = vmatprep.mubr.msk.f32.mxu0 %vm6181_vm0, %v6182_v39  ;;  %v5951_v19 = vpack.c.bf16 %v1067_v60, %v1066_v25  ;;  %v769_v6 = vadd.f32 %v6513_v44, %v6674_v49  ;;  %v1028_v25 = vld [vmem:[%s8734_s3 + $0xb0] sm:$0xff]  ;;  %v1029_v60 = vld [vmem:[%s8734_s3 + $0xb8] sm:$0xff] }
 0x216   : > { %v7028_v15 = vpop.f32.mrb[126].mxu0  ;;  %v7097_v63 = vmax.f32 %v769_v6, 0.0 }
 0x217   : > { %5216 = vmatmul.mubr.msk.f32.gmra.mrb[68].mxu1 %vm1071_vm1, %v6738_v12  ;;  %5499 = vmatmul.mubr.msk.f32.gmra.mrb[162].mxu0 %vm1071_vm1, %v997_v51  ;;  %v940_v5 = vpop.f32.mrb[127].mxu0  ;;  %v1026_v12 = vld [vmem:[%s8734_s3 + $0xa0] sm:$0xff]  ;;  %v7070_v51 = vadd.f32 %v6513_v44, %v6586_v35  ;;  %v7085_v35 = vadd.f32 %v6513_v44, %v6771_v34  ;;  %v5894_v34 = vpack.c.bf16 %v1029_v60, %v1028_v25 }
 0x218   : > { %5218 = vmatprep.mubr.msk.f32.mxu1 %vm6181_vm0, %v6182_v39  ;;  %5544 = vmatprep.mubr.msk.f32.mxu0 %vm6181_vm0, %v6182_v39  ;;  %v5891_v13 = vpack.c.bf16 %v1027_v20, %v1026_v12  ;;  %v5954_v5 = vpack.c.bf16 %v1069_v41, %v1068_v28  ;;  %v839_v20 = vadd.f32 %v6513_v44, %v6784_v55 }
 0x219   : > { %v8756_v49 = vmax.f32 %v7070_v51, 0.0  ;;  %v983_v12 = vmax.f32 %v7085_v35, 0.0  ;;  %v849_v28 = vadd.f32 %v6513_v44, %v6797_v56  ;;  %v754_v41 = vadd.f32 %v6513_v44, %v6668_v36 }
 0x21a   : > { %v7121_v55 = vmax.f32 %v839_v20, 0.0  ;;  %v764_v36 = vadd.f32 %v6513_v44, %v6672_v46  ;;  %v7171_v46 = vadd.f32 %v6513_v44, %v6764_v16  ;;  %v834_v20 = vadd.f32 %v6513_v44, %v6778_v48 }
 0x21b   : > { %5219 = vmatmul.mubr.msk.f32.gmra.mrb[70].mxu1 %vm1071_vm1, %v981_v27  ;;  %5545 = vmatmul.mubr.msk.f32.vlgmr.msra.gmra.mrb[164].mxu0 %vm1071_vm1, %v967_v22  ;;  %v950_v27 = vmax.f32 %v664_v33, 0.0  ;;  %v7095_v33 = vadd.f32 %v6513_v44, %v6592_v40  ;;  %v7138_v56 = vmax.f32 %v849_v28, 0.0 }
 0x21c   : > { %5229 = vmatprep.mubr.msk.f32.mxu1 %vm6181_vm0, %v6182_v39  ;;  %5547 = vmatprep.mubr.msk.f32.mxu0 %vm6181_vm0, %v6182_v39  ;;  %v7167_v25 = vmax.f32 %v764_v36, 0.0  ;;  %v8753_v16 = vmax.f32 %v7171_v46, 0.0  ;;  %v7205_v48 = vmax.f32 %v834_v20, 0.0  ;;  %v1030_v20 = vld [vmem:[%s8734_s3 + $0xc0] sm:$0xff] }
 0x21d   : > { %5952 = vmatpush3.bf16.msra.mxu0 %v5951_v19  ;;  %v8755_v40 = vmax.f32 %v7095_v33, 0.0  ;;  %v7117_v19 = vadd.f32 %v6513_v44, %v6664_v30 }
 0x21e   : > { %5953 = vmatprep.subr.bf16.mxu0 %v8761_v52 }
 0x21f   : > { %5230 = vmatmul.mubr.msk.f32.vlgmr.msra.gmra.mrb[72].mxu1 %vm1071_vm1, %v950_v27  ;;  %5548 = vmatmul.mubr.msk.f32.gmra.mrb[166].mxu0 %vm1071_vm1, %v7072_v3  ;;  %v8754_v30 = vmax.f32 %v7117_v19, 0.0  ;;  %v7151_v27 = vmax.f32 %v754_v41, 0.0 }
 0x220   : > { %5892 = vmatpush3.bf16.msra.mxu1 %v5891_v13  ;;  %5232 = vmatprep.mubr.msk.f32.mxu1 %vm6181_vm0, %v6182_v39  ;;  %v909_v13 = vadd.f32 %v6513_v44, %v6957_v0  ;;  %v7157_v0 = vadd.f32 %v6513_v44, %v6982_v23 }
 0x221   : > { %5550 = vmatprep.mubr.msk.f32.mxu0 %vm6181_vm0, %v6182_v39  ;;  %5893 = vmatprep.subr.bf16.mxu1 %v8761_v52 }
 0x222   : > { %5955 = vmatpush3.bf16.msra.mxu0 %v5954_v5  ;;  %v999_v6 = vmax.f32 %v909_v13, 0.0  ;;  %v1001_v60 = vmax.f32 %v7157_v0, 0.0  ;;  %v7178_v5 = vadd.f32 %v6513_v44, %v7001_v2  ;;  %v844_v2 = vadd.f32 %v6513_v44, %v6790_v57  ;;  %v1037_v0 = vld [vmem:[%s8734_s3 + $0xf8] sm:$0xff] }
 0x223   : > { %5233 = vmatmul.mubr.msk.f32.gmra.mrb[74].mxu1 %vm1071_vm1, %v8756_v49  ;;  %5551 = vmatmul.mubr.msk.f32.gmra.mrb[168].mxu0 %vm1071_vm1, %v7097_v63 }
 0x224   : > { %5235 = vmatprep.mubr.msk.f32.mxu1 %vm6181_vm0, %v6182_v39  ;;  %5553 = vmatprep.mubr.msk.f32.mxu0 %vm6181_vm0, %v6182_v39  ;;  %v1003_v41 = vmax.f32 %v7178_v5, 0.0  ;;  %v7209_v36 = vmax.f32 %v844_v2, 0.0  ;;  %v1031_v2 = vld [vmem:[%s8734_s3 + $0xc8] sm:$0xff] }
 0x225   : > { %5895 = vmatpush3.bf16.msra.mxu1 %v5894_v34  ;;  %5980 = vmatprep.subr.bf16.mxu0 %v8761_v52 }
 0x226   : > { %5896 = vmatprep.subr.bf16.mxu1 %v8761_v52 }
 0x227   : > { %5236 = vmatmul.mubr.msk.f32.gmra.mrb[76].mxu1 %vm1071_vm1, %v8755_v40  ;;  %5554 = vmatmul.mubr.msk.f32.gmra.mrb[170].mxu0 %vm1071_vm1, %v983_v12  ;;  %v7245_v40 = vld [vmem:[%s8733_s2] ss:$0 sm:$0xff] }
 0x228   : > { %5238 = vmatprep.mubr.msk.f32.mxu1 %vm6181_vm0, %v6182_v39  ;;  %5556 = vmatprep.mubr.msk.f32.mxu0 %vm6181_vm0, %v6182_v39 }
 0x22b   : > { %5239 = vmatmul.mubr.msk.f32.gmra.mrb[78].mxu1 %vm1071_vm1, %v8754_v30  ;;  %5557 = vmatmul.mubr.msk.f32.gmra.mrb[172].mxu0 %vm1071_vm1, %v7121_v55  ;;  %v7240_v30 = vadd.f32 %v6513_v44, %v6590_v37 }
 0x22c   : > { %5241 = vmatprep.mubr.msk.f32.mxu1 %vm6181_vm0, %v6182_v39  ;;  %5559 = vmatprep.mubr.msk.f32.mxu0 %vm6181_vm0, %v6182_v39 }
 0x22f   : > { %5242 = vmatmul.mubr.msk.f32.gmra.mrb[80].mxu1 %vm1071_vm1, %v7151_v27  ;;  %5560 = vmatmul.mubr.msk.f32.gmra.mrb[174].mxu0 %vm1071_vm1, %v7138_v56 }
 0x230   : > { %5244 = vmatprep.mubr.msk.f32.mxu1 %vm6181_vm0, %v6182_v39  ;;  %5562 = vmatprep.mubr.msk.f32.mxu0 %vm6181_vm0, %v6182_v39 }
 0x232   : > { %v7173_v23 = vpop.f32.mrb[6].mxu1 }
 0x233   : > { %v5100_v34 = vpop.f32.mrb[7].mxu1  ;;  %5245 = vmatmul.mubr.msk.f32.gmra.mrb[82].mxu1 %vm1071_vm1, %v7167_v25  ;;  %5563 = vmatmul.mubr.msk.f32.gmra.mrb[176].mxu0 %vm1071_vm1, %v999_v6 }
 0x234   : > { %5247 = vmatprep.mubr.msk.f32.mxu1 %vm6181_vm0, %v6182_v39  ;;  %5565 = vmatprep.mubr.msk.f32.mxu0 %vm6181_vm0, %v6182_v39  ;;  %v669_v34 = vadd.f32 %v6513_v44, %v6583_v32  ;;  %v5897_v32 = vpack.c.bf16 %v1031_v2, %v1030_v20  ;;  %v1032_v20 = vld [vmem:[%s8734_s3 + $0xd0] sm:$0xff]  ;;  %v1033_v44 = vld [vmem:[%s8734_s3 + $0xd8] sm:$0xff] }
 0x236   : > { %v7190_v28 = vpop.f32.mrb[128].mxu0 }
 0x237   : > { %5248 = vmatmul.mubr.msk.f32.gmra.mrb[84].mxu1 %vm1071_vm1, %v8753_v16  ;;  %v5406_v13 = vpop.f32.mrb[129].mxu0  ;;  %5566 = vmatmul.mubr.msk.f32.gmra.mrb[178].mxu0 %vm1071_vm1, %v1001_v60  ;;  %v951_v16 = vmax.f32 %v669_v34, 0.0  ;;  %v7267_v34 = vadd.f32 %v7245_v40, %v6594_v42 }
 0x238   : > { %5250 = vmatprep.mubr.msk.f32.mxu1 %vm6181_vm0, %v6182_v39  ;;  %5568 = vmatprep.mubr.msk.f32.mxu0 %vm6181_vm0, %v6182_v39 }
 0x239   : > { %v955_v42 = vmax.f32 %v7267_v34, 0.0 }
 0x23a   : > { %v7207_v57 = vpop.f32.mrb[8].mxu1 }
 0x23b   : > { %v5103_v6 = vpop.f32.mrb[9].mxu1  ;;  %5251 = vmatmul.mubr.msk.f32.gmra.mrb[86].mxu1 %vm1071_vm1, %v7205_v48  ;;  %5569 = vmatmul.mubr.msk.f32.gmra.mrb[180].mxu0 %vm1071_vm1, %v1003_v41 }
 0x23c   : > { %5253 = vmatprep.mubr.msk.f32.mxu1 %vm6181_vm0, %v6182_v39  ;;  %5614 = vmatprep.mubr.msk.f32.mxu0 %vm6181_vm0, %v6182_v39 }
 0x23e   : > { %v7228_v13 = vpop.f32.mrb[130].mxu0 }
 0x23f   : > { %5254 = vmatmul.mubr.msk.f32.gmra.mrb[88].mxu1 %vm1071_vm1, %v7209_v36  ;;  %v5409_v6 = vpop.f32.mrb[131].mxu0  ;;  %5615 = vmatmul.mubr.msk.f32.vlgmr.msra.gmra.mrb[182].mxu0 %vm1071_vm1, %v7072_v3 }
 0x240   : > { %5264 = vmatprep.mubr.msk.f32.mxu1 %vm6181_vm0, %v6182_v39  ;;  %5617 = vmatprep.mubr.msk.f32.mxu0 %vm6181_vm0, %v6182_v39  ;;  %v7249_v6 = vadd.f32 %v7245_v40, %v6678_v58  ;;  %v953_v58 = vmax.f32 %v7240_v30, 0.0 }
 0x242   : > { %v7251_v49 = vpop.f32.mrb[10].mxu1  ;;  %v8759_v2 = vmax.f32 %v7249_v6, 0.0 }
 0x243   : > { %v5106_v37 = vpop.f32.mrb[11].mxu1  ;;  %5265 = vmatmul.mubr.msk.f32.vlgmr.msra.gmra.mrb[90].mxu1 %vm1071_vm1, %v951_v16  ;;  %5618 = vmatmul.mubr.msk.f32.gmra.mrb[184].mxu0 %vm1071_vm1, %v7097_v63  ;;  %v5900_v16 = vpack.c.bf16 %v1033_v44, %v1032_v20  ;;  %v7289_v20 = vadd.f32 %v7245_v40, %v6821_v31  ;;  %v939_v31 = vadd.f32 %v7245_v40, %v7028_v15  ;;  %v1034_v15 = vld [vmem:[%s8734_s3 + $0xe0] sm:$0xff] }
 0x244   : > { %5898 = vmatpush3.bf16.msra.mxu1 %v5897_v32  ;;  %5267 = vmatprep.mubr.msk.f32.mxu1 %vm6181_vm0, %v6182_v39 }
 0x245   : > { %5620 = vmatprep.mubr.msk.f32.mxu0 %vm6181_vm0, %v6182_v39  ;;  %5899 = vmatprep.subr.bf16.mxu1 %v8761_v52  ;;  %v8758_v44 = vmax.f32 %v7289_v20, 0.0  ;;  %v1005_v1 = vmax.f32 %v939_v31, 0.0 }
 0x246   : > { %v7273_v37 = vpop.f32.mrb[132].mxu0 }
 0x247   : > { %5268 = vmatmul.mubr.msk.f32.gmra.mrb[92].mxu1 %vm1071_vm1, %v953_v58  ;;  %v5412_v32 = vpop.f32.mrb[133].mxu0  ;;  %5621 = vmatmul.mubr.msk.f32.gmra.mrb[186].mxu0 %vm1071_vm1, %v8759_v2  ;;  %v1040_v2 = vld [vmem:[%s8734_s3 + $0x110] sm:$0xff] }
 0x248   : > { %5270 = vmatprep.mubr.msk.f32.mxu1 %vm6181_vm0, %v6182_v39  ;;  %5623 = vmatprep.mubr.msk.f32.mxu0 %vm6181_vm0, %v6182_v39 }
 0x249   : > { %5901 = vmatpush3.bf16.msra.mxu1 %v5900_v16  ;;  %v8766_v16 = vmax.f32 %v7095_v33, 0.0  ;;  %v7388_v33 = vadd.f32 %v7245_v40, %v6676_v53 }
 0x24a   : > { %5902 = vmatprep.subr.bf16.mxu1 %v8761_v52 }
 0x24b   : > { %5271 = vmatmul.mubr.msk.f32.gmra.mrb[94].mxu1 %vm1071_vm1, %v955_v42  ;;  %5624 = vmatmul.mubr.msk.f32.gmra.mrb[188].mxu0 %vm1071_vm1, %v7121_v55 }
 0x24c   : > { %5273 = vmatprep.mubr.msk.f32.mxu1 %vm6181_vm0, %v6182_v39  ;;  %5626 = vmatprep.mubr.msk.f32.mxu0 %vm6181_vm0, %v6182_v39 }
 0x24f   : > { %5274 = vmatmul.mubr.msk.f32.gmra.mrb[96].mxu1 %vm1071_vm1, %v967_v22  ;;  %5627 = vmatmul.mubr.msk.f32.gmra.mrb[190].mxu0 %vm1071_vm1, %v7138_v56  ;;  %v1035_v22 = vld [vmem:[%s8734_s3 + $0xe8] sm:$0xff] }
 0x250   : > { %5276 = vmatprep.mubr.msk.f32.mxu1 %vm6181_vm0, %v6182_v39  ;;  %5629 = vmatprep.mubr.msk.f32.mxu0 %vm6181_vm0, %v6182_v39  ;;  %v5903_v35 = vpack.c.bf16 %v1035_v22, %v1034_v15  ;;  %v8757_v15 = vmax.f32 %v7388_v33, 0.0 }
 0x253   : > { %5277 = vmatmul.mubr.msk.f32.gmra.mrb[98].mxu1 %vm1071_vm1, %v7072_v3  ;;  %5630 = vmatmul.mubr.msk.f32.gmra.mrb[192].mxu0 %vm1071_vm1, %v8758_v44 }
 0x254   : > { %5279 = vmatprep.mubr.msk.f32.mxu1 %vm6181_vm0, %v6182_v39  ;;  %5632 = vmatprep.mubr.msk.f32.mxu0 %vm6181_vm0, %v6182_v39 }
 0x257   : > { %5280 = vmatmul.mubr.msk.f32.gmra.mrb[100].mxu1 %vm1071_vm1, %v7097_v63  ;;  %5633 = vmatmul.mubr.msk.f32.gmra.mrb[194].mxu0 %vm1071_vm1, %v1001_v60  ;;  %v8765_v60 = vmax.f32 %v7070_v51, 0.0 }
 0x258   : > { %5282 = vmatprep.mubr.msk.f32.mxu1 %vm6181_vm0, %v6182_v39  ;;  %5635 = vmatprep.mubr.msk.f32.mxu0 %vm6181_vm0, %v6182_v39 }
 0x25b   : > { %5283 = vmatmul.mubr.msk.f32.gmra.mrb[102].mxu1 %vm1071_vm1, %v983_v12  ;;  %5636 = vmatmul.mubr.msk.f32.gmra.mrb[196].mxu0 %vm1071_vm1, %v1003_v41  ;;  %v1036_v12 = vld [vmem:[%s8734_s3 + $0xf0] sm:$0xff]  ;;  %v694_v41 = vadd.f32 %v7245_v40, %v6596_v45 }
 0x25c   : > { %5285 = vmatprep.mubr.msk.f32.mxu1 %vm6181_vm0, %v6182_v39  ;;  %5638 = vmatprep.mubr.msk.f32.mxu0 %vm6181_vm0, %v6182_v39  ;;  %v5906_v5 = vpack.c.bf16 %v1037_v0, %v1036_v12  ;;  %v7408_v12 = vadd.f32 %v7245_v40, %v6809_v10  ;;  %v1038_v10 = vld [vmem:[%s8734_s3 + $0x100] sm:$0xff] }
 0x25d   : > { %v956_v51 = vmax.f32 %v694_v41, 0.0 }
 0x25f   : > { %5286 = vmatmul.mubr.msk.f32.gmra.mrb[104].mxu1 %vm1071_vm1, %v7121_v55  ;;  %5639 = vmatmul.mubr.msk.f32.gmra.mrb[198].mxu0 %vm1071_vm1, %v1005_v1 }
 0x260   : > { %5288 = vmatprep.mubr.msk.f32.mxu1 %vm6181_vm0, %v6182_v39  ;;  %5695 = vmatprep.mubr.msk.f32.mxu0 %vm6181_vm0, %v6182_v39 }
 0x263   : > { %5289 = vmatmul.mubr.msk.f32.gmra.mrb[106].mxu1 %vm1071_vm1, %v7138_v56 }
 0x264   : > { %5299 = vmatprep.mubr.msk.f32.mxu1 %vm6181_vm0, %v6182_v39 }
 0x267   : > { %5300 = vmatmul.mubr.msk.f32.vlgmr.msra.gmra.mrb[108].mxu1 %vm1071_vm1, %v8765_v60 }
 0x268   : > { %5904 = vmatpush3.bf16.msra.mxu1 %v5903_v35  ;;  %5302 = vmatprep.mubr.msk.f32.mxu1 %vm6181_vm0, %v6182_v39 }
 0x269   : > { %5905 = vmatprep.subr.bf16.mxu1 %v8761_v52 }
 0x26b   : > { %5303 = vmatmul.mubr.msk.f32.gmra.mrb[110].mxu1 %vm1071_vm1, %v8766_v16  ;;  %v1039_v16 = vld [vmem:[%s8734_s3 + $0x108] sm:$0xff] }
 0x26c   : > { %5305 = vmatprep.mubr.msk.f32.mxu1 %vm6181_vm0, %v6182_v39  ;;  %5907 = vmatpush3.bf16.msra.mxu1 %v5906_v5  ;;  %v988_v5 = vmax.f32 %v7408_v12, 0.0  ;;  %v5909_v44 = vpack.c.bf16 %v1039_v16, %v1038_v10 }
 0x26d   : > { %5908 = vmatprep.subr.bf16.mxu1 %v8761_v52 }
 0x26f   : > { %5306 = vmatmul.mubr.msk.f32.gmra.mrb[112].mxu1 %vm1071_vm1, %v956_v51 }
 0x270   : > { %5308 = vmatprep.mubr.msk.f32.mxu1 %vm6181_vm0, %v6182_v39 }
 0x272   : > { %v7380_v32 = vpop.f32.mrb[12].mxu1 }
 0x273   : > { %v5109_v45 = vpop.f32.mrb[13].mxu1  ;;  %5309 = vmatmul.mubr.msk.f32.gmra.mrb[114].mxu1 %vm1071_vm1, %v7151_v27 }
 0x274   : > { %5311 = vmatprep.mubr.msk.f32.mxu1 %vm6181_vm0, %v6182_v39 }
 0x276   : > { %v7390_v31 = vpop.f32.mrb[134].mxu0 }
 0x277   : > { %5312 = vmatmul.mubr.msk.f32.gmra.mrb[116].mxu1 %vm1071_vm1, %v7167_v25  ;;  %v5415_v1 = vpop.f32.mrb[135].mxu0 }
 0x278   : > { %5314 = vmatprep.mubr.msk.f32.mxu1 %vm6181_vm0, %v6182_v39  ;;  %v3025_v1 = vsel %vm3024_vm2, %v6889_v11, 0.0  ;;  %v1041_v11 = vld [vmem:[%s8734_s3 + $0x118] sm:$0xff] }
 0x279   : > { %v5912_v16 = vpack.c.bf16 %v1041_v11, %v1040_v2 }
 0x27a   : > { %v7397_v22 = vpop.f32.mrb[14].mxu1 }
 0x27b   : > { %v5112_v35 = vpop.f32.mrb[15].mxu1  ;;  %5315 = vmatmul.mubr.msk.f32.gmra.mrb[118].mxu1 %vm1071_vm1, %v8757_v15 }
 0x27c   : > { %5317 = vmatprep.mubr.msk.f32.mxu1 %vm6181_vm0, %v6182_v39 }
 0x27e   : > { %v7404_v53 = vpop.f32.mrb[136].mxu0 }
 0x27f   : > { %5318 = vmatmul.mubr.msk.f32.gmra.mrb[120].mxu1 %vm1071_vm1, %v7205_v48  ;;  %v5418_v0 = vpop.f32.mrb[137].mxu0 }
 0x280   : > { %5320 = vmatprep.mubr.msk.f32.mxu1 %vm6181_vm0, %v6182_v39 }
 0x282   : > { %v7414_v60 = vpop.f32.mrb[16].mxu1 }
 0x283   : > { %v5115_v41 = vpop.f32.mrb[17].mxu1  ;;  %5321 = vmatmul.mubr.msk.f32.gmra.mrb[122].mxu1 %vm1071_vm1, %v7209_v36 }
 0x284   : > { %5323 = vmatprep.mubr.msk.f32.mxu1 %vm6181_vm0, %v6182_v39 }
 0x286   : > { %v1302_v51 = vpop.f32.mrb[18].mxu1  ;;  %v7427_v45 = vpop.f32.mrb[138].mxu0 }
 0x287   : > { %v3026_v35 = vsel %vm3024_vm2, %v1302_v51, 0.0  ;;  %v5126_v0 = vpop.f32.mrb[19].mxu1  ;;  %5324 = vmatmul.mubr.msk.f32.gmra.mrb[124].mxu1 %vm1071_vm1, %v988_v5  ;;  %v5421_v41 = vpop.f32.mrb[139].mxu0 }
 0x288   : > { %v7435_v15 = vadd.f32 %v3026_v35, %v3025_v1  ;;  %5334 = vmatprep.mubr.msk.f32.mxu1 %vm6181_vm0, %v6182_v39  ;;  %v3056_v0 = vsel %vm3024_vm2, %v6934_v26, 0.0  ;;  %v699_v35 = vadd.f32 %v7245_v40, %v6598_v47 }
 0x28a   : > { %v1307_v51 = vpop.f32.mrb[20].mxu1  ;;  %v957_v47 = vmax.f32 %v699_v35, 0.0 }
 0x28b   : > { %v3057_v41 = vsel %vm3024_vm2, %v1307_v51, 0.0  ;;  %v5129_v1 = vpop.f32.mrb[21].mxu1  ;;  %5335 = vmatmul.mubr.msk.f32.vlgmr.msra.gmra.mrb[126].mxu1 %vm1071_vm1, %v953_v58  ;;  %v3087_v51 = vsel %vm3024_vm2, %v6968_v29, 0.0  ;;  %v3118_v29 = vsel %vm3024_vm2, %v7173_v23, 0.0 }
 0x28c   : > { %v7451_v10 = vadd.f32 %v3057_v41, %v3056_v0  ;;  %5910 = vmatpush3.bf16.msra.mxu1 %v5909_v44  ;;  %5337 = vmatprep.mubr.msk.f32.mxu1 %vm6181_vm0, %v6182_v39  ;;  %v3149_v0 = vsel %vm3024_vm2, %v7207_v57, 0.0 }
 0x28d   : > { %5911 = vmatprep.subr.bf16.mxu1 %v8761_v52 }
 0x28e   : > { %v1312_v26 = vpop.f32.mrb[22].mxu1 }
 0x28f   : > { %v3088_v30 = vsel %vm3024_vm2, %v1312_v26, 0.0  ;;  %v5132_v1 = vpop.f32.mrb[23].mxu1  ;;  %5338 = vmatmul.mubr.msk.f32.gmra.mrb[128].mxu1 %vm1071_vm1, %v955_v42  ;;  %v3180_v26 = vsel %vm3024_vm2, %v7251_v49, 0.0  ;;  %v8767_v49 = vmax.f32 %v7249_v6, 0.0 }
 0x290   : > { %v7464_v58 = vadd.f32 %v3088_v30, %v3087_v51  ;;  %5340 = vmatprep.mubr.msk.f32.mxu1 %vm6181_vm0, %v6182_v39  ;;  %5913 = vmatpush3.bf16.msra.mxu1 %v5912_v16  ;;  %v3211_v1 = vsel %vm3024_vm2, %v7380_v32, 0.0 }
 0x291   : > { %5920 = vmatprep.subr.bf16.mxu1 %v8761_v52 }
 0x292   : > { %v1317_v2 = vpop.f32.mrb[24].mxu1 }
 0x293   : > { %v3119_v44 = vsel %vm3024_vm2, %v1317_v2, 0.0  ;;  %v5135_v11 = vpop.f32.mrb[25].mxu1  ;;  %5341 = vmatmul.mubr.msk.f32.gmra.mrb[130].mxu1 %vm1071_vm1, %v957_v47 }
 0x294   : > { %v7473_v34 = vadd.f32 %v3119_v44, %v3118_v29  ;;  %5343 = vmatprep.mubr.msk.f32.mxu1 %vm6181_vm0, %v6182_v39  ;;  %v3242_v44 = vsel %vm3024_vm2, %v7397_v22, 0.0 }
 0x296   : > { %v1322_v42 = vpop.f32.mrb[26].mxu1 }
 0x297   : > { %v3150_v41 = vsel %vm3024_vm2, %v1322_v42, 0.0  ;;  %v5138_v16 = vpop.f32.mrb[27].mxu1  ;;  %5344 = vmatmul.mubr.msk.f32.gmra.mrb[132].mxu1 %vm1071_vm1, %v7072_v3 }
 0x298   : > { %v7482_v23 = vadd.f32 %v3150_v41, %v3149_v0  ;;  %5346 = vmatprep.mubr.msk.f32.mxu1 %vm6181_vm0, %v6182_v39  ;;  %v3273_v0 = vsel %vm3024_vm2, %v7414_v60, 0.0 }
 0x29a   : > { %v1327_v35 = vpop.f32.mrb[28].mxu1 }
 0x29b   : > { %v3181_v51 = vsel %vm3024_vm2, %v1327_v35, 0.0  ;;  %v5141_v30 = vpop.f32.mrb[29].mxu1  ;;  %5347 = vmatmul.mubr.msk.f32.gmra.mrb[134].mxu1 %vm1071_vm1, %v7097_v63  ;;  %v1047_v35 = vld [vmem:[%s8734_s3 + $0x148] sm:$0xff] }
 0x29c   : > { %v7491_v57 = vadd.f32 %v3181_v51, %v3180_v26  ;;  %5349 = vmatprep.mubr.msk.f32.mxu1 %vm6181_vm0, %v6182_v39  ;;  %v8768_v30 = vmax.f32 %v7289_v20, 0.0 }
 0x29e   : > { %v1332_v3 = vpop.f32.mrb[30].mxu1 }
 0x29f   : > { %v3212_v47 = vsel %vm3024_vm2, %v1332_v3, 0.0  ;;  %v5144_v2 = vpop.f32.mrb[31].mxu1  ;;  %5350 = vmatmul.mubr.msk.f32.gmra.mrb[136].mxu1 %vm1071_vm1, %v8767_v49 }
 0x2a0   : > { %v7501_v29 = vadd.f32 %v3212_v47, %v3211_v1  ;;  %5352 = vmatprep.mubr.msk.f32.mxu1 %vm6181_vm0, %v6182_v39  ;;  %v1048_v1 = vld [vmem:[%s8734_s3 + $0x150] sm:$0xff]  ;;  %v1049_v47 = vld [vmem:[%s8734_s3 + $0x158] sm:$0xff] }
 0x2a2   : > { %v1337_v63 = vpop.f32.mrb[32].mxu1 }
 0x2a3   : > { %v3243_v11 = vsel %vm3024_vm2, %v1337_v63, 0.0  ;;  %v5147_v42 = vpop.f32.mrb[33].mxu1  ;;  %5353 = vmatmul.mubr.msk.f32.gmra.mrb[138].mxu1 %vm1071_vm1, %v7121_v55  ;;  %v1046_v55 = vld [vmem:[%s8734_s3 + $0x140] sm:$0xff]  ;;  %v8769_v63 = vmax.f32 %v6601_v50, 0.0 }
 0x2a4   : > { %v7510_v32 = vadd.f32 %v3243_v11, %v3242_v44  ;;  %5355 = vmatprep.mubr.msk.f32.mxu1 %vm6181_vm0, %v6182_v39  ;;  %v5921_v3 = vpack.c.bf16 %v1047_v35, %v1046_v55  ;;  %v5924_v44 = vpack.c.bf16 %v1049_v47, %v1048_v1 }
 0x2a6   : > { %v1342_v6 = vpop.f32.mrb[34].mxu1 }
 0x2a7   : > { %v3274_v41 = vsel %vm3024_vm2, %v1342_v6, 0.0  ;;  %v5150_v16 = vpop.f32.mrb[35].mxu1  ;;  %5356 = vmatmul.mubr.msk.f32.gmra.mrb[140].mxu1 %vm1071_vm1, %v7138_v56 }
 0x2a8   : > { %v7519_v22 = vadd.f32 %v3274_v41, %v3273_v0  ;;  %5358 = vmatprep.mubr.msk.f32.mxu1 %vm6181_vm0, %v6182_v39 }
 0x2aa   : > { %v1421_v60 = vpop.f32.mrb[36].mxu1 }
 0x2ab   : > { %v3028_v26 = vsel %vm3024_vm2, %v1421_v60, 0.0  ;;  %v5161_v51 = vpop.f32.mrb[37].mxu1  ;;  %5359 = vmatmul.mubr.msk.f32.gmra.mrb[142].mxu1 %vm1071_vm1, %v8768_v30 }
 0x2ac   : > { %v7534_v56 = vadd.f32 %v3028_v26, %v7435_v15  ;;  %5369 = vmatprep.mubr.msk.f32.mxu1 %vm6181_vm0, %v6182_v39  ;;  %v8770_v51 = vmax.f32 %v6681_v62, 0.0 }
 0x2ae   : > { %v1426_v2 = vpop.f32.mrb[38].mxu1 }
 0x2af   : > { %v3059_v20 = vsel %vm3024_vm2, %v1426_v2, 0.0  ;;  %v5164_v49 = vpop.f32.mrb[39].mxu1  ;;  %5370 = vmatmul.mubr.msk.f32.vlgmr.msra.gmra.mrb[144].mxu1 %vm1071_vm1, %v8769_v63 }
 0x2b0   : > { %v7549_v15 = vadd.f32 %v3059_v20, %v7451_v10  ;;  %5922 = vmatpush3.bf16.msra.mxu1 %v5921_v3  ;;  %5372 = vmatprep.mubr.msk.f32.mxu1 %vm6181_vm0, %v6182_v39 }
 0x2b1   : > { %5923 = vmatprep.subr.bf16.mxu1 %v8761_v52 }
 0x2b2   : > { %v1431_v11 = vpop.f32.mrb[40].mxu1 }
 0x2b3   : > { %v3090_v42 = vsel %vm3024_vm2, %v1431_v11, 0.0  ;;  %v5167_v6 = vpop.f32.mrb[41].mxu1  ;;  %5373 = vmatmul.mubr.msk.f32.gmra.mrb[146].mxu1 %vm1071_vm1, %v6619_v61  ;;  %v7604_v11 = vadd.f32 %v7245_v40, %v6843_v7  ;;  %v7618_v7 = vadd.f32 %v7245_v40, %v6865_v54 }
 0x2b4   : > { %v7558_v50 = vadd.f32 %v3090_v42, %v7464_v58  ;;  %5375 = vmatprep.mubr.msk.f32.mxu1 %vm6181_vm0, %v6182_v39  ;;  %5925 = vmatpush3.bf16.msra.mxu1 %v5924_v44 }
 0x2b5   : > { %5932 = vmatprep.subr.bf16.mxu1 %v8761_v52  ;;  %v994_v54 = vmax.f32 %v7618_v7, 0.0 }
 0x2b6   : > { %v1436_v10 = vpop.f32.mrb[42].mxu1  ;;  %v7563_v0 = vpop.f32.mrb[140].mxu0 }
 0x2b7   : > { %v3121_v41 = vsel %vm3024_vm2, %v1436_v10, 0.0  ;;  %v5170_v16 = vpop.f32.mrb[43].mxu1  ;;  %5376 = vmatmul.mubr.msk.f32.gmra.mrb[148].mxu1 %vm1071_vm1, %v6633_v9  ;;  %v5424_v55 = vpop.f32.mrb[141].mxu0 }
 0x2b8   : > { %v7569_v35 = vadd.f32 %v3121_v41, %v7473_v34  ;;  %5378 = vmatprep.mubr.msk.f32.mxu1 %vm6181_vm0, %v6182_v39  ;;  %v992_v16 = vmax.f32 %v7604_v11, 0.0 }
 0x2ba   : > { %v1441_v58 = vpop.f32.mrb[44].mxu1 }
 0x2bb   : > { %v3152_v60 = vsel %vm3024_vm2, %v1441_v58, 0.0  ;;  %v5173_v26 = vpop.f32.mrb[45].mxu1  ;;  %5379 = vmatmul.mubr.msk.f32.gmra.mrb[150].mxu1 %vm1071_vm1, %v8770_v51 }
 0x2bc   : > { %v7578_v30 = vadd.f32 %v3152_v60, %v7482_v23  ;;  %5381 = vmatprep.mubr.msk.f32.mxu1 %vm6181_vm0, %v6182_v39  ;;  %v864_v23 = vadd.f32 %v7245_v40, %v6831_v59 }
 0x2be   : > { %v1446_v3 = vpop.f32.mrb[46].mxu1  ;;  %v7582_v34 = vpop.f32.mrb[142].mxu0 }
 0x2bf   : > { %v3183_v1 = vsel %vm3024_vm2, %v1446_v3, 0.0  ;;  %v5176_v47 = vpop.f32.mrb[47].mxu1  ;;  %5382 = vmatmul.mubr.msk.f32.gmra.mrb[152].mxu1 %vm1071_vm1, %v6699_v17  ;;  %v5427_v2 = vpop.f32.mrb[143].mxu0  ;;  %v1054_v3 = vld [vmem:[%s8734_s3 + $0x180] sm:$0xff] }
 0x2c0   : > { %v7588_v62 = vadd.f32 %v3183_v1, %v7491_v57  ;;  %5384 = vmatprep.mubr.msk.f32.mxu1 %vm6181_vm0, %v6182_v39  ;;  %v990_v57 = vmax.f32 %v864_v23, 0.0  ;;  %v1055_v1 = vld [vmem:[%s8734_s3 + $0x188] sm:$0xff] }
 0x2c2   : > { %v1451_v20 = vpop.f32.mrb[48].mxu1 }
 0x2c3   : > { %v3214_v49 = vsel %vm3024_vm2, %v1451_v20, 0.0  ;;  %v5179_v63 = vpop.f32.mrb[49].mxu1  ;;  %5385 = vmatmul.mubr.msk.f32.gmra.mrb[154].mxu1 %vm1071_vm1, %v6715_v38 }
 0x2c4   : > { %v7598_v44 = vadd.f32 %v3214_v49, %v7501_v29  ;;  %5387 = vmatprep.mubr.msk.f32.mxu1 %vm6181_vm0, %v6182_v39  ;;  %v5933_v63 = vpack.c.bf16 %v1055_v1, %v1054_v3 }
 0x2c6   : > { %v1456_v42 = vpop.f32.mrb[50].mxu1  ;;  %v7606_v59 = vpop.f32.mrb[144].mxu0 }
 0x2c7   : > { %v3245_v6 = vsel %vm3024_vm2, %v1456_v42, 0.0  ;;  %v5182_v10 = vpop.f32.mrb[51].mxu1  ;;  %5388 = vmatmul.mubr.msk.f32.gmra.mrb[156].mxu1 %vm1071_vm1, %v990_v57  ;;  %v5430_v41 = vpop.f32.mrb[145].mxu0  ;;  %v1056_v57 = vld [vmem:[%s8734_s3 + $0x190] sm:$0xff]  ;;  %v1057_v42 = vld [vmem:[%s8734_s3 + $0x198] sm:$0xff] }
 0x2c8   : > { %v7611_v29 = vadd.f32 %v3245_v6, %v7510_v32  ;;  %5390 = vmatprep.mubr.msk.f32.mxu1 %vm6181_vm0, %v6182_v39 }
 0x2ca   : > { %v1461_v55 = vpop.f32.mrb[52].mxu1  ;;  %v7620_v58 = vpop.f32.mrb[146].mxu0 }
 0x2cb   : > { %v3276_v60 = vsel %vm3024_vm2, %v1461_v55, 0.0  ;;  %v5185_v26 = vpop.f32.mrb[53].mxu1  ;;  %5391 = vmatmul.mubr.msk.f32.gmra.mrb[158].mxu1 %vm1071_vm1, %v992_v16  ;;  %v5476_v32 = vpop.f32.mrb[147].mxu0 }
 0x2cc   : > { %v7627_v51 = vadd.f32 %v3276_v60, %v7519_v22  ;;  %5393 = vmatprep.mubr.msk.f32.mxu1 %vm6181_vm0, %v6182_v39  ;;  %v5936_v26 = vpack.c.bf16 %v1057_v42, %v1056_v57  ;;  %v8771_v57 = vmax.f32 %v6854_v8, 0.0 }
 0x2ce   : > { %v1540_v47 = vpop.f32.mrb[54].mxu1  ;;  %v7638_v2 = vpop.f32.mrb[148].mxu0 }
 0x2cf   : > { %v3030_v23 = vsel %vm3024_vm2, %v1540_v47, 0.0  ;;  %v5196_v22 = vpop.f32.mrb[55].mxu1  ;;  %5394 = vmatmul.mubr.msk.f32.gmra.mrb[160].mxu1 %vm1071_vm1, %v994_v54  ;;  %v5479_v20 = vpop.f32.mrb[149].mxu0 }
 0x2d0   : > { %v7645_v49 = vadd.f32 %v3030_v23, %v7534_v56  ;;  %5439 = vmatprep.mubr.msk.f32.mxu1 %vm6181_vm0, %v6182_v39 }
 0x2d2   : > { %v1545_v6 = vpop.f32.mrb[56].mxu1  ;;  %v7655_v10 = vpop.f32.mrb[150].mxu0 }
 0x2d3   : > { %v3061_v41 = vsel %vm3024_vm2, %v1545_v6, 0.0  ;;  %v5199_v55 = vpop.f32.mrb[57].mxu1  ;;  %5440 = vmatmul.mubr.msk.f32.vlgmr.msra.gmra.mrb[162].mxu1 %vm1071_vm1, %v6619_v61  ;;  %v5482_v56 = vpop.f32.mrb[151].mxu0 }
 0x2d4   : > { %v7661_v60 = vadd.f32 %v3061_v41, %v7549_v15  ;;  %5934 = vmatpush3.bf16.msra.mxu1 %v5933_v63  ;;  %5442 = vmatprep.mubr.msk.f32.mxu1 %vm6181_vm0, %v6182_v39 }
 0x2d5   : > { %5935 = vmatprep.subr.bf16.mxu1 %v8761_v52 }
 0x2d6   : > { %v1550_v32 = vpop.f32.mrb[58].mxu1  ;;  %v7666_v3 = vpop.f32.mrb[152].mxu0 }
 0x2d7   : > { %v3092_v1 = vsel %vm3024_vm2, %v1550_v32, 0.0  ;;  %v5202_v47 = vpop.f32.mrb[59].mxu1  ;;  %5443 = vmatmul.mubr.msk.f32.gmra.mrb[164].mxu1 %vm1071_vm1, %v6633_v9  ;;  %v5485_v61 = vpop.f32.mrb[153].mxu0 }
 0x2d8   : > { %v7672_v15 = vadd.f32 %v3092_v1, %v7558_v50  ;;  %5445 = vmatprep.mubr.msk.f32.mxu1 %vm6181_vm0, %v6182_v39  ;;  %5937 = vmatpush3.bf16.msra.mxu1 %v5936_v26 }
 0x2d9   : > { %5944 = vmatprep.subr.bf16.mxu1 %v8761_v52 }
 0x2da   : > { %v1555_v23 = vpop.f32.mrb[60].mxu1  ;;  %v7677_v22 = vpop.f32.mrb[154].mxu0 }
 0x2db   : > { %v3123_v20 = vsel %vm3024_vm2, %v1555_v23, 0.0  ;;  %v5205_v63 = vpop.f32.mrb[61].mxu1  ;;  %5446 = vmatmul.mubr.msk.f32.gmra.mrb[166].mxu1 %vm1071_vm1, %v8771_v57  ;;  %v5488_v9 = vpop.f32.mrb[155].mxu0 }
 0x2dc   : > { %v7684_v50 = vadd.f32 %v3123_v20, %v7569_v35  ;;  %5448 = vmatprep.mubr.msk.f32.mxu1 %vm6181_vm0, %v6182_v39  ;;  %v8772_v63 = vmax.f32 %v6879_v4, 0.0 }
 0x2de   : > { %v1560_v42 = vpop.f32.mrb[62].mxu1  ;;  %v7688_v6 = vpop.f32.mrb[156].mxu0 }
 0x2df   : > { %v3154_v41 = vsel %vm3024_vm2, %v1560_v42, 0.0  ;;  %v5208_v55 = vpop.f32.mrb[63].mxu1  ;;  %5449 = vmatmul.mubr.msk.f32.gmra.mrb[168].mxu1 %vm1071_vm1, %v6699_v17  ;;  %v5491_v56 = vpop.f32.mrb[157].mxu0 }
 0x2e0   : > { %v7694_v8 = vadd.f32 %v3154_v41, %v7578_v30  ;;  %5451 = vmatprep.mubr.msk.f32.mxu1 %vm6181_vm0, %v6182_v39 }
 0x2e2   : > { %v1565_v35 = vpop.f32.mrb[64].mxu1  ;;  %v7698_v26 = vpop.f32.mrb[158].mxu0 }
 0x2e3   : > { %v3185_v32 = vsel %vm3024_vm2, %v1565_v35, 0.0  ;;  %v5211_v1 = vpop.f32.mrb[65].mxu1  ;;  %5452 = vmatmul.mubr.msk.f32.gmra.mrb[170].mxu1 %vm1071_vm1, %v6715_v38  ;;  %v5494_v47 = vpop.f32.mrb[159].mxu0 }
 0x2e4   : > { %v7704_v61 = vadd.f32 %v3185_v32, %v7588_v62  ;;  %5454 = vmatprep.mubr.msk.f32.mxu1 %vm6181_vm0, %v6182_v39  ;;  %v1063_v47 = vld [vmem:[%s8734_s3 + $0x1c8] sm:$0xff] }
 0x2e6   : > { %v1570_v17 = vpop.f32.mrb[66].mxu1  ;;  %v7708_v30 = vpop.f32.mrb[160].mxu0 }
 0x2e7   : > { %v3216_v23 = vsel %vm3024_vm2, %v1570_v17, 0.0  ;;  %v5214_v20 = vpop.f32.mrb[67].mxu1  ;;  %5455 = vmatmul.mubr.msk.f32.gmra.mrb[172].mxu1 %vm1071_vm1, %v8772_v63  ;;  %v5497_v57 = vpop.f32.mrb[161].mxu0 }
 0x2e8   : > { %v7715_v38 = vadd.f32 %v3216_v23, %v7598_v44  ;;  %5457 = vmatprep.mubr.msk.f32.mxu1 %vm6181_vm0, %v6182_v39  ;;  %v894_v44 = vadd.f32 %v7245_v40, %v6891_v14  ;;  %v1062_v14 = vld [vmem:[%s8734_s3 + $0x1c0] sm:$0xff]  ;;  %v1064_v57 = vld [vmem:[%s8734_s3 + $0x1d0] sm:$0xff] }
 0x2e9   : > { %v5945_v63 = vpack.c.bf16 %v1063_v47, %v1062_v14 }
 0x2ea   : > { %v1575_v62 = vpop.f32.mrb[68].mxu1  ;;  %v7719_v9 = vpop.f32.mrb[162].mxu0 }
 0x2eb   : > { %v3247_v42 = vsel %vm3024_vm2, %v1575_v62, 0.0  ;;  %v5217_v41 = vpop.f32.mrb[69].mxu1  ;;  %5458 = vmatmul.mubr.msk.f32.gmra.mrb[174].mxu1 %vm1071_vm1, %v992_v16  ;;  %v5500_v4 = vpop.f32.mrb[163].mxu0  ;;  %v996_v16 = vmax.f32 %v894_v44, 0.0  ;;  %v1065_v62 = vld [vmem:[%s8734_s3 + $0x1d8] sm:$0xff] }
 0x2ec   : > { %v7726_v55 = vadd.f32 %v3247_v42, %v7611_v29  ;;  %5460 = vmatprep.mubr.msk.f32.mxu1 %vm6181_vm0, %v6182_v39 }
 0x2ee   : > { %v1580_v56 = vpop.f32.mrb[70].mxu1  ;;  %v7732_v35 = vpop.f32.mrb[164].mxu0 }
 0x2ef   : > { %v3278_v32 = vsel %vm3024_vm2, %v1580_v56, 0.0  ;;  %v5220_v1 = vpop.f32.mrb[71].mxu1  ;;  %5461 = vmatmul.mubr.msk.f32.gmra.mrb[176].mxu1 %vm1071_vm1, %v994_v54  ;;  %v5546_v11 = vpop.f32.mrb[165].mxu0 }
 0x2f0   : > { %v7739_v29 = vadd.f32 %v3278_v32, %v7627_v51  ;;  %5463 = vmatprep.mubr.msk.f32.mxu1 %vm6181_vm0, %v6182_v39  ;;  %v5948_v1 = vpack.c.bf16 %v1065_v62, %v1064_v57 }
 0x2f2   : > { %v1677_v17 = vpop.f32.mrb[72].mxu1  ;;  %v7749_v7 = vpop.f32.mrb[166].mxu0 }
 0x2f3   : > { %v3032_v54 = vsel %vm3024_vm2, %v1677_v17, 0.0  ;;  %v5231_v23 = vpop.f32.mrb[73].mxu1  ;;  %5464 = vmatmul.mubr.msk.f32.gmra.mrb[178].mxu1 %vm1071_vm1, %v996_v16  ;;  %v5549_v51 = vpop.f32.mrb[167].mxu0 }
 0x2f4   : > { %v7754_v20 = vadd.f32 %v3032_v54, %v7645_v49  ;;  %5509 = vmatprep.mubr.msk.f32.mxu1 %vm6181_vm0, %v6182_v39  ;;  %v8773_v49 = vmax.f32 %v7117_v19, 0.0 }
 0x2f6   : > { %v1682_v42 = vpop.f32.mrb[74].mxu1  ;;  %v7764_v41 = vpop.f32.mrb[168].mxu0 }
 0x2f7   : > { %v3063_v4 = vsel %vm3024_vm2, %v1682_v42, 0.0  ;;  %v5234_v44 = vpop.f32.mrb[75].mxu1  ;;  %5510 = vmatmul.mubr.msk.f32.vlgmr.msra.gmra.mrb[180].mxu1 %vm1071_vm1, %v8773_v49  ;;  %v5552_v56 = vpop.f32.mrb[169].mxu0 }
 0x2f8   : > { %v7771_v32 = vadd.f32 %v3063_v4, %v7661_v60  ;;  %5946 = vmatpush3.bf16.msra.mxu1 %v5945_v63  ;;  %5512 = vmatprep.mubr.msk.f32.mxu1 %vm6181_vm0, %v6182_v39  ;;  %v8774_v44 = vmax.f32 %v7171_v46, 0.0 }
 0x2f9   : > { %5947 = vmatprep.subr.bf16.mxu1 %v8761_v52 }
 0x2fa   : > { %v1687_v11 = vpop.f32.mrb[76].mxu1  ;;  %v7776_v16 = vpop.f32.mrb[170].mxu0 }
 0x2fb   : > { %v3094_v14 = vsel %vm3024_vm2, %v1687_v11, 0.0  ;;  %v5237_v47 = vpop.f32.mrb[77].mxu1  ;;  %5513 = vmatmul.mubr.msk.f32.gmra.mrb[182].mxu1 %vm1071_vm1, %v7151_v27  ;;  %v5555_v19 = vpop.f32.mrb[171].mxu0 }
 0x2fc   : > { %v7782_v60 = vadd.f32 %v3094_v14, %v7672_v15  ;;  %5515 = vmatprep.mubr.msk.f32.mxu1 %vm6181_vm0, %v6182_v39  ;;  %5949 = vmatpush3.bf16.msra.mxu1 %v5948_v1 }
 0x2fd   : > { %5956 = vmatprep.subr.bf16.mxu1 %v8761_v52 }
 0x2fe   : > { %v1692_v17 = vpop.f32.mrb[78].mxu1  ;;  %v7787_v54 = vpop.f32.mrb[172].mxu0 }
 0x2ff   : > { %v3125_v23 = vsel %vm3024_vm2, %v1692_v17, 0.0  ;;  %v5240_v51 = vpop.f32.mrb[79].mxu1  ;;  %5516 = vmatmul.mubr.msk.f32.gmra.mrb[184].mxu1 %vm1071_vm1, %v7167_v25  ;;  %v5558_v63 = vpop.f32.mrb[173].mxu0 }
 0x300   : > { %v7793_v57 = vadd.f32 %v3125_v23, %v7684_v50  ;;  %5518 = vmatprep.mubr.msk.f32.mxu1 %vm6181_vm0, %v6182_v39 }
 0x302   : > { %v1697_v15 = vpop.f32.mrb[80].mxu1  ;;  %v7797_v62 = vpop.f32.mrb[174].mxu0 }
 0x303   : > { %v3156_v42 = vsel %vm3024_vm2, %v1697_v15, 0.0  ;;  %v5243_v4 = vpop.f32.mrb[81].mxu1  ;;  %5519 = vmatmul.mubr.msk.f32.gmra.mrb[186].mxu1 %vm1071_vm1, %v8774_v44  ;;  %v5561_v49 = vpop.f32.mrb[175].mxu0 }
 0x304   : > { %v7804_v56 = vadd.f32 %v3156_v42, %v7694_v8  ;;  %5521 = vmatprep.mubr.msk.f32.mxu1 %vm6181_vm0, %v6182_v39  ;;  %v904_v8 = vadd.f32 %v7245_v40, %v6943_v18  ;;  %v7832_v18 = vadd.f32 %v7245_v40, %v6971_v21  ;;  %v7846_v21 = vadd.f32 %v7245_v40, %v6992_v43 }
 0x306   : > { %v1702_v50 = vpop.f32.mrb[82].mxu1  ;;  %v7808_v1 = vpop.f32.mrb[176].mxu0  ;;  %v1002_v43 = vmax.f32 %v7846_v21, 0.0 }
 0x307   : > { %v3187_v11 = vsel %vm3024_vm2, %v1702_v50, 0.0  ;;  %v5246_v14 = vpop.f32.mrb[83].mxu1  ;;  %5522 = vmatmul.mubr.msk.f32.gmra.mrb[188].mxu1 %vm1071_vm1, %v7205_v48  ;;  %v5564_v47 = vpop.f32.mrb[177].mxu0 }
 0x308   : > { %v7814_v46 = vadd.f32 %v3187_v11, %v7704_v61  ;;  %5524 = vmatprep.mubr.msk.f32.mxu1 %vm6181_vm0, %v6182_v39  ;;  %v998_v61 = vmax.f32 %v904_v8, 0.0  ;;  %v1000_v11 = vmax.f32 %v7832_v18, 0.0 }
 0x30a   : > { %v1707_v19 = vpop.f32.mrb[84].mxu1  ;;  %v7820_v17 = vpop.f32.mrb[178].mxu0 }
 0x30b   : > { %v3218_v23 = vsel %vm3024_vm2, %v1707_v19, 0.0  ;;  %v5249_v51 = vpop.f32.mrb[85].mxu1  ;;  %5525 = vmatmul.mubr.msk.f32.gmra.mrb[190].mxu1 %vm1071_vm1, %v7209_v36  ;;  %v5567_v63 = vpop.f32.mrb[179].mxu0 }
 0x30c   : > { %v7826_v15 = vadd.f32 %v3218_v23, %v7715_v38  ;;  %5527 = vmatprep.mubr.msk.f32.mxu1 %vm6181_vm0, %v6182_v39 }
 0x30e   : > { %v1712_v42 = vpop.f32.mrb[86].mxu1  ;;  %v7834_v4 = vpop.f32.mrb[180].mxu0 }
 0x30f   : > { %v3249_v44 = vsel %vm3024_vm2, %v1712_v42, 0.0  ;;  %v5252_v49 = vpop.f32.mrb[87].mxu1  ;;  %5528 = vmatmul.mubr.msk.f32.gmra.mrb[192].mxu1 %vm1071_vm1, %v998_v61  ;;  %v5570_v50 = vpop.f32.mrb[181].mxu0 }
 0x310   : > { %v7839_v38 = vadd.f32 %v3249_v44, %v7726_v55  ;;  %5530 = vmatprep.mubr.msk.f32.mxu1 %vm6181_vm0, %v6182_v39 }
 0x312   : > { %v1717_v14 = vpop.f32.mrb[88].mxu1  ;;  %v7848_v47 = vpop.f32.mrb[182].mxu0 }
 0x313   : > { %v3280_v8 = vsel %vm3024_vm2, %v1717_v14, 0.0  ;;  %v5255_v19 = vpop.f32.mrb[89].mxu1  ;;  %5531 = vmatmul.mubr.msk.f32.gmra.mrb[194].mxu1 %vm1071_vm1, %v1000_v11  ;;  %v5616_v55 = vpop.f32.mrb[183].mxu0 }
 0x314   : > { %v7855_v23 = vadd.f32 %v3280_v8, %v7739_v29  ;;  %5533 = vmatprep.mubr.msk.f32.mxu1 %vm6181_vm0, %v6182_v39 }
 0x316   : > { %v1814_v51 = vpop.f32.mrb[90].mxu1  ;;  %v7860_v63 = vpop.f32.mrb[184].mxu0 }
 0x317   : > { %v3034_v61 = vsel %vm3024_vm2, %v1814_v51, 0.0  ;;  %v5266_v42 = vpop.f32.mrb[91].mxu1  ;;  %5534 = vmatmul.mubr.msk.f32.gmra.mrb[196].mxu1 %vm1071_vm1, %v1002_v43  ;;  %v5619_v44 = vpop.f32.mrb[185].mxu0 }
 0x318   : > { %v7867_v49 = vadd.f32 %v3034_v61, %v7754_v20  ;;  %5579 = vmatprep.mubr.msk.f32.mxu1 %vm6181_vm0, %v6182_v39 }
 0x31a   : > { %v1819_v29 = vpop.f32.mrb[92].mxu1  ;;  %v7871_v50 = vpop.f32.mrb[186].mxu0 }
 0x31b   : > { %v3065_v14 = vsel %vm3024_vm2, %v1819_v29, 0.0  ;;  %v5269_v8 = vpop.f32.mrb[93].mxu1  ;;  %5580 = vmatmul.mubr.msk.f32.vlgmr.msra.gmra.mrb[198].mxu1 %vm1071_vm1, %v7151_v27  ;;  %v5622_v19 = vpop.f32.mrb[187].mxu0 }
 0x31c   : > { %v3066_v55 = vadd.f32 %v3065_v14, %v7771_v32  ;;  %5582 = vmatprep.mubr.msk.f32.mxu1 %vm6181_vm0, %v6182_v39  ;;  %v8775_v19 = vmax.f32 %v7388_v33, 0.0 }
 0x31e   : > { %v1824_v20 = vpop.f32.mrb[94].mxu1  ;;  %v7879_v51 = vpop.f32.mrb[188].mxu0 }
 0x31f   : > { %v3096_v61 = vsel %vm3024_vm2, %v1824_v20, 0.0  ;;  %v5272_v42 = vpop.f32.mrb[95].mxu1  ;;  %5583 = vmatmul.mubr.msk.f32.gmra.mrb[200].mxu1 %vm1071_vm1, %v7167_v25  ;;  %v5625_v44 = vpop.f32.mrb[189].mxu0 }
 0x320   : > { %v3097_v29 = vadd.f32 %v3096_v61, %v7782_v60  ;;  %5585 = vmatprep.mubr.msk.f32.mxu1 %vm6181_vm0, %v6182_v39 }
 0x322   : > { %v1829_v27 = vpop.f32.mrb[96].mxu1  ;;  %v7887_v32 = vpop.f32.mrb[190].mxu0 }
 0x323   : > { %v3127_v14 = vsel %vm3024_vm2, %v1829_v27, 0.0  ;;  %v5275_v8 = vpop.f32.mrb[97].mxu1  ;;  %5586 = vmatmul.mubr.msk.f32.gmra.mrb[202].mxu1 %vm1071_vm1, %v8775_v19  ;;  %v5628_v20 = vpop.f32.mrb[191].mxu0 }
 0x324   : > { %v3128_v42 = vadd.f32 %v3127_v14, %v7793_v57  ;;  %5588 = vmatprep.mubr.msk.f32.mxu1 %vm6181_vm0, %v6182_v39 }
 0x326   : > { %v1834_v25 = vpop.f32.mrb[98].mxu1  ;;  %v7896_v60 = vpop.f32.mrb[192].mxu0 }
 0x327   : > { %v3158_v61 = vsel %vm3024_vm2, %v1834_v25, 0.0  ;;  %v5278_v44 = vpop.f32.mrb[99].mxu1  ;;  %5589 = vmatmul.mubr.msk.f32.gmra.mrb[204].mxu1 %vm1071_vm1, %v7205_v48  ;;  %v5631_v27 = vpop.f32.mrb[193].mxu0 }
 0x328   : > { %v3159_v33 = vadd.f32 %v3158_v61, %v7804_v56  ;;  %5591 = vmatprep.mubr.msk.f32.mxu1 %vm6181_vm0, %v6182_v39 }
 0x32a   : > { %v1839_v8 = vpop.f32.mrb[100].mxu1 }
 0x32b   : > { %v3189_v57 = vsel %vm3024_vm2, %v1839_v8, 0.0  ;;  %v5281_v14 = vpop.f32.mrb[101].mxu1  ;;  %5592 = vmatmul.mubr.msk.f32.gmra.mrb[206].mxu1 %vm1071_vm1, %v7209_v36  ;;  %v934_v36 = vadd.f32 %v7245_v40, %v7013_v24 }
 0x32c   : > { %v3190_v19 = vadd.f32 %v3189_v57, %v7814_v46  ;;  %5594 = vmatprep.mubr.msk.f32.mxu1 %vm6181_vm0, %v6182_v39 }
 0x32e   : > { %v1844_v20 = vpop.f32.mrb[102].mxu1 }
 0x32f   : > { %v3220_v48 = vsel %vm3024_vm2, %v1844_v20, 0.0  ;;  %v5284_v25 = vpop.f32.mrb[103].mxu1  ;;  %5595 = vmatmul.mubr.msk.f32.gmra.mrb[208].mxu1 %vm1071_vm1, %v988_v5 }
 0x330   : > { %v3221_v56 = vadd.f32 %v3220_v48, %v7826_v15  ;;  %5597 = vmatprep.mubr.msk.f32.mxu1 %vm6181_vm0, %v6182_v39  ;;  %v1004_v15 = vmax.f32 %v934_v36, 0.0 }
 0x332   : > { %v1849_v61 = vpop.f32.mrb[104].mxu1 }
 0x333   : > { %v3251_v46 = vsel %vm3024_vm2, %v1849_v61, 0.0  ;;  %v5287_v44 = vpop.f32.mrb[105].mxu1  ;;  %5598 = vmatmul.mubr.msk.f32.gmra.mrb[210].mxu1 %vm1071_vm1, %v1000_v11 }
 0x334   : > { %v3252_v12 = vadd.f32 %v3251_v46, %v7839_v38  ;;  %5600 = vmatprep.mubr.msk.f32.mxu1 %vm6181_vm0, %v6182_v39 }
 0x336   : > { %v1854_v5 = vpop.f32.mrb[106].mxu1 }
 0x337   : > { %v3282_v27 = vsel %vm3024_vm2, %v1854_v5, 0.0  ;;  %v5290_v8 = vpop.f32.mrb[107].mxu1  ;;  %5601 = vmatmul.mubr.msk.f32.gmra.mrb[212].mxu1 %vm1071_vm1, %v1002_v43 }
 0x338   : > { %v3283_v24 = vadd.f32 %v3282_v27, %v7855_v23  ;;  %5603 = vmatprep.mubr.msk.f32.mxu1 %vm6181_vm0, %v6182_v39 }
 0x33a   : > { %v1933_v40 = vpop.f32.mrb[108].mxu1 }
 0x33b   : > { %v3036_v18 = vsel %vm3024_vm2, %v1933_v40, 0.0  ;;  %v5301_v38 = vpop.f32.mrb[109].mxu1  ;;  %5604 = vmatmul.mubr.msk.f32.gmra.mrb[214].mxu1 %vm1071_vm1, %v1004_v15 }
 0x33c   : > { %v3037_v11 = vadd.f32 %v3036_v18, %v7867_v49  ;;  %5657 = vmatprep.mubr.msk.f32.mxu1 %vm6181_vm0, %v6182_v39 }
 0x33e   : > { %v1938_v57 = vpop.f32.mrb[110].mxu1 }
 0x33f   : > { %v3067_v21 = vsel %vm3024_vm2, %v1938_v57, 0.0  ;;  %v5304_v43 = vpop.f32.mrb[111].mxu1 }
 0x340   : > { %v3068_v14 = vadd.f32 %v3067_v21, %v3066_v55 }
 0x342   : > { %v1943_v23 = vpop.f32.mrb[112].mxu1 }
 0x343   : > { %v3098_v20 = vsel %vm3024_vm2, %v1943_v23, 0.0  ;;  %v5307_v48 = vpop.f32.mrb[113].mxu1 }
 0x344   : > { %v3099_v25 = vadd.f32 %v3098_v20, %v3097_v29 }
 0x346   : > { %v1948_v61 = vpop.f32.mrb[114].mxu1 }
 0x347   : > { %v3129_v36 = vsel %vm3024_vm2, %v1948_v61, 0.0  ;;  %v5310_v46 = vpop.f32.mrb[115].mxu1 }
 0x348   : > { %v3130_v44 = vadd.f32 %v3129_v36, %v3128_v42  ;;  %v3328_v42 = vld [vmem:[%s8736_s5] sm:$0xff] }
 0x34a   : > { %v1953_v5 = vpop.f32.mrb[116].mxu1 }
 0x34b   : > { %v3160_v49 = vsel %vm3024_vm2, %v1953_v5, 0.0  ;;  %v5313_v15 = vpop.f32.mrb[117].mxu1  ;;  %v3330_v5 = vld [vmem:[%s8736_s5 + $0x10] sm:$0xff] }
 0x34c   : > { %v3161_v27 = vadd.f32 %v3160_v49, %v3159_v33  ;;  %v3329_v33 = vld [vmem:[%s8736_s5 + $0x8] sm:$0xff]  ;;  %v3331_v49 = vld [vmem:[%s8736_s5 + $0x18] sm:$0xff] }
 0x34d   : > { %v5957_v43 = vpack.c.bf16 %v3329_v33, %v3328_v42  ;;  %v5960_v15 = vpack.c.bf16 %v3331_v49, %v3330_v5 }
 0x34e   : > { %v1958_v8 = vpop.f32.mrb[118].mxu1 }
 0x34f   : > { %v3191_v40 = vsel %vm3024_vm2, %v1958_v8, 0.0  ;;  %v5316_v18 = vpop.f32.mrb[119].mxu1  ;;  %5958 = vmatpush3.bf16.msra.mxu1 %v5957_v43 }
 0x350   : > { %v7943_v55 = vadd.f32 %v3191_v40, %v3190_v19  ;;  %5959 = vmatprep.subr.bf16.mxu1 %v8761_v52 }
 0x352   : > { %v1963_v38 = vpop.f32.mrb[120].mxu1 }
 0x353   : > { %v3222_v57 = vsel %vm3024_vm2, %v1963_v38, 0.0  ;;  %v5319_v29 = vpop.f32.mrb[121].mxu1  ;;  %5961 = vmatpush3.bf16.msra.mxu1 %v5960_v15 }
 0x354   : > { %v7946_v21 = vadd.f32 %v3222_v57, %v3221_v56  ;;  %5962 = vmatprep.subr.bf16.mxu1 %v8761_v52  ;;  %v7972_v29 = vpop.f32.mrb[194].mxu0 }
 0x355   : > { %v5634_v33 = vpop.f32.mrb[195].mxu0 }
 0x356   : > { %v1968_v23 = vpop.f32.mrb[122].mxu1 }
 0x357   : > { %v3253_v20 = vsel %vm3024_vm2, %v1968_v23, 0.0  ;;  %v5322_v19 = vpop.f32.mrb[123].mxu1 }
 0x358   : > { %v7955_v48 = vadd.f32 %v3253_v20, %v3252_v12 }
 0x35a   : > { %v1973_v56 = vpop.f32.mrb[124].mxu1 }
 0x35b   : > { %v3284_v61 = vsel %vm3024_vm2, %v1973_v56, 0.0  ;;  %v5325_v36 = vpop.f32.mrb[125].mxu1  ;;  %v3333_v56 = vld [vmem:[%s8736_s5 + $0x28] sm:$0xff] }
 0x35c   : > { %v7959_v46 = vadd.f32 %v3284_v61, %v3283_v24  ;;  %v3345_v36 = vld [vmem:[%s8736_s5 + $0x88] sm:$0xff] }
 0x35e   : > { %v2052_v8 = vpop.f32.mrb[126].mxu1 }
 0x35f   : > { %v3038_v12 = vsel %vm3024_vm2, %v2052_v8, 0.0  ;;  %v5336_v40 = vpop.f32.mrb[127].mxu1  ;;  %v7992_v8 = vpop.f32.mrb[196].mxu0 }
 0x360   : > { %v7968_v18 = vadd.f32 %v3038_v12, %v3037_v11  ;;  %v3332_v11 = vld [vmem:[%s8736_s5 + $0x20] sm:$0xff]  ;;  %v5637_v40 = vpop.f32.mrb[197].mxu0 }
 0x361   : > { %v5963_v61 = vpack.c.bf16 %v3333_v56, %v3332_v11  ;;  %v3347_v56 = vld [vmem:[%s8736_s5 + $0x98] sm:$0xff] }
 0x362   : > { %v2057_v24 = vpop.f32.mrb[128].mxu1 }
 0x363   : > { %v3069_v38 = vsel %vm3024_vm2, %v2057_v24, 0.0  ;;  %v5339_v57 = vpop.f32.mrb[129].mxu1  ;;  %5964 = vmatpush3.bf16.msra.mxu1 %v5963_v61 }
 0x364   : > { %v7974_v42 = vadd.f32 %v3069_v38, %v3068_v14  ;;  %v3344_v14 = vld [vmem:[%s8736_s5 + $0x80] sm:$0xff]  ;;  %5965 = vmatprep.subr.bf16.mxu1 %v8761_v52 }
 0x366   : > { %v2062_v43 = vpop.f32.mrb[130].mxu1 }
 0x367   : > { %v3100_v23 = vsel %vm3024_vm2, %v2062_v43, 0.0  ;;  %v5342_v20 = vpop.f32.mrb[131].mxu1  ;;  %v3334_v43 = vld [vmem:[%s8736_s5 + $0x30] sm:$0xff] }
 0x368   : > { %v7977_v19 = vadd.f32 %v3100_v23, %v3099_v25  ;;  %v5981_v25 = vpack.c.bf16 %v3345_v36, %v3344_v14  ;;  %v3346_v23 = vld [vmem:[%s8736_s5 + $0x90] sm:$0xff] }
 0x369   : > { %v5984_v61 = vpack.c.bf16 %v3347_v56, %v3346_v23  ;;  %v3351_v23 = vld [vmem:[%s8736_s5 + $0xb8] sm:$0xff] }
 0x36a   : > { %v2067_v5 = vpop.f32.mrb[132].mxu1  ;;  %5982 = vmatpush3.bf16.msra.mxu0 %v5981_v25  ;;  %v3348_v25 = vld [vmem:[%s8736_s5 + $0xa0] sm:$0xff] }
 0x36b   : > { %v3131_v49 = vsel %vm3024_vm2, %v2067_v5, 0.0  ;;  %v5345_v15 = vpop.f32.mrb[133].mxu1  ;;  %5983 = vmatprep.subr.bf16.mxu0 %v8761_v52 }
 0x36c   : > { %v7994_v12 = vadd.f32 %v3131_v49, %v3130_v44  ;;  %v3335_v44 = vld [vmem:[%s8736_s5 + $0x38] sm:$0xff]  ;;  %v3349_v49 = vld [vmem:[%s8736_s5 + $0xa8] sm:$0xff] }
 0x36d   : > { %v5966_v11 = vpack.c.bf16 %v3335_v44, %v3334_v43 }
 0x36e   : > { %v2072_v24 = vpop.f32.mrb[134].mxu1  ;;  %5985 = vmatpush3.bf16.msra.mxu0 %v5984_v61 }
 0x36f   : > { %v3162_v38 = vsel %vm3024_vm2, %v2072_v24, 0.0  ;;  %v5348_v57 = vpop.f32.mrb[135].mxu1  ;;  %5967 = vmatpush3.bf16.msra.mxu1 %v5966_v11  ;;  %5986 = vmatprep.subr.bf16.mxu0 %v8761_v52  ;;  %v5987_v24 = vpack.c.bf16 %v3349_v49, %v3348_v25 }
 0x370   : > { %v7999_v33 = vadd.f32 %v3162_v38, %v3161_v27  ;;  %5968 = vmatprep.subr.bf16.mxu1 %v8761_v52  ;;  %v3350_v57 = vld [vmem:[%s8736_s5 + $0xb0] sm:$0xff] }
 0x371   : > { %v5990_v11 = vpack.c.bf16 %v3351_v23, %v3350_v57 }
 0x372   : > { %v2077_v20 = vpop.f32.mrb[136].mxu1  ;;  %5988 = vmatpush3.bf16.msra.mxu0 %v5987_v24 }
 0x373   : > { %v3193_v27 = vsel %vm3024_vm2, %v2077_v20, 0.0  ;;  %v5351_v14 = vpop.f32.mrb[137].mxu1  ;;  %5989 = vmatprep.subr.bf16.mxu0 %v8761_v52 }
 0x374   : > { %v3194_v36 = vadd.f32 %v3193_v27, %v7943_v55 }
 0x376   : > { %v2082_v5 = vpop.f32.mrb[138].mxu1  ;;  %5991 = vmatpush3.bf16.msra.mxu0 %v5990_v11 }
 0x377   : > { %v3224_v15 = vsel %vm3024_vm2, %v2082_v5, 0.0  ;;  %v5354_v40 = vpop.f32.mrb[139].mxu1  ;;  %6004 = vmatprep.subr.bf16.mxu0 %v8761_v52 }
 0x378   : > { %v3225_v55 = vadd.f32 %v3224_v15, %v7946_v21  ;;  %v3042_v15 = vsel %vm3024_vm2, %v7190_v28, 0.0  ;;  %v3104_v28 = vsel %vm3024_vm2, %v7273_v37, 0.0 }
 0x37a   : > { %v2087_v38 = vpop.f32.mrb[140].mxu1 }
 0x37b   : > { %v3255_v43 = vsel %vm3024_vm2, %v2087_v38, 0.0  ;;  %v5357_v44 = vpop.f32.mrb[141].mxu1 }
 0x37c   : > { %v3256_v20 = vadd.f32 %v3255_v43, %v7955_v48  ;;  %v3073_v43 = vsel %vm3024_vm2, %v7228_v13, 0.0  ;;  %v3135_v13 = vsel %vm3024_vm2, %v7390_v31, 0.0  ;;  %v3197_v31 = vsel %vm3024_vm2, %v7427_v45, 0.0 }
 0x37e   : > { %v2092_v56 = vpop.f32.mrb[142].mxu1 }
 0x37f   : > { %v3286_v21 = vsel %vm3024_vm2, %v2092_v56, 0.0  ;;  %v5360_v27 = vpop.f32.mrb[143].mxu1 }
 0x380   : > { %v3287_v14 = vadd.f32 %v3286_v21, %v7959_v46 }
 0x382   : > { %v2171_v61 = vpop.f32.mrb[144].mxu1 }
 0x383   : > { %v3040_v5 = vsel %vm3024_vm2, %v2171_v61, 0.0  ;;  %v5371_v25 = vpop.f32.mrb[145].mxu1 }
 0x384   : > { %v3041_v49 = vadd.f32 %v3040_v5, %v7968_v18  ;;  %v8053_v5 = vpop.f32.mrb[198].mxu0 }
 0x386   : > { %v2176_v48 = vpop.f32.mrb[146].mxu1  ;;  %v3043_v40 = vadd.f32 %v3042_v15, %v3041_v49  ;;  %v5640_v15 = vpop.f32.mrb[199].mxu0 }
 0x387   : > { %v3071_v24 = vsel %vm3024_vm2, %v2176_v48, 0.0  ;;  %v5374_v38 = vpop.f32.mrb[147].mxu1  ;;  %v3290_v15 = vsel %vm3024_vm2, %v7606_v59, 0.0  ;;  %v3077_v59 = vsel %vm3024_vm2, %v7638_v2, 0.0 }
 0x388   : > { %v3072_v57 = vadd.f32 %v3071_v24, %v7974_v42  ;;  %v3166_v24 = vsel %vm3024_vm2, %v7404_v53, 0.0 }
 0x38a   : > { %v2181_v46 = vpop.f32.mrb[148].mxu1  ;;  %v3074_v44 = vadd.f32 %v3073_v43, %v3072_v57 }
 0x38b   : > { %v3102_v23 = vsel %vm3024_vm2, %v2181_v46, 0.0  ;;  %v5377_v11 = vpop.f32.mrb[149].mxu1 }
 0x38c   : > { %v3103_v18 = vadd.f32 %v3102_v23, %v7977_v19 }
 0x38e   : > { %v2186_v56 = vpop.f32.mrb[150].mxu1  ;;  %v3105_v21 = vadd.f32 %v3104_v28, %v3103_v18 }
 0x38f   : > { %v3133_v27 = vsel %vm3024_vm2, %v2186_v56, 0.0  ;;  %v5380_v61 = vpop.f32.mrb[151].mxu1 }
 0x390   : > { %v3134_v42 = vadd.f32 %v3133_v27, %v7994_v12 }
 0x392   : > { %v2191_v25 = vpop.f32.mrb[152].mxu1  ;;  %v3136_v49 = vadd.f32 %v3135_v13, %v3134_v42 }
 0x393   : > { %v3164_v19 = vsel %vm3024_vm2, %v2191_v25, 0.0  ;;  %v5383_v48 = vpop.f32.mrb[153].mxu1 }
 0x394   : > { %v3165_v37 = vadd.f32 %v3164_v19, %v7999_v33  ;;  %v3228_v33 = vsel %vm3024_vm2, %v7563_v0, 0.0 }
 0x396   : > { %v2196_v38 = vpop.f32.mrb[154].mxu1  ;;  %v3167_v57 = vadd.f32 %v3166_v24, %v3165_v37 }
 0x397   : > { %v3195_v12 = vsel %vm3024_vm2, %v2196_v38, 0.0  ;;  %v5386_v43 = vpop.f32.mrb[155].mxu1 }
 0x398   : > { %v3196_v46 = vadd.f32 %v3195_v12, %v3194_v36  ;;  %v3259_v36 = vsel %vm3024_vm2, %v7582_v34, 0.0 }
 0x39a   : > { %v2201_v23 = vpop.f32.mrb[156].mxu1  ;;  %v3198_v11 = vadd.f32 %v3197_v31, %v3196_v46 }
 0x39b   : > { %v3226_v18 = vsel %vm3024_vm2, %v2201_v23, 0.0  ;;  %v5389_v28 = vpop.f32.mrb[157].mxu1 }
 0x39c   : > { %v3227_v56 = vadd.f32 %v3226_v18, %v3225_v55 }
 0x39e   : > { %v2206_v27 = vpop.f32.mrb[158].mxu1  ;;  %v3229_v53 = vadd.f32 %v3228_v33, %v3227_v56 }
 0x39f   : > { %v3257_v61 = vsel %vm3024_vm2, %v2206_v27, 0.0  ;;  %v5392_v42 = vpop.f32.mrb[159].mxu1 }
 0x3a0   : > { %v3258_v13 = vadd.f32 %v3257_v61, %v3256_v20  ;;  %v3046_v20 = vsel %vm3024_vm2, %v7620_v58, 0.0 }
 0x3a2   : > { %v2211_v25 = vpop.f32.mrb[160].mxu1  ;;  %v3260_v45 = vadd.f32 %v3259_v36, %v3258_v13 }
 0x3a3   : > { %v3288_v19 = vsel %vm3024_vm2, %v2211_v25, 0.0  ;;  %v5395_v55 = vpop.f32.mrb[161].mxu1 }
 0x3a4   : > { %v3289_v48 = vadd.f32 %v3288_v19, %v3287_v14 }
 0x3a6   : > { %v2403_v37 = vpop.f32.mrb[162].mxu1  ;;  %v3291_v0 = vadd.f32 %v3290_v15, %v3289_v48 }
 0x3a7   : > { %v3044_v24 = vsel %vm3024_vm2, %v2403_v37, 0.0  ;;  %v5441_v38 = vpop.f32.mrb[163].mxu1 }
 0x3a8   : > { %v3045_v12 = vadd.f32 %v3044_v24, %v3043_v40  ;;  %v3108_v40 = vsel %vm3024_vm2, %v7655_v10, 0.0 }
 0x3aa   : > { %v2408_v43 = vpop.f32.mrb[164].mxu1  ;;  %v3047_v34 = vadd.f32 %v3046_v20, %v3045_v12 }
 0x3ab   : > { %v3075_v46 = vsel %vm3024_vm2, %v2408_v43, 0.0  ;;  %v5444_v31 = vpop.f32.mrb[165].mxu1 }
 0x3ac   : > { %v3076_v23 = vadd.f32 %v3075_v46, %v3074_v44  ;;  %v3139_v44 = vsel %vm3024_vm2, %v7666_v3, 0.0 }
 0x3ae   : > { %v2413_v18 = vpop.f32.mrb[166].mxu1  ;;  %v3078_v14 = vadd.f32 %v3077_v59, %v3076_v23 }
 0x3af   : > { %v3106_v28 = vsel %vm3024_vm2, %v2413_v18, 0.0  ;;  %v5447_v56 = vpop.f32.mrb[167].mxu1 }
 0x3b0   : > { %v3107_v33 = vadd.f32 %v3106_v28, %v3105_v21  ;;  %v3170_v21 = vsel %vm3024_vm2, %v7677_v22, 0.0  ;;  %v3294_v28 = vsel %vm3024_vm2, %v7719_v9, 0.0  ;;  %v3081_v9 = vsel %vm3024_vm2, %v7749_v7, 0.0 }
 0x3b2   : > { %v2418_v27 = vpop.f32.mrb[168].mxu1  ;;  %v3109_v58 = vadd.f32 %v3108_v40, %v3107_v33 }
 0x3b3   : > { %v3137_v61 = vsel %vm3024_vm2, %v2418_v27, 0.0  ;;  %v5450_v42 = vpop.f32.mrb[169].mxu1 }
 0x3b4   : > { %v3138_v13 = vadd.f32 %v3137_v61, %v3136_v49  ;;  %v3201_v49 = vsel %vm3024_vm2, %v7688_v6, 0.0 }
 0x3b6   : > { %v2423_v36 = vpop.f32.mrb[170].mxu1  ;;  %v3140_v2 = vadd.f32 %v3139_v44, %v3138_v13 }
 0x3b7   : > { %v3168_v25 = vsel %vm3024_vm2, %v2423_v36, 0.0  ;;  %v5453_v15 = vpop.f32.mrb[171].mxu1 }
 0x3b8   : > { %v3169_v19 = vadd.f32 %v3168_v25, %v3167_v57  ;;  %v3232_v57 = vsel %vm3024_vm2, %v7698_v26, 0.0 }
 0x3ba   : > { %v2428_v55 = vpop.f32.mrb[172].mxu1  ;;  %v3171_v10 = vadd.f32 %v3170_v21, %v3169_v19 }
 0x3bb   : > { %v3199_v48 = vsel %vm3024_vm2, %v2428_v55, 0.0  ;;  %v5456_v37 = vpop.f32.mrb[173].mxu1 }
 0x3bc   : > { %v3200_v24 = vadd.f32 %v3199_v48, %v3198_v11  ;;  %v3263_v11 = vsel %vm3024_vm2, %v7708_v30, 0.0 }
 0x3be   : > { %v2433_v38 = vpop.f32.mrb[174].mxu1  ;;  %v3202_v3 = vadd.f32 %v3201_v49, %v3200_v24 }
 0x3bf   : > { %v3230_v12 = vsel %vm3024_vm2, %v2433_v38, 0.0  ;;  %v5459_v20 = vpop.f32.mrb[175].mxu1 }
 0x3c0   : > { %v3231_v43 = vadd.f32 %v3230_v12, %v3229_v53 }
 0x3c2   : > { %v2438_v46 = vpop.f32.mrb[176].mxu1  ;;  %v3233_v22 = vadd.f32 %v3232_v57, %v3231_v43 }
 0x3c3   : > { %v3261_v31 = vsel %vm3024_vm2, %v2438_v46, 0.0  ;;  %v5462_v23 = vpop.f32.mrb[177].mxu1 }
 0x3c4   : > { %v3262_v59 = vadd.f32 %v3261_v31, %v3260_v45  ;;  %v3050_v45 = vsel %vm3024_vm2, %v7732_v35, 0.0 }
 0x3c6   : > { %v2443_v18 = vpop.f32.mrb[178].mxu1  ;;  %v3264_v6 = vadd.f32 %v3263_v11, %v3262_v59 }
 0x3c7   : > { %v3292_v56 = vsel %vm3024_vm2, %v2443_v18, 0.0  ;;  %v5465_v53 = vpop.f32.mrb[179].mxu1 }
 0x3c8   : > { %v3293_v33 = vadd.f32 %v3292_v56, %v3291_v0 }
 0x3ca   : > { %v2635_v40 = vpop.f32.mrb[180].mxu1  ;;  %v3295_v26 = vadd.f32 %v3294_v28, %v3293_v33 }
 0x3cb   : > { %v3048_v27 = vsel %vm3024_vm2, %v2635_v40, 0.0  ;;  %v5511_v61 = vpop.f32.mrb[181].mxu1 }
 0x3cc   : > { %v3049_v42 = vadd.f32 %v3048_v27, %v3047_v34  ;;  %v3112_v34 = vsel %vm3024_vm2, %v7764_v41, 0.0  ;;  %v3298_v61 = vsel %vm3024_vm2, %v7834_v4, 0.0 }
 0x3ce   : > { %v2640_v13 = vpop.f32.mrb[182].mxu1  ;;  %v3051_v30 = vadd.f32 %v3050_v45, %v3049_v42 }
 0x3cf   : > { %v3079_v44 = vsel %vm3024_vm2, %v2640_v13, 0.0  ;;  %v5514_v36 = vpop.f32.mrb[183].mxu1 }
 0x3d0   : > { %v3080_v25 = vadd.f32 %v3079_v44, %v3078_v14  ;;  %v3143_v14 = vsel %vm3024_vm2, %v7776_v16, 0.0  ;;  %v3205_v16 = vsel %vm3024_vm2, %v7797_v62, 0.0  ;;  %v3267_v62 = vsel %vm3024_vm2, %v7820_v17, 0.0 }
 0x3d1   : > { %v3054_v17 = vsel %vm3024_vm2, %v7848_v47, 0.0 }
 0x3d2   : > { %v2645_v15 = vpop.f32.mrb[184].mxu1  ;;  %v3082_v0 = vadd.f32 %v3081_v9, %v3080_v25  ;;  %v8143_v25 = vld [vmem:[%s8735_s4] ss:$0 sm:$0xff] }
 0x3d3   : > { %v3110_v19 = vsel %vm3024_vm2, %v2645_v15, 0.0  ;;  %v5517_v21 = vpop.f32.mrb[185].mxu1  ;;  %v3337_v15 = vld [vmem:[%s8736_s5 + $0x48] sm:$0xff] }
 0x3d4   : > { %v3111_v55 = vadd.f32 %v3110_v19, %v3109_v58  ;;  %v3174_v58 = vsel %vm3024_vm2, %v7787_v54, 0.0  ;;  %v3236_v54 = vsel %vm3024_vm2, %v7808_v1, 0.0 }
 0x3d6   : > { %v2650_v48 = vpop.f32.mrb[186].mxu1  ;;  %v3113_v35 = vadd.f32 %v3112_v34, %v3111_v55  ;;  %v3085_v55 = vsel %vm3024_vm2, %v7860_v63, 0.0  ;;  %v3116_v63 = vsel %vm3024_vm2, %v7871_v50, 0.0  ;;  %v3360_v50 = vld [vmem:[%s8736_s5 + $0x100] sm:$0xff] }
 0x3d7   : > { %v3141_v37 = vsel %vm3024_vm2, %v2650_v48, 0.0  ;;  %v5520_v24 = vpop.f32.mrb[187].mxu1 }
 0x3d8   : > { %v3142_v49 = vadd.f32 %v3141_v37, %v3140_v2 }
 0x3da   : > { %v2655_v38 = vpop.f32.mrb[188].mxu1  ;;  %v8110_v7 = vadd.f32 %v3143_v14, %v3142_v49  ;;  %v3338_v49 = vld [vmem:[%s8736_s5 + $0x50] sm:$0xff]  ;;  %v3339_v14 = vld [vmem:[%s8736_s5 + $0x58] sm:$0xff] }
 0x3db   : > { %v3172_v12 = vsel %vm3024_vm2, %v2655_v38, 0.0  ;;  %v5523_v20 = vpop.f32.mrb[189].mxu1 }
 0x3dc   : > { %v3173_v43 = vadd.f32 %v3172_v12, %v3171_v10 }
 0x3de   : > { %v2660_v41 = vpop.f32.mrb[190].mxu1  ;;  %v8115_v57 = vadd.f32 %v3174_v58, %v3173_v43  ;;  %v3340_v43 = vld [vmem:[%s8736_s5 + $0x60] sm:$0xff] }
 0x3df   : > { %v3203_v46 = vsel %vm3024_vm2, %v2660_v41, 0.0  ;;  %v5526_v31 = vpop.f32.mrb[191].mxu1 }
 0x3e0   : > { %v3204_v2 = vadd.f32 %v3203_v46, %v3202_v3  ;;  %v3361_v46 = vld [vmem:[%s8736_s5 + $0x108] sm:$0xff] }
 0x3e2   : > { %v2665_v23 = vpop.f32.mrb[192].mxu1  ;;  %v8120_v59 = vadd.f32 %v3205_v16, %v3204_v2 }
 0x3e3   : > { %v3234_v11 = vsel %vm3024_vm2, %v2665_v23, 0.0  ;;  %v5529_v18 = vpop.f32.mrb[193].mxu1 }
 0x3e4   : > { %v3235_v10 = vadd.f32 %v3234_v11, %v3233_v22  ;;  %v3147_v11 = vsel %vm3024_vm2, %v7879_v51, 0.0  ;;  %v3362_v51 = vld [vmem:[%s8736_s5 + $0x110] sm:$0xff] }
 0x3e6   : > { %v2670_v28 = vpop.f32.mrb[194].mxu1  ;;  %v8125_v56 = vadd.f32 %v3236_v54, %v3235_v10  ;;  %v6005_v10 = vpack.c.bf16 %v3361_v46, %v3360_v50  ;;  %v3342_v54 = vld [vmem:[%s8736_s5 + $0x70] sm:$0xff]  ;;  %v3271_v46 = vsel %vm3024_vm2, %v7992_v8, 0.0 }
 0x3e7   : > { %v3265_v53 = vsel %vm3024_vm2, %v2670_v28, 0.0  ;;  %v5532_v33 = vpop.f32.mrb[195].mxu1  ;;  %v3378_v8 = vld [vmem:[%s8736_s5 + $0x190] sm:$0xff] }
 0x3e8   : > { %v3266_v3 = vadd.f32 %v3265_v53, %v3264_v6 }
 0x3ea   : > { %v2675_v40 = vpop.f32.mrb[196].mxu1  ;;  %v8130_v27 = vadd.f32 %v3267_v62, %v3266_v3  ;;  %v3363_v3 = vld [vmem:[%s8736_s5 + $0x118] sm:$0xff] }
 0x3eb   : > { %v3296_v22 = vsel %vm3024_vm2, %v2675_v40, 0.0  ;;  %v5535_v42 = vpop.f32.mrb[197].mxu1 }
 0x3ec   : > { %v3297_v1 = vadd.f32 %v3296_v22, %v3295_v26  ;;  %v3336_v26 = vld [vmem:[%s8736_s5 + $0x40] sm:$0xff]  ;;  %v3178_v22 = vsel %vm3024_vm2, %v7887_v32, 0.0  ;;  %v3353_v32 = vld [vmem:[%s8736_s5 + $0xc8] sm:$0xff] }
 0x3ed   : > { %v5969_v34 = vpack.c.bf16 %v3337_v15, %v3336_v26  ;;  %v3209_v15 = vsel %vm3024_vm2, %v7896_v60, 0.0  ;;  %v3355_v60 = vld [vmem:[%s8736_s5 + $0xd8] sm:$0xff] }
 0x3ee   : > { %v2867_v45 = vpop.f32.mrb[198].mxu1  ;;  %v8135_v13 = vadd.f32 %v3298_v61, %v3297_v1  ;;  %v6008_v1 = vpack.c.bf16 %v3363_v3, %v3362_v51 }
 0x3ef   : > { %v3052_v44 = vsel %vm3024_vm2, %v2867_v45, 0.0  ;;  %v5581_v36 = vpop.f32.mrb[199].mxu1  ;;  %v3352_v45 = vld [vmem:[%s8736_s5 + $0xc0] sm:$0xff] }
 0x3f0   : > { %v3053_v6 = vadd.f32 %v3052_v44, %v3051_v30 }
 0x3f2   : > { %v3055_v4 = vadd.f32 %v3054_v17, %v3053_v6  ;;  %v2872_v9 = vpop.f32.mrb[200].mxu1  ;;  %v3365_v17 = vld [vmem:[%s8736_s5 + $0x128] sm:$0xff] }
 0x3f3   : > { %v3083_v30 = vsel %vm3024_vm2, %v2872_v9, 0.0  ;;  %v5584_v19 = vpop.f32.mrb[201].mxu1 }
 0x3f4   : > { %v3310_v47 = vadd.f32 %v8143_v25, %v3055_v4  ;;  %v3084_v21 = vadd.f32 %v3083_v30, %v3082_v0  ;;  %v5972_v0 = vpack.c.bf16 %v3339_v14, %v3338_v49  ;;  %v5993_v30 = vpack.c.bf16 %v3353_v32, %v3352_v45  ;;  %v3370_v45 = vld [vmem:[%s8736_s5 + $0x150] sm:$0xff]  ;;  %v3383_v32 = vld [vmem:[%s8736_s5 + $0x1b8] sm:$0xff] }
 0x3f5   : > { %v3240_v14 = vsel %vm3024_vm2, %v7972_v29, 0.0  ;;  %v3357_v29 = vld [vmem:[%s8736_s5 + $0xe8] sm:$0xff] }
 0x3f6   : > { %v3319_v48 = vmax.f32 %v3310_v47, 0.0  ;;  %v3086_v37 = vadd.f32 %v3085_v55, %v3084_v21  ;;  %v2877_v24 = vpop.f32.mrb[202].mxu1  ;;  %v3354_v47 = vld [vmem:[%s8736_s5 + $0xd0] sm:$0xff] }
 0x3f7   : > { %v3114_v38 = vsel %vm3024_vm2, %v2877_v24, 0.0  ;;  %v5587_v12 = vpop.f32.mrb[203].mxu1 }
 0x3f8   : > { %v3115_v20 = vadd.f32 %v3114_v38, %v3113_v35  ;;  %5658 = vmatmul.mubr.msk.f32.vlgmr.msra.gmra.mrb[216].mxu1 %vm3024_vm2, %v3319_v48  ;;  %v3341_v35 = vld [vmem:[%s8736_s5 + $0x68] sm:$0xff]  ;;  %v3311_v44 = vadd.f32 %v8143_v25, %v3086_v37  ;;  %v3367_v48 = vld [vmem:[%s8736_s5 + $0x138] sm:$0xff]  ;;  %v5996_v38 = vpack.c.bf16 %v3355_v60, %v3354_v47 }
 0x3f9   : > { %5970 = vmatpush3.bf16.msra.mxu1 %v5969_v34  ;;  %5676 = vmatprep.mubr.msk.f32.mxu1 %vm6181_vm0, %v6182_v39  ;;  %v5975_v18 = vpack.c.bf16 %v3341_v35, %v3340_v43  ;;  %v3375_v60 = vld [vmem:[%s8736_s5 + $0x178] sm:$0xff] }
 0x3fa   : > { %v3117_v58 = vadd.f32 %v3116_v63, %v3115_v20  ;;  %v2882_v41 = vpop.f32.mrb[204].mxu1  ;;  %5971 = vmatprep.subr.bf16.mxu1 %v8761_v52  ;;  %v3320_v21 = vmax.f32 %v3311_v44, 0.0  ;;  %v3356_v20 = vld [vmem:[%s8736_s5 + $0xe0] sm:$0xff] }
 0x3fb   : > { %v3145_v31 = vsel %vm3024_vm2, %v2882_v41, 0.0  ;;  %v5590_v2 = vpop.f32.mrb[205].mxu1 }
 0x3fc   : > { %v3312_v16 = vadd.f32 %v8143_v25, %v3117_v58  ;;  %v3146_v23 = vadd.f32 %v3145_v31, %v8110_v7  ;;  %v3343_v7 = vld [vmem:[%s8736_s5 + $0x78] sm:$0xff]  ;;  %v3377_v58 = vld [vmem:[%s8736_s5 + $0x188] sm:$0xff]  ;;  %v5999_v31 = vpack.c.bf16 %v3357_v29, %v3356_v20 }
 0x3fd   : > { %5973 = vmatpush3.bf16.msra.mxu1 %v5972_v0  ;;  %v5978_v42 = vpack.c.bf16 %v3343_v7, %v3342_v54  ;;  %v3397_v20 = vld [vmem:[%s8736_s5 + $0x228] sm:$0xff]  ;;  %v3387_v29 = vld [vmem:[%s8736_s5 + $0x1d8] sm:$0xff] }
 0x3fe   : > { %v3321_v28 = vmax.f32 %v3312_v16, 0.0  ;;  %v8188_v53 = vadd.f32 %v3147_v11, %v3146_v23  ;;  %v2887_v33 = vpop.f32.mrb[206].mxu1  ;;  %5974 = vmatprep.subr.bf16.mxu1 %v8761_v52  ;;  %v3358_v16 = vld [vmem:[%s8736_s5 + $0xf0] sm:$0xff] }
 0x3ff   : > { %v3176_v62 = vsel %vm3024_vm2, %v2887_v33, 0.0  ;;  %v5593_v40 = vpop.f32.mrb[207].mxu1 }
 0x400   : > { %v3177_v61 = vadd.f32 %v3176_v62, %v8115_v57  ;;  %5696 = vmatmul.mubr.msk.f32.vlgmr.msra.gmra.mrb[200].mxu0 %vm3024_vm2, %v3321_v28  ;;  %v3364_v57 = vld [vmem:[%s8736_s5 + $0x120] sm:$0xff]  ;;  %v3302_v28 = vsel %vm3024_vm2, %v8053_v5, 0.0 }
 0x401   : > { %5976 = vmatpush3.bf16.msra.mxu1 %v5975_v18  ;;  %6006 = vmatpush3.bf16.msra.mxu0 %v6005_v10  ;;  %v6011_v19 = vpack.c.bf16 %v3365_v17, %v3364_v57  ;;  %v3379_v10 = vld [vmem:[%s8736_s5 + $0x198] sm:$0xff]  ;;  %v3368_v40 = vld [vmem:[%s8736_s5 + $0x140] sm:$0xff] }
 0x402   : > { %v3179_v36 = vadd.f32 %v3178_v22, %v3177_v61  ;;  %v2892_v6 = vpop.f32.mrb[208].mxu1  ;;  %5977 = vmatprep.subr.bf16.mxu1 %v8761_v52  ;;  %6007 = vmatprep.subr.bf16.mxu0 %v8761_v52  ;;  %v6032_v62 = vpack.c.bf16 %v3379_v10, %v3378_v8  ;;  %v3313_v61 = vadd.f32 %v8143_v25, %v8188_v53  ;;  %v3380_v22 = vld [vmem:[%s8736_s5 + $0x1a0] sm:$0xff]  ;;  %v4088_v8 = vld [vmem:[%s8738_s7 + $0x28] sm:$0xff]  ;;  %v4086_v10 = vld [vmem:[%s8738_s7 + $0x18] sm:$0xff] }
 0x403   : > { %v3207_v4 = vsel %vm3024_vm2, %v2892_v6, 0.0  ;;  %v5596_v9 = vpop.f32.mrb[209].mxu1  ;;  %5733 = vmatprep.mubr.msk.f32.mxu0 %vm6181_vm0, %v6182_v39  ;;  %v3382_v6 = vld [vmem:[%s8736_s5 + $0x1b0] sm:$0xff] }
 0x404   : > { %v3208_v26 = vadd.f32 %v3207_v4, %v8120_v59  ;;  %v3366_v59 = vld [vmem:[%s8736_s5 + $0x130] sm:$0xff]  ;;  %v3314_v63 = vadd.f32 %v8143_v25, %v3179_v36  ;;  %v3322_v44 = vmax.f32 %v3313_v61, 0.0  ;;  %v3371_v36 = vld [vmem:[%s8736_s5 + $0x158] sm:$0xff]  ;;  %v6038_v17 = vpack.c.bf16 %v3383_v32, %v3382_v6  ;;  %v3372_v4 = vld [vmem:[%s8736_s5 + $0x160] sm:$0xff] }
 0x405   : > { %5979 = vmatpush3.bf16.msra.mxu1 %v5978_v42  ;;  %6009 = vmatpush3.bf16.msra.mxu0 %v6008_v1  ;;  %v6014_v12 = vpack.c.bf16 %v3367_v48, %v3366_v59  ;;  %v3381_v42 = vld [vmem:[%s8736_s5 + $0x1a8] sm:$0xff]  ;;  %v6020_v57 = vpack.c.bf16 %v3371_v36, %v3370_v45  ;;  %v3394_v59 = vld [vmem:[%s8736_s5 + $0x210] sm:$0xff]  ;;  %v3395_v48 = vld [vmem:[%s8736_s5 + $0x218] sm:$0xff] }
 0x406   : > { %v8229_v55 = vadd.f32 %v3209_v15, %v3208_v26  ;;  %v2897_v34 = vpop.f32.mrb[210].mxu1  ;;  %5992 = vmatprep.subr.bf16.mxu1 %v8761_v52  ;;  %6010 = vmatprep.subr.bf16.mxu0 %v8761_v52  ;;  %v3323_v23 = vmax.f32 %v3314_v63, 0.0  ;;  %v6035_v1 = vpack.c.bf16 %v3381_v42, %v3380_v22  ;;  %v3373_v26 = vld [vmem:[%s8736_s5 + $0x168] sm:$0xff]  ;;  %v3392_v15 = vld [vmem:[%s8736_s5 + $0x200] sm:$0xff]  ;;  %v4093_v45 = vld [vmem:[%s8738_s7 + $0x50] sm:$0xff] }
 0x407   : > { %v3238_v37 = vsel %vm3024_vm2, %v2897_v34, 0.0  ;;  %v5599_v24 = vpop.f32.mrb[211].mxu1  ;;  %v4096_v61 = vld [vmem:[%s8738_s7 + $0x68] sm:$0xff]  ;;  %v4097_v36 = vld [vmem:[%s8738_s7 + $0x70] sm:$0xff] }
 0x408   : > { %v3239_v49 = vadd.f32 %v3238_v37, %v8125_v56  ;;  %5677 = vmatmul.mubr.msk.f32.vlgmr.msra.gmra.mrb[218].mxu1 %vm3024_vm2, %v3320_v21  ;;  %v3376_v56 = vld [vmem:[%s8736_s5 + $0x180] sm:$0xff]  ;;  %v3374_v21 = vld [vmem:[%s8736_s5 + $0x170] sm:$0xff]  ;;  %v6056_v24 = vpack.c.bf16 %v3395_v48, %v3394_v59  ;;  %v6086_v6 = vpack.c.bf16 %v4097_v36, %v4093_v45  ;;  %v4100_v32 = vld [vmem:[%s8738_s7 + $0x88] sm:$0xff] }
 0x409   : > { %5994 = vmatpush3.bf16.msra.mxu1 %v5993_v30  ;;  %6012 = vmatpush3.bf16.msra.mxu0 %v6011_v19  ;;  %v6029_v2 = vpack.c.bf16 %v3377_v58, %v3376_v56  ;;  %v3393_v30 = vld [vmem:[%s8736_s5 + $0x208] sm:$0xff]  ;;  %v6023_v19 = vpack.c.bf16 %v3373_v26, %v3372_v4  ;;  %v6026_v37 = vpack.c.bf16 %v3375_v60, %v3374_v21  ;;  %v3398_v56 = vld [vmem:[%s8736_s5 + $0x230] sm:$0xff]  ;;  %v3399_v58 = vld [vmem:[%s8736_s5 + $0x238] sm:$0xff] }
 0x40a   : > { %v3241_v0 = vadd.f32 %v3240_v14, %v3239_v49  ;;  %v2902_v43 = vpop.f32.mrb[212].mxu1  ;;  %5995 = vmatprep.subr.bf16.mxu1 %v8761_v52  ;;  %6013 = vmatprep.subr.bf16.mxu0 %v8761_v52  ;;  %v6053_v47 = vpack.c.bf16 %v3393_v30, %v3392_v15  ;;  %v3384_v49 = vld [vmem:[%s8736_s5 + $0x1c0] sm:$0xff]  ;;  %v3315_v14 = vadd.f32 %v8143_v25, %v8229_v55  ;;  %v4105_v21 = vld [vmem:[%s8738_s7 + $0xb0] sm:$0xff]  ;;  %v4108_v60 = vld [vmem:[%s8738_s7 + $0xc8] sm:$0xff] }
 0x40b   : > { %v3269_v41 = vsel %vm3024_vm2, %v2902_v43, 0.0  ;;  %v5602_v35 = vpop.f32.mrb[213].mxu1  ;;  %5714 = vmatprep.mubr.msk.f32.mxu1 %vm6181_vm0, %v6182_v39  ;;  %v4099_v26 = vld [vmem:[%s8738_s7 + $0x80] sm:$0xff]  ;;  %v4112_v59 = vld [vmem:[%s8738_s7 + $0xe8] sm:$0xff]  ;;  %v4110_v48 = vld [vmem:[%s8738_s7 + $0xd8] sm:$0xff] }
 0x40c   : > { %v3270_v50 = vadd.f32 %v3269_v41, %v8130_v27  ;;  %v3359_v27 = vld [vmem:[%s8736_s5 + $0xf8] sm:$0xff]  ;;  %v3316_v9 = vadd.f32 %v8143_v25, %v3241_v0  ;;  %v3386_v0 = vld [vmem:[%s8736_s5 + $0x1d0] sm:$0xff]  ;;  %v3324_v43 = vmax.f32 %v3315_v14, 0.0  ;;  %v6062_v35 = vpack.c.bf16 %v3399_v58, %v3398_v56  ;;  %v4103_v15 = vld [vmem:[%s8738_s7 + $0xa0] sm:$0xff] }
 0x40d   : > { %5997 = vmatpush3.bf16.msra.mxu1 %v5996_v38  ;;  %6015 = vmatpush3.bf16.msra.mxu0 %v6014_v12  ;;  %v6002_v3 = vpack.c.bf16 %v3359_v27, %v3358_v16  ;;  %v3385_v38 = vld [vmem:[%s8736_s5 + $0x1c8] sm:$0xff]  ;;  %v3396_v12 = vld [vmem:[%s8736_s5 + $0x220] sm:$0xff]  ;;  %v6044_v41 = vpack.c.bf16 %v3387_v29, %v3386_v0 }
 0x40e   : > { %v3272_v11 = vadd.f32 %v3271_v46, %v3270_v50  ;;  %v2907_v18 = vpop.f32.mrb[214].mxu1  ;;  %5998 = vmatprep.subr.bf16.mxu1 %v8761_v52  ;;  %6028 = vmatprep.subr.bf16.mxu0 %v8761_v52  ;;  %v3325_v34 = vmax.f32 %v3316_v9, 0.0  ;;  %v6041_v55 = vpack.c.bf16 %v3385_v38, %v3384_v49  ;;  %v6059_v63 = vpack.c.bf16 %v3397_v20, %v3396_v12  ;;  %v3388_v46 = vld [vmem:[%s8736_s5 + $0x1e0] sm:$0xff]  ;;  %v4084_v27 = vld [vmem:[%s8738_s7 + $0x8] sm:$0xff]  ;;  %v4106_v9 = vld [vmem:[%s8738_s7 + $0xb8] sm:$0xff] }
 0x40f   : > { %v3300_v54 = vsel %vm3024_vm2, %v2907_v18, 0.0  ;;  %v5605_v33 = vpop.f32.mrb[215].mxu1  ;;  %v4107_v49 = vld [vmem:[%s8738_s7 + $0xc0] sm:$0xff]  ;;  %v4109_v20 = vld [vmem:[%s8738_s7 + $0xd0] sm:$0xff]  ;;  %v4335_v58 = vld [vmem:[%s8740_s9 + $0x188] sm:$0xff] }
 0x410   : > { %v8286_v7 = vadd.f32 %v8143_v25, %v3272_v11  ;;  %v3301_v51 = vadd.f32 %v3300_v54, %v8135_v13  ;;  %5734 = vmatmul.mubr.msk.f32.vlgmr.msra.gmra.mrb[202].mxu0 %vm3024_vm2, %v3323_v23  ;;  %v3369_v13 = vld [vmem:[%s8736_s5 + $0x148] sm:$0xff]  ;;  %v3391_v23 = vld [vmem:[%s8736_s5 + $0x1f8] sm:$0xff]  ;;  %v4111_v14 = vld [vmem:[%s8738_s7 + $0xe0] sm:$0xff] }
 0x411   : > { %6000 = vmatpush3.bf16.msra.mxu1 %v5999_v31  ;;  %6030 = vmatpush3.bf16.msra.mxu0 %v6029_v2  ;;  %v6017_v53 = vpack.c.bf16 %v3369_v13, %v3368_v40  ;;  %v3389_v31 = vld [vmem:[%s8736_s5 + $0x1e8] sm:$0xff]  ;;  %v4090_v54 = vld [vmem:[%s8738_s7 + $0x38] sm:$0xff]  ;;  %v6078_v12 = vpack.c.bf16 %v4111_v14, %v4107_v49  ;;  %v4302_v0 = vld [vmem:[%s8740_s9 + $0x80] sm:$0xff] }
 0x412   : > { %v8295_v5 = vadd.f32 %v3302_v28, %v3301_v51  ;;  %6001 = vmatprep.subr.bf16.mxu1 %v8761_v52  ;;  %6031 = vmatprep.subr.bf16.mxu0 %v8761_v52  ;;  %v6047_v2 = vpack.c.bf16 %v3389_v31, %v3388_v46  ;;  %v3326_v18 = vmax.f32 %v8286_v7, 0.0  ;;  %v4087_v28 = vld [vmem:[%s8738_s7 + $0x20] sm:$0xff]  ;;  %v6080_v33 = vpack.c.bf16 %v4090_v54, %v4086_v10  ;;  %v4085_v51 = vld [vmem:[%s8738_s7 + $0x10] sm:$0xff]  ;;  %v4098_v13 = vld [vmem:[%s8738_s7 + $0x78] sm:$0xff] }
 0x413   : > { %5771 = vmatprep.mubr.msk.f32.mxu0 %vm6181_vm0, %v6182_v39  ;;  %v4334_v29 = vld [vmem:[%s8740_s9 + $0x180] sm:$0xff]  ;;  %v4320_v14 = vld [vmem:[%s8740_s9 + $0x110] sm:$0xff] }
 0x414   : > { %v3318_v50 = vadd.f32 %v8143_v25, %v8295_v5  ;;  %v3390_v25 = vld [vmem:[%s8736_s5 + $0x1f0] sm:$0xff]  ;;  %v4094_v5 = vld [vmem:[%s8738_s7 + $0x58] sm:$0xff] }
 0x415   : > { %6003 = vmatpush3.bf16.msra.mxu1 %v6002_v3  ;;  %6033 = vmatpush3.bf16.msra.mxu0 %v6032_v62  ;;  %v6050_v11 = vpack.c.bf16 %v3391_v23, %v3390_v25  ;;  %v4089_v3 = vld [vmem:[%s8738_s7 + $0x30] sm:$0xff]  ;;  %v4092_v62 = vld [vmem:[%s8738_s7 + $0x48] sm:$0xff]  ;;  %v6084_v42 = vpack.c.bf16 %v4098_v13, %v4094_v5 }
 0x416   : > { %6016 = vmatprep.subr.bf16.mxu1 %v8761_v52  ;;  %6034 = vmatprep.subr.bf16.mxu0 %v8761_v52  ;;  %v3327_v16 = vmax.f32 %v3318_v50, 0.0  ;;  %v6082_v40 = vpack.c.bf16 %v4089_v3, %v4085_v51  ;;  %v6068_v22 = vpack.c.bf16 %v4096_v61, %v4092_v62 }
 0x418   : > { %5715 = vmatmul.mubr.msk.f32.vlgmr.msra.gmra.mrb[220].mxu1 %vm3024_vm2, %v3322_v44 }
 0x419   : > { %6018 = vmatpush3.bf16.msra.mxu1 %v6017_v53  ;;  %6036 = vmatpush3.bf16.msra.mxu0 %v6035_v1  ;;  %v4091_v53 = vld [vmem:[%s8738_s7 + $0x40] sm:$0xff] }
 0x41a   : > { %6019 = vmatprep.subr.bf16.mxu1 %v8761_v52  ;;  %6037 = vmatprep.subr.bf16.mxu0 %v8761_v52  ;;  %v4095_v1 = vld [vmem:[%s8738_s7 + $0x60] sm:$0xff] }
 0x41b   : > { %5752 = vmatprep.mubr.msk.f32.mxu1 %vm6181_vm0, %v6182_v39  ;;  %v6070_v44 = vpack.c.bf16 %v4095_v1, %v4091_v53 }
 0x41d   : > { %6021 = vmatpush3.bf16.msra.mxu1 %v6020_v57  ;;  %6039 = vmatpush3.bf16.msra.mxu0 %v6038_v17  ;;  %v4104_v57 = vld [vmem:[%s8738_s7 + $0xa8] sm:$0xff]  ;;  %v4102_v17 = vld [vmem:[%s8738_s7 + $0x98] sm:$0xff] }
 0x41e   : > { %6022 = vmatprep.subr.bf16.mxu1 %v8761_v52  ;;  %6052 = vmatprep.subr.bf16.mxu0 %v8761_v52  ;;  %v6072_v4 = vpack.c.bf16 %v4104_v57, %v4100_v32  ;;  %v6088_v30 = vpack.c.bf16 %v4106_v9, %v4102_v17  ;;  %v4715_v32 = vld [vmem:[%s8737_s6] ss:$0 sm:$0xff]  ;;  %v4287_v17 = vld [vmem:[%s8740_s9 + $0x8] sm:$0xff] }
 0x41f   : > { %v4286_v57 = vld [vmem:[%s8740_s9] sm:$0xff] }
 0x420   : > { %5772 = vmatmul.mubr.msk.f32.vlgmr.msra.gmra.mrb[204].mxu0 %vm3024_vm2, %v3325_v34  ;;  %v4318_v9 = vld [vmem:[%s8740_s9 + $0x100] sm:$0xff] }
 0x421   : > { %6024 = vmatpush3.bf16.msra.mxu1 %v6023_v19  ;;  %6054 = vmatpush3.bf16.msra.mxu0 %v6053_v47  ;;  %v6074_v19 = vpack.c.bf16 %v4103_v15, %v4099_v26  ;;  %v4101_v47 = vld [vmem:[%s8738_s7 + $0x90] sm:$0xff]  ;;  %v4319_v26 = vld [vmem:[%s8740_s9 + $0x108] sm:$0xff] }
 0x422   : > { %6025 = vmatprep.subr.bf16.mxu1 %v8761_v52  ;;  %6055 = vmatprep.subr.bf16.mxu0 %v8761_v52  ;;  %v6090_v34 = vpack.c.bf16 %v4105_v21, %v4101_v47  ;;  %v4304_v15 = vld [vmem:[%s8740_s9 + $0x90] sm:$0xff]  ;;  %v4337_v47 = vld [vmem:[%s8740_s9 + $0x198] sm:$0xff] }
 0x423   : > { %5809 = vmatprep.mubr.msk.f32.mxu0 %vm6181_vm0, %v6182_v39 }
 0x425   : > { %6027 = vmatpush3.bf16.msra.mxu1 %v6026_v37  ;;  %6057 = vmatpush3.bf16.msra.mxu0 %v6056_v24  ;;  %v6076_v37 = vpack.c.bf16 %v4112_v59, %v4108_v60  ;;  %v4114_v24 = vld [vmem:[%s8738_s7 + $0xf8] sm:$0xff]  ;;  %v6130_v60 = vpack.c.bf16 %v4319_v26, %v4318_v9  ;;  %v4288_v59 = vld [vmem:[%s8740_s9 + $0x10] sm:$0xff]  ;;  %v4314_v9 = vld [vmem:[%s8740_s9 + $0xe0] sm:$0xff] }
 0x426   : > { %6040 = vmatprep.subr.bf16.mxu1 %v8761_v52  ;;  %6058 = vmatprep.subr.bf16.mxu0 %v8761_v52  ;;  %v6092_v38 = vpack.c.bf16 %v4114_v24, %v4110_v48  ;;  %v4289_v48 = vld [vmem:[%s8740_s9 + $0x18] sm:$0xff]  ;;  %v4315_v26 = vld [vmem:[%s8740_s9 + $0xe8] sm:$0xff] }
 0x428   : > { %5753 = vmatmul.mubr.msk.f32.vlgmr.msra.gmra.mrb[222].mxu1 %vm3024_vm2, %v3324_v43  ;;  %v4303_v43 = vld [vmem:[%s8740_s9 + $0x88] sm:$0xff] }
 0x429   : > { %6042 = vmatpush3.bf16.msra.mxu1 %v6041_v55  ;;  %6060 = vmatpush3.bf16.msra.mxu0 %v6059_v63  ;;  %v4113_v55 = vld [vmem:[%s8738_s7 + $0xf0] sm:$0xff]  ;;  %v6096_v56 = vpack.c.bf16 %v4303_v43, %v4302_v0  ;;  %v6102_v0 = vpack.c.bf16 %v4289_v48, %v4288_v59  ;;  %v4299_v59 = vld [vmem:[%s8740_s9 + $0x68] sm:$0xff]  ;;  %v4330_v48 = vld [vmem:[%s8740_s9 + $0x160] sm:$0xff] }
 0x42a   : > { %6043 = vmatprep.subr.bf16.mxu1 %v8761_v52  ;;  %6061 = vmatprep.subr.bf16.mxu0 %v8761_v52  ;;  %v6094_v63 = vpack.c.bf16 %v4113_v55, %v4109_v20  ;;  %v4307_v20 = vld [vmem:[%s8740_s9 + $0xa8] sm:$0xff]  ;;  %v4338_v55 = vld [vmem:[%s8740_s9 + $0x1a0] sm:$0xff] }
 0x42b   : > { %5790 = vmatprep.mubr.msk.f32.mxu1 %vm6181_vm0, %v6182_v39 }
 0x42d   : > { %6045 = vmatpush3.bf16.msra.mxu1 %v6044_v41  ;;  %6063 = vmatpush3.bf16.msra.mxu0 %v6062_v35  ;;  %v6128_v41 = vpack.c.bf16 %v4335_v58, %v4334_v29  ;;  %v4290_v29 = vld [vmem:[%s8740_s9 + $0x20] sm:$0xff] }
 0x42e   : > { %6046 = vmatprep.subr.bf16.mxu1 %v8761_v52  ;;  %6081 = vmatprep.subr.bf16.mxu0 %v6080_v33 }
 0x430   : > { %5810 = vmatmul.mubr.msk.f32.vlgmr.msra.gmra.mrb[206].mxu0 %vm3024_vm2, %v3327_v16 }
 0x431   : > { %6048 = vmatpush3.bf16.msra.mxu1 %v6047_v2  ;;  %4275 = vmatprep.mubr.f32.mxu0 %v6182_v39 }
 0x432   : > { %6049 = vmatprep.subr.bf16.mxu1 %v8761_v52  ;;  %v6064_v52 = vpack.c.bf16 %v4088_v8, %v4084_v27  ;;  %6083 = vmatpush1.bf16.msra.mxu0 %v6082_v40 }
 0x433   : > { %6085 = vmatprep.subr.bf16.mxu0 %v6084_v42 }
 0x435   : > { %6051 = vmatpush3.bf16.msra.mxu1 %v6050_v11 }
 0x436   : > { %6065 = vmatprep.subr.bf16.mxu1 %v6064_v52  ;;  %6087 = vmatpush1.bf16.msra.mxu0 %v6086_v6 }
 0x437   : > { %6089 = vmatprep.subr.bf16.mxu0 %v6088_v30  ;;  %v4305_v30 = vld [vmem:[%s8740_s9 + $0x98] sm:$0xff] }
 0x438   : > { %5791 = vmatmul.mubr.msk.f32.vlgmr.msra.gmra.mrb[224].mxu1 %vm3024_vm2, %v3326_v18  ;;  %v6100_v24 = vpack.c.bf16 %v4305_v30, %v4304_v15  ;;  %v4346_v15 = vld [vmem:[%s8740_s9 + $0x1e0] sm:$0xff]  ;;  %v4347_v30 = vld [vmem:[%s8740_s9 + $0x1e8] sm:$0xff] }
 0x439   : > { %4204 = vmatprep.mubr.f32.mxu1 %v6182_v39  ;;  %v4083_v39 = vld [vmem:[%s8738_s7] sm:$0xff] }
 0x43a   : > { %v6066_v7 = vpack.c.bf16 %v4087_v28, %v4083_v39  ;;  %6091 = vmatpush1.bf16.msra.mxu0 %v6090_v34  ;;  %v6098_v34 = vpack.c.bf16 %v4287_v17, %v4286_v57  ;;  %v4328_v17 = vld [vmem:[%s8740_s9 + $0x150] sm:$0xff] }
 0x43b   : > { %6093 = vmatprep.subr.bf16.mxu0 %v6092_v38  ;;  %v4321_v38 = vld [vmem:[%s8740_s9 + $0x118] sm:$0xff] }
 0x43c   : > { %6067 = vmatpush1.bf16.msra.mxu1 %v6066_v7  ;;  %v6134_v43 = vpack.c.bf16 %v4321_v38, %v4320_v14  ;;  %v4316_v14 = vld [vmem:[%s8740_s9 + $0xf0] sm:$0xff]  ;;  %v4317_v38 = vld [vmem:[%s8740_s9 + $0xf8] sm:$0xff] }
 0x43d   : > { %6069 = vmatprep.subr.bf16.mxu1 %v6068_v22 }
 0x43e   : > { %6095 = vmatpush1.bf16.msra.mxu0 %v6094_v63  ;;  %v4339_v63 = vld [vmem:[%s8740_s9 + $0x1a8] sm:$0xff] }
 0x43f   : > { %6129 = vmatprep.subr.bf16.mxu0 %v6128_v41  ;;  %v6136_v41 = vpack.c.bf16 %v4339_v63, %v4338_v55  ;;  %v4349_v55 = vld [vmem:[%s8740_s9 + $0x1f8] sm:$0xff]  ;;  %v4300_v63 = vld [vmem:[%s8740_s9 + $0x70] sm:$0xff] }
 0x440   : > { %6071 = vmatpush1.bf16.msra.mxu1 %v6070_v44 }
 0x441   : > { %6073 = vmatprep.subr.bf16.mxu1 %v6072_v4 }
 0x444   : > { %6075 = vmatpush1.bf16.msra.mxu1 %v6074_v19  ;;  %v4336_v19 = vld [vmem:[%s8740_s9 + $0x190] sm:$0xff] }
 0x445   : > { %6077 = vmatprep.subr.bf16.mxu1 %v6076_v37  ;;  %v6132_v49 = vpack.c.bf16 %v4337_v47, %v4336_v19 }
 0x448   : > { %6079 = vmatpush1.bf16.msra.mxu1 %v6078_v12  ;;  %v4306_v12 = vld [vmem:[%s8740_s9 + $0xa0] sm:$0xff] }
 0x449   : > { %6097 = vmatprep.subr.bf16.mxu1 %v6096_v56  ;;  %v4291_v56 = vld [vmem:[%s8740_s9 + $0x28] sm:$0xff]  ;;  %v6104_v58 = vpack.c.bf16 %v4307_v20, %v4306_v12  ;;  %v4348_v12 = vld [vmem:[%s8740_s9 + $0x1f0] sm:$0xff]  ;;  %v6124_v20 = vpack.c.bf16 %v4317_v38, %v4316_v14 }
 0x4cb   : > { %v3470_v35 = vpop.f32.mrb[216].mxu1 }
 0x4cc   : > { %v5659_v50 = vpop.f32.mrb[217].mxu1  ;;  %v4058_v16 = vsel %vm3024_vm2, %v3470_v35, 0.0  ;;  %v4322_v35 = vld [vmem:[%s8740_s9 + $0x120] sm:$0xff] }
 0x4cd   : > { %v4323_v50 = vld [vmem:[%s8740_s9 + $0x128] sm:$0xff] }
 0x4d3   : > { %v3616_v46 = vpop.f32.mrb[200].mxu0 }
 0x4d4   : > { %v5697_v31 = vpop.f32.mrb[201].mxu0  ;;  %v4061_v18 = vsel %vm3024_vm2, %v3616_v46, 0.0  ;;  %v4308_v46 = vld [vmem:[%s8740_s9 + $0xb0] sm:$0xff] }
 0x4d5   : > { %v4309_v31 = vld [vmem:[%s8740_s9 + $0xb8] sm:$0xff] }
 0x4db   : > { %v3543_v2 = vpop.f32.mrb[218].mxu1 }
 0x4dc   : > { %v4059_v25 = vsel %vm3024_vm2, %v3543_v2, 0.0  ;;  %v5678_v23 = vpop.f32.mrb[219].mxu1  ;;  %v4340_v2 = vld [vmem:[%s8740_s9 + $0x1b0] sm:$0xff] }
 0x4dd   : > { %v4060_v11 = vadd.f32 %v4059_v25, %v4058_v16  ;;  %v4341_v16 = vld [vmem:[%s8740_s9 + $0x1b8] sm:$0xff]  ;;  %v6106_v25 = vpack.c.bf16 %v4291_v56, %v4290_v29  ;;  %v6138_v23 = vpack.c.bf16 %v4323_v50, %v4322_v35  ;;  %v4332_v56 = vld [vmem:[%s8740_s9 + $0x170] sm:$0xff]  ;;  %v4117_v35 = vlaneseq }
 0x4df   : > { %v4062_v27 = vadd.f32 %v4061_v18, %v4060_v11  ;;  %v4292_v11 = vld [vmem:[%s8740_s9 + $0x30] sm:$0xff]  ;;  %v4293_v18 = vld [vmem:[%s8740_s9 + $0x38] sm:$0xff]  ;;  %v4118_v50 = vshrl.u32 %v4117_v35, 7 }
 0x4e3   : > { %v3762_v8 = vpop.f32.mrb[202].mxu0 }
 0x4e4   : > { %v5735_v10 = vpop.f32.mrb[203].mxu0  ;;  %v4065_v33 = vsel %vm3024_vm2, %v3762_v8, 0.0  ;;  %v6140_v8 = vpack.c.bf16 %v4341_v16, %v4340_v2  ;;  %v4115_v2 = vld [vmem:[%s8739_s8] sm:$0xf]  ;;  %v4123_v16 = vsub.s32 1, %v4118_v50 }
 0x4e5   : > { %v4324_v10 = vld [vmem:[%s8740_s9 + $0x130] sm:$0xff] }
 0x4eb   : > { %v3689_v52 = vpop.f32.mrb[220].mxu1 }
 0x4ec   : > { %v4063_v54 = vsel %vm3024_vm2, %v3689_v52, 0.0  ;;  %v5716_v39 = vpop.f32.mrb[221].mxu1  ;;  %v4325_v52 = vld [vmem:[%s8740_s9 + $0x138] sm:$0xff] }
 0x4ed   : > { %v4064_v28 = vadd.f32 %v4063_v54, %v4062_v27  ;;  %v6108_v27 = vpack.c.bf16 %v4309_v31, %v4308_v46  ;;  %v4310_v54 = vld [vmem:[%s8740_s9 + $0xc0] sm:$0xff]  ;;  %v4311_v39 = vld [vmem:[%s8740_s9 + $0xc8] sm:$0xff]  ;;  %v4119_v46 = vsub.s32 0, %v4118_v50  ;;  %v4127_v31 = vsub.s32 2, %v4118_v50 }
 0x4ef   : > { %v4066_v7 = vadd.f32 %v4065_v33, %v4064_v28  ;;  %v4342_v28 = vld [vmem:[%s8740_s9 + $0x1c0] sm:$0xff]  ;;  %v4343_v33 = vld [vmem:[%s8740_s9 + $0x1c8] sm:$0xff] }
 0x4f3   : > { %v3908_v51 = vpop.f32.mrb[204].mxu0 }
 0x4f4   : > { %v5773_v3 = vpop.f32.mrb[205].mxu0  ;;  %v4069_v13 = vsel %vm3024_vm2, %v3908_v51, 0.0  ;;  %v6142_v51 = vpack.c.bf16 %v4325_v52, %v4324_v10 }
 0x4f5   : > { %v4294_v3 = vld [vmem:[%s8740_s9 + $0x40] sm:$0xff] }
 0x4fb   : > { %v3835_v62 = vpop.f32.mrb[222].mxu1 }
 0x4fc   : > { %v4067_v40 = vsel %vm3024_vm2, %v3835_v62, 0.0  ;;  %v5754_v61 = vpop.f32.mrb[223].mxu1  ;;  %v4295_v62 = vld [vmem:[%s8740_s9 + $0x48] sm:$0xff] }
 0x4fd   : > { %v4068_v5 = vadd.f32 %v4067_v40, %v4066_v7  ;;  %v6110_v7 = vpack.c.bf16 %v4293_v18, %v4292_v11  ;;  %v6112_v40 = vpack.c.bf16 %v4311_v39, %v4310_v54  ;;  %v6144_v61 = vpack.c.bf16 %v4343_v33, %v4342_v28 }
 0x4fe   : > { %v4128_v11 = vrot.slane %v4115_v2, %v4127_v31  ;;  %v4124_v18 = vrot.slane %v4115_v2, %v4123_v16 }
 0x4ff   : > { %v4070_v22 = vadd.f32 %v4069_v13, %v4068_v5  ;;  %v4326_v5 = vld [vmem:[%s8740_s9 + $0x140] sm:$0xff]  ;;  %v4327_v13 = vld [vmem:[%s8740_s9 + $0x148] sm:$0xff] }
 0x503   : > { %v4054_v42 = vpop.f32.mrb[206].mxu0 }
 0x504   : > { %v5811_v53 = vpop.f32.mrb[207].mxu0  ;;  %v4073_v6 = vsel %vm3024_vm2, %v4054_v42, 0.0  ;;  %v4313_v42 = vld [vmem:[%s8740_s9 + $0xd8] sm:$0xff] }
 0x505   : > { %v4344_v53 = vld [vmem:[%s8740_s9 + $0x1d0] sm:$0xff] }
 0x50b   : > { %v3981_v1 = vpop.f32.mrb[224].mxu1 }
 0x50c   : > { %v4071_v45 = vsel %vm3024_vm2, %v3981_v1, 0.0  ;;  %v5792_v44 = vpop.f32.mrb[225].mxu1  ;;  %v4345_v1 = vld [vmem:[%s8740_s9 + $0x1d8] sm:$0xff] }
 0x50d   : > { %v4072_v36 = vadd.f32 %v4071_v45, %v4070_v22  ;;  %v4312_v22 = vld [vmem:[%s8740_s9 + $0xd0] sm:$0xff]  ;;  %v6114_v45 = vpack.c.bf16 %v4295_v62, %v4294_v3  ;;  %v6146_v44 = vpack.c.bf16 %v4327_v13, %v4326_v5  ;;  %v6148_v57 = vpack.c.bf16 %v4345_v1, %v4344_v53  ;;  %v4718_v13 = vld [vmem:[%s8741_s10] ss:$0 sm:$0xff] }
 0x50f   : > { %v4074_v4 = vadd.f32 %v4073_v6, %v4072_v36  ;;  %v4296_v36 = vld [vmem:[%s8740_s9 + $0x50] sm:$0xff]  ;;  %v4297_v6 = vld [vmem:[%s8740_s9 + $0x58] sm:$0xff] }
 0x510   : > { %v6118_v19 = vpack.c.bf16 %v4297_v6, %v4296_v36 }
 0x511   : > { %v4081_v21 = vadd.f32 %v4715_v32, %v4074_v4  ;;  %v6116_v32 = vpack.c.bf16 %v4313_v42, %v4312_v22  ;;  %v4329_v4 = vld [vmem:[%s8740_s9 + $0x158] sm:$0xff] }
 0x512   : > { %v6150_v47 = vpack.c.bf16 %v4329_v4, %v4328_v17 }
 0x513   : > { %v4082_v37 = vmax.f32 %v4081_v21, 0.0  ;;  %v6120_v21 = vpack.c.bf16 %v4315_v26, %v4314_v9 }
 0x515   : > { %4716 = vmatmul.mubr.msk.f32.vlgmr.msra.gmra.mrb[226].mxu1 %vm3024_vm2, %v4082_v37  ;;  %4717 = vmatmul.mubr.msk.f32.vlgmr.msra.gmra.mrb[208].mxu0 %vm3024_vm2, %v4082_v37 }
 0x516   : > { %6099 = vmatpush3.bf16.msra.mxu1 %v6098_v34  ;;  %6131 = vmatpush3.bf16.msra.mxu0 %v6130_v60  ;;  %v6152_v34 = vpack.c.bf16 %v4347_v30, %v4346_v15  ;;  %v4298_v60 = vld [vmem:[%s8740_s9 + $0x60] sm:$0xff] }
 0x517   : > { %6101 = vmatprep.subr.bf16.mxu1 %v6100_v24  ;;  %6133 = vmatprep.subr.bf16.mxu0 %v6132_v49  ;;  %v6122_v37 = vpack.c.bf16 %v4299_v59, %v4298_v60  ;;  %v4331_v24 = vld [vmem:[%s8740_s9 + $0x168] sm:$0xff] }
 0x518   : > { %v6154_v49 = vpack.c.bf16 %v4331_v24, %v4330_v48 }
 0x51a   : > { %6103 = vmatpush3.bf16.msra.mxu1 %v6102_v0  ;;  %6135 = vmatpush3.bf16.msra.mxu0 %v6134_v43  ;;  %v4301_v0 = vld [vmem:[%s8740_s9 + $0x78] sm:$0xff]  ;;  %v6156_v43 = vpack.c.bf16 %v4349_v55, %v4348_v12 }
 0x51b   : > { %6105 = vmatprep.subr.bf16.mxu1 %v6104_v58  ;;  %6137 = vmatprep.subr.bf16.mxu0 %v6136_v41  ;;  %v6126_v29 = vpack.c.bf16 %v4301_v0, %v4300_v63  ;;  %v4333_v58 = vld [vmem:[%s8740_s9 + $0x178] sm:$0xff] }
 0x51c   : > { %v6158_v41 = vpack.c.bf16 %v4333_v58, %v4332_v56 }
 0x51e   : > { %6107 = vmatpush3.bf16.msra.mxu1 %v6106_v25  ;;  %6139 = vmatpush3.bf16.msra.mxu0 %v6138_v23  ;;  %v4131_v25 = vsub.s32 3, %v4118_v50  ;;  %v4120_v23 = vrot.slane %v4115_v2, %v4119_v46 }
 0x51f   : > { %6109 = vmatprep.subr.bf16.mxu1 %v6108_v27  ;;  %6141 = vmatprep.subr.bf16.mxu0 %v6140_v8 }
 0x520   : > { %v4132_v27 = vrot.slane %v4115_v2, %v4131_v25 }
 0x522   : > { %6111 = vmatpush3.bf16.msra.mxu1 %v6110_v7  ;;  %6143 = vmatpush3.bf16.msra.mxu0 %v6142_v51 }
 0x523   : > { %6113 = vmatprep.subr.bf16.mxu1 %v6112_v40  ;;  %6145 = vmatprep.subr.bf16.mxu0 %v6144_v61 }
 0x526   : > { %6115 = vmatpush3.bf16.msra.mxu1 %v6114_v45  ;;  %6147 = vmatpush3.bf16.msra.mxu0 %v6146_v44 }
 0x527   : > { %6117 = vmatprep.subr.bf16.mxu1 %v6116_v32  ;;  %6149 = vmatprep.subr.bf16.mxu0 %v6148_v57 }
 0x52a   : > { %6119 = vmatpush3.bf16.msra.mxu1 %v6118_v19  ;;  %6151 = vmatpush3.bf16.msra.mxu0 %v6150_v47 }
 0x52b   : > { %6121 = vmatprep.subr.bf16.mxu1 %v6120_v21  ;;  %6153 = vmatprep.subr.bf16.mxu0 %v6152_v34 }
 0x52e   : > { %6123 = vmatpush3.bf16.msra.mxu1 %v6122_v37  ;;  %6155 = vmatpush3.bf16.msra.mxu0 %v6154_v49 }
 0x52f   : > { %6125 = vmatprep.subr.bf16.mxu1 %v6124_v20  ;;  %6157 = vmatprep.subr.bf16.mxu0 %v6156_v43 }
 0x532   : > { %6127 = vmatpush3.bf16.msra.mxu1 %v6126_v29  ;;  %6159 = vmatpush3.bf16.msra.mxu0 %v6158_v41 }
 0x5e8   : > { %v4206_v8 = vpop.f32.mrb[226].mxu1  ;;  %v4277_v10 = vpop.f32.mrb[208].mxu0 }
 0x5e9   : > { %v4207_v52 = vadd.f32 %v4206_v8, %v4120_v23  ;;  %v4278_v54 = vadd.f32 %v4277_v10, %v4128_v11  ;;  %v4208_v39 = vpop.f32.mrb[227].mxu1  ;;  %v4279_v28 = vpop.f32.mrb[209].mxu0 }
 0x5ea   : > { %v4209_v33 = vadd.f32 %v4208_v39, %v4124_v18  ;;  %v4280_v7 = vadd.f32 %v4279_v28, %v4132_v27 }
 0x5eb   : > { %v4282_v62 = vmax.f32 %v4207_v52, 0.0  ;;  %v4284_v40 = vmax.f32 %v4278_v54, 0.0 }
 0x5ec   : > { %v4283_v51 = vmax.f32 %v4209_v33, 0.0  ;;  %v4285_v3 = vmax.f32 %v4280_v7, 0.0 }
 0x5ee   : > { %4421 = vmatprep.mubr.f32.mxu1 %v4283_v51  ;;  %4491 = vmatprep.mubr.f32.mxu0 %v4285_v3 }
 0x5ef   : > { %4422 = vmatmul.mubr.f32.vlgmr.msra.gmra.mrb[228].mxu1 %v4282_v62  ;;  %4492 = vmatmul.mubr.f32.vlgmr.msra.gmra.mrb[210].mxu0 %v4284_v40 }
 0x6c2   : > { %v5043_v61 = vpop.f32.mrb[228].mxu1  ;;  %v5078_v5 = vpop.f32.mrb[210].mxu0 }
 0x6c3   : > { %v5044_v22 = vpop.f32.mrb[229].mxu1  ;;  %v5079_v42 = vpop.f32.mrb[211].mxu0 }
 0x6c4   : > { %v5045_v53 = vadd.f32 %v5044_v22, %v5043_v61  ;;  %v5080_v1 = vadd.f32 %v5079_v42, %v5078_v5 }
 0x6c6   : > { %v4424_v45 = vadd.f32 %v5045_v53, %v4718_v13 }
 0x6c8   : > { %v4494_v44 = vadd.f32 %v5080_v1, %v4424_v45 }
 0x6ca   : > { %4497 = vst [vmem:[%s389_s27] sm:$0xff] %v4494_v44 }
 0x6cb PF: > { %s21_s17 = sadd.s32 1, %s6178_s17  }
 0x6cc   : > { %p18_p5 = scmp.ge.s32.totalorder %s21_s17, 4  }
 0x6ce   :  { %20 = sbr.rel (!%p18_p5) target bundleno = 1 (0x1), region = 94 }

</bundles_post_ra>
